<compile_context>
chip_gen: v7x
topology: tpu7x:2x2x1
jax: 0.10.0
libtpu: 0.0.40
codegen_flags: <defaults>
</compile_context>

<pallas_src>
import functools

import jax
import jax.numpy as jnp
from jax.experimental import pallas as pl
from jax.experimental.pallas import tpu as pltpu


def _layer_norm(y, gamma, beta, eps=1e-5):
    mu = jnp.mean(y, axis=-1, keepdims=True)
    var = jnp.mean((y - mu) ** 2, axis=-1, keepdims=True)
    return (y - mu) * jax.lax.rsqrt(var + eps) * gamma + beta


# ----------------------------------------------------------------------------
# Single fused kernel: embedding + concat(h) + depth x (MHSA + LN + FF + LN)
# + toprobs.  Everything lives in VMEM for the whole forward.
# ----------------------------------------------------------------------------
def _fused_transformer_kernel(heads, depth, T_in,
                              inputs_ref, h_ref, mask_ref,
                              emb_w_ref, emb_b_ref,
                              wq_ref, wk_ref, wv_ref, wu_ref, bu_ref,
                              g1_ref, be1_ref,
                              w1_ref, b1_ref, w2_ref, b2_ref,
                              g2_ref, be2_ref,
                              top_w_ref, top_b_ref,
                              probs_ref, tokens_ref,
                              att_scratch):
    B, T_pad, E = tokens_ref.shape
    T = T_in + 1                      # real tokens = inputs tokens + hidden token
    eh = E // heads
    qk_scale = float(eh) ** -0.25     # queries / e**(1/4), keys / e**(1/4)

    # ---- token embedding (on sublane-padded, pre-flattened inputs) ----------
    tok = (jnp.dot(inputs_ref[...], emb_w_ref[...],
                   preferred_element_type=jnp.float32)
           + emb_b_ref[...])                                  # (B*T_pad, E)
    tokens_ref[...] = tok.reshape(B, T_pad, E).astype(tokens_ref.dtype)
    # cat((tokens, h), dim=1): hidden-state token goes into row T_in.
    tokens_ref[:, T_in:T_in + 1, :] = h_ref[...].astype(tokens_ref.dtype)
    if T_pad > T:                     # zero the padded rows (masked out below)
        tokens_ref[:, T:, :] = jnp.zeros((B, T_pad - T, E), tokens_ref.dtype)

    # ---- additive attention mask, computed ONCE (hoisted out of the
    #      depth / head loops): masked_fill(mask == 0, -1e9) ------------------
    neg = jnp.where(mask_ref[...] == 0, -1.0e9, 0.0).astype(jnp.float32)

    x3 = tokens_ref[...].astype(jnp.float32)                  # (B, T_pad, E)
    for d in range(depth):
        x2 = x3.reshape(B * T_pad, E)
        q = (jnp.dot(x2, wq_ref[d], preferred_element_type=jnp.float32)
             * qk_scale).reshape(B, T_pad, E)
        k = (jnp.dot(x2, wk_ref[d], preferred_element_type=jnp.float32)
             * qk_scale).reshape(B, T_pad, E)
        v = jnp.dot(x2, wv_ref[d],
                    preferred_element_type=jnp.float32).reshape(B, T_pad, E)

        # Per-head attention (static unroll); scores / softmax / value-gather
        # are batched over the batch axis via one dot_general per head.
        for hh in range(heads):
            sl = slice(hh * eh, (hh + 1) * eh)
            dot = jnp.einsum('bqe,bke->bqk', q[:, :, sl], k[:, :, sl],
                             preferred_element_type=jnp.float32) + neg
            dot = dot - jnp.max(dot, axis=-1, keepdims=True)
            p = jnp.exp(dot)
            p = p / jnp.sum(p, axis=-1, keepdims=True)        # softmax, dim=-1
            att_scratch[:, :, sl] = jnp.einsum(
                'bqk,bke->bqe', p, v[:, :, sl],
                preferred_element_type=jnp.float32)

        # ONE unifyheads matmul on the assembled heads (not `heads` tiny ones).
        att = jnp.dot(att_scratch[...].reshape(B * T_pad, E), wu_ref[d],
                      preferred_element_type=jnp.float32) + bu_ref[d]

        # residual + LayerNorm 1
        x1 = _layer_norm(att + x2, g1_ref[d], be1_ref[d])
        # feed-forward: Linear -> ReLU -> Linear   (dropout p=0.0 -> identity)
        hdn = jnp.maximum(
            jnp.dot(x1, w1_ref[d], preferred_element_type=jnp.float32)
            + b1_ref[d], 0.0)
        ff = (jnp.dot(hdn, w2_ref[d], preferred_element_type=jnp.float32)
              + b2_ref[d])
        # residual + LayerNorm 2
        x3 = _layer_norm(ff + x1, g2_ref[d], be2_ref[d]).reshape(B, T_pad, E)

    # ---- toprobs (lane-dense padded output; wrapper slices back) ------------
    probs = (jnp.dot(x3.reshape(B * T_pad, E), top_w_ref[...],
                     preferred_element_type=jnp.float32) + top_b_ref[...])
    probs_ref[...] = probs.reshape(B, T_pad, -1).astype(probs_ref.dtype)


# ----------------------------------------------------------------------------
# Wrapper: pads T -> multiple of 8 and output dim -> multiple of 128, builds
# the single fused pallas_call, slices the padding back off.
# ----------------------------------------------------------------------------
def transformer_forward(params, inputs, h, mask, heads):
    B, T_in, D = inputs.shape
    E = params["emb_w"].shape[1]
    depth, _, F = params["w1"].shape
    T = T_in + 1
    T_pad = ((T + 7) // 8) * 8                        # sublane-aligned tokens
    O = params["top_w"].shape[1]
    O_pad = ((O + 127) // 128) * 128                  # lane-dense output slab

    # Sublane-pad the input tokens (extra rows are zero; masked out in-kernel)
    # and pre-flatten so the kernel only does tile-aligned reshapes.
    inputs_pad = jnp.zeros((B, T_pad, D), inputs.dtype).at[:, :T_in, :].set(inputs)
    inputs_flat = inputs_pad.reshape(B * T_pad, D)
    # Pad the mask with zeros so padded key columns are masked (-1e9).
    mask_pad = jnp.zeros((B, T_pad, T_pad), mask.dtype).at[:, :T, :T].set(mask)
    # Lane-pad the output projection with zero columns.
    top_w = jnp.pad(params["top_w"], ((0, 0), (0, O_pad - O)))
    top_b = jnp.pad(params["top_b"].reshape(1, O), ((0, 0), (0, O_pad - O)))

    def full(shape):
        n = len(shape)
        return pl.BlockSpec(shape, lambda i, _n=n: (0,) * _n)

    kernel = functools.partial(_fused_transformer_kernel, heads, depth, T_in)
    probs_pad, tokens_pad = pl.pallas_call(
        kernel,
        out_shape=(jax.ShapeDtypeStruct((B, T_pad, O_pad), jnp.float32),
                   jax.ShapeDtypeStruct((B, T_pad, E), jnp.float32)),
        grid=(1,),
        in_specs=[
            full((B * T_pad, D)),                               # inputs (flat)
            full((B, 1, E)),                                    # hidden token
            full((B, T_pad, T_pad)),                            # mask
            full((D, E)), full((1, E)),                         # token_embedding
            full((depth, E, E)), full((depth, E, E)),           # wq, wk
            full((depth, E, E)), full((depth, E, E)),           # wv, wu
            full((depth, 1, E)),                                # bu
            full((depth, 1, E)), full((depth, 1, E)),           # ln1 gamma/beta
            full((depth, E, F)), full((depth, 1, F)),           # ff w1, b1
            full((depth, F, E)), full((depth, 1, E)),           # ff w2, b2
            full((depth, 1, E)), full((depth, 1, E)),           # ln2 gamma/beta
            full((E, O_pad)), full((1, O_pad)),                 # toprobs
        ],
        out_specs=(full((B, T_pad, O_pad)), full((B, T_pad, E))),
        scratch_shapes=[pltpu.VMEM((B, T_pad, E), jnp.float32)],
    )(
        inputs_flat, h, mask_pad,
        params["emb_w"], params["emb_b"],
        params["wq"], params["wk"], params["wv"], params["wu"], params["bu"],
        params["g1"], params["be1"],
        params["w1"], params["b1"], params["w2"], params["b2"],
        params["g2"], params["be2"],
        top_w, top_b,
    )
    return probs_pad[:, :T, :O], tokens_pad[:, :T, :]


# ----------------------------------------------------------------------------
# Parameter init (deterministic, synthetic — not a checkpoint load).  Per-block
# weights are stacked along a leading `depth` axis so a single kernel holds
# every layer's weights.
# ----------------------------------------------------------------------------
def init_params(key, token_dim, emb, heads, depth, output_dim, ff_mult=4):
    def lin_init(k, fan_in, fan_out, bias=True):
        kw, kb = jax.random.split(k)
        bound = 1.0 / (fan_in ** 0.5)
        w = jax.random.uniform(kw, (fan_in, fan_out), jnp.float32, -bound, bound)
        b = (jax.random.uniform(kb, (fan_out,), jnp.float32, -bound, bound)
             if bias else jnp.zeros((fan_out,), jnp.float32))
        return w, b

    F = ff_mult * emb
    keys = jax.random.split(key, 2 + depth)
    emb_w, emb_b = lin_init(keys[0], token_dim, emb)
    top_w, top_b = lin_init(keys[1], emb, output_dim)

    wq, wk, wv, wu, bu, w1, b1, w2, b2 = ([] for _ in range(9))
    for d in range(depth):
        bkeys = jax.random.split(keys[2 + d], 6)
        wq.append(lin_init(bkeys[0], emb, emb, bias=False)[0])
        wk.append(lin_init(bkeys[1], emb, emb, bias=False)[0])
        wv.append(lin_init(bkeys[2], emb, emb, bias=False)[0])
        wu_d, bu_d = lin_init(bkeys[3], emb, emb)
        w1_d, b1_d = lin_init(bkeys[4], emb, F)
        w2_d, b2_d = lin_init(bkeys[5], F, emb)
        wu.append(wu_d); bu.append(bu_d)
        w1.append(w1_d); b1.append(b1_d); w2.append(w2_d); b2.append(b2_d)

    stack = lambda xs: jnp.stack(xs, axis=0)
    ones = jnp.ones((depth, 1, emb), jnp.float32)
    zeros = jnp.zeros((depth, 1, emb), jnp.float32)
    return dict(
        emb_w=emb_w, emb_b=emb_b.reshape(1, emb),
        top_w=top_w, top_b=top_b,
        wq=stack(wq), wk=stack(wk), wv=stack(wv), wu=stack(wu),
        bu=stack(bu).reshape(depth, 1, emb),
        g1=ones, be1=zeros, g2=ones, be2=zeros,
        w1=stack(w1), b1=stack(b1).reshape(depth, 1, F),
        w2=stack(w2), b2=stack(b2).reshape(depth, 1, emb),
    )


# ----------------------------------------------------------------------------
# Pure-JAX reference (mirrors the PyTorch forward) for a sanity check
# ----------------------------------------------------------------------------
def ref_forward(params, inputs, h, mask, heads):
    def ln(y, g, be, eps=1e-5):
        mu = y.mean(-1, keepdims=True)
        var = ((y - mu) ** 2).mean(-1, keepdims=True)
        return (y - mu) / jnp.sqrt(var + eps) * g + be

    tok = inputs @ params["emb_w"] + params["emb_b"]
    tokens = jnp.concatenate([tok, h], axis=1)
    x = tokens
    B, T, E = x.shape
    eh = E // heads
    depth = params["wq"].shape[0]
    for d in range(depth):
        q = (x @ params["wq"][d]).reshape(B, T, heads, eh).transpose(0, 2, 1, 3) / eh ** 0.25
        k = (x @ params["wk"][d]).reshape(B, T, heads, eh).transpose(0, 2, 1, 3) / eh ** 0.25
        v = (x @ params["wv"][d]).reshape(B, T, heads, eh).transpose(0, 2, 1, 3)
        dot = jnp.einsum("bhqe,bhke->bhqk", q, k)
        dot = jnp.where(mask[:, None] == 0, -1.0e9, dot)
        a = jax.nn.softmax(dot, axis=-1)
        o = jnp.einsum("bhqk,bhke->bhqe", a, v).transpose(0, 2, 1, 3).reshape(B, T, E)
        att = o @ params["wu"][d] + params["bu"][d]
        x1 = ln(att + x, params["g1"][d], params["be1"][d])
        ff = (jnp.maximum(x1 @ params["w1"][d] + params["b1"][d], 0.0)
              @ params["w2"][d] + params["b2"][d])
        x = ln(ff + x1, params["g2"][d], params["be2"][d])
    probs = x @ params["top_w"] + params["top_b"]
    return probs, tokens


# ----------------------------------------------------------------------------
if __name__ == "__main__":
    key = jax.random.PRNGKey(0)

    # Small SMAC-like shapes: bs*n_agents=2, 1 own token + 3 enemies + 2 allies
    B = 2
    n_enemies, n_allies = 3, 2
    own_dim, enemy_dim, ally_dim = 10, 8, 8
    token_dim = max(own_dim, enemy_dim, ally_dim)          # = 10
    T_in = 1 + n_enemies + n_allies                        # = 6
    emb, heads, depth = 32, 8, 2
    output_dim = 6 + n_enemies                             # n_actions = 9
    T = T_in + 1                                           # hidden token appended

    k_in, k_h, k_p = jax.random.split(key, 3)
    inputs = jax.random.normal(k_in, (B, T_in, token_dim), jnp.float32)
    h = jax.random.normal(k_h, (B, 1, emb), jnp.float32)   # hidden-state token
    mask = jnp.ones((B, T, T), jnp.float32)                # no positions masked

    params = init_params(k_p, token_dim, emb, heads, depth, output_dim)

    probs, tokens = transformer_forward(params, inputs, h, mask, heads)
    probs = jax.block_until_ready(probs)
    tokens = jax.block_until_ready(tokens)

    # sanity-check against pure-JAX reference
    ref_probs, ref_tokens = ref_forward(params, inputs, h, mask, heads)
    assert probs.shape == (B, T, output_dim) and tokens.shape == (B, T, emb)
    assert jnp.allclose(probs, ref_probs, rtol=1e-4, atol=1e-4)
    assert jnp.allclose(tokens, ref_tokens, rtol=1e-4, atol=1e-4)

    print("KERNEL_OK")
</pallas_src>

<mosaic_0001>
module attributes {stable_mosaic.version = 11 : i64} {
  func.func @_fused_transformer_kernel(%arg0: i32, %arg1: memref<16x10xf32, #tpu.memory_space<vmem>>, %arg2: memref<2x1x32xf32, #tpu.memory_space<vmem>>, %arg3: memref<2x8x8xf32, #tpu.memory_space<vmem>>, %arg4: memref<10x32xf32, #tpu.memory_space<vmem>>, %arg5: memref<1x32xf32, #tpu.memory_space<vmem>>, %arg6: memref<2x32x32xf32, #tpu.memory_space<vmem>>, %arg7: memref<2x32x32xf32, #tpu.memory_space<vmem>>, %arg8: memref<2x32x32xf32, #tpu.memory_space<vmem>>, %arg9: memref<2x32x32xf32, #tpu.memory_space<vmem>>, %arg10: memref<2x1x32xf32, #tpu.memory_space<vmem>>, %arg11: memref<2x1x32xf32, #tpu.memory_space<vmem>>, %arg12: memref<2x1x32xf32, #tpu.memory_space<vmem>>, %arg13: memref<2x32x128xf32, #tpu.memory_space<vmem>>, %arg14: memref<2x1x128xf32, #tpu.memory_space<vmem>>, %arg15: memref<2x128x32xf32, #tpu.memory_space<vmem>>, %arg16: memref<2x1x32xf32, #tpu.memory_space<vmem>>, %arg17: memref<2x1x32xf32, #tpu.memory_space<vmem>>, %arg18: memref<2x1x32xf32, #tpu.memory_space<vmem>>, %arg19: memref<32x128xf32, #tpu.memory_space<vmem>>, %arg20: memref<1x128xf32, #tpu.memory_space<vmem>>, %arg21: memref<2x8x128xf32, #tpu.memory_space<vmem>>, %arg22: memref<2x8x32xf32, #tpu.memory_space<vmem>>, %arg23: memref<2x8x32xf32, #tpu.memory_space<vmem>>) attributes {dimension_semantics = [#tpu.dimension_semantics<arbitrary>], iteration_bounds = array<i64: 1>, scalar_prefetch = 0 : i64, scratch_operands = 1 : i64, tpu.core_type = #tpu.core_type<tc>, window_params = [{pipeline_mode = #tpu.pipeline_mode<synchronous>, transform_indices = @transform_0, window_bounds = array<i64: 16, 10>}, {pipeline_mode = #tpu.pipeline_mode<synchronous>, transform_indices = @transform_1, window_bounds = array<i64: 2, 1, 32>}, {pipeline_mode = #tpu.pipeline_mode<synchronous>, transform_indices = @transform_2, window_bounds = array<i64: 2, 8, 8>}, {pipeline_mode = #tpu.pipeline_mode<synchronous>, transform_indices = @transform_3, window_bounds = array<i64: 10, 32>}, {pipeline_mode = #tpu.pipeline_mode<synchronous>, transform_indices = @transform_4, window_bounds = array<i64: 1, 32>}, {pipeline_mode = #tpu.pipeline_mode<synchronous>, transform_indices = @transform_5, window_bounds = array<i64: 2, 32, 32>}, {pipeline_mode = #tpu.pipeline_mode<synchronous>, transform_indices = @transform_6, window_bounds = array<i64: 2, 32, 32>}, {pipeline_mode = #tpu.pipeline_mode<synchronous>, transform_indices = @transform_7, window_bounds = array<i64: 2, 32, 32>}, {pipeline_mode = #tpu.pipeline_mode<synchronous>, transform_indices = @transform_8, window_bounds = array<i64: 2, 32, 32>}, {pipeline_mode = #tpu.pipeline_mode<synchronous>, transform_indices = @transform_9, window_bounds = array<i64: 2, 1, 32>}, {pipeline_mode = #tpu.pipeline_mode<synchronous>, transform_indices = @transform_10, window_bounds = array<i64: 2, 1, 32>}, {pipeline_mode = #tpu.pipeline_mode<synchronous>, transform_indices = @transform_11, window_bounds = array<i64: 2, 1, 32>}, {pipeline_mode = #tpu.pipeline_mode<synchronous>, transform_indices = @transform_12, window_bounds = array<i64: 2, 32, 128>}, {pipeline_mode = #tpu.pipeline_mode<synchronous>, transform_indices = @transform_13, window_bounds = array<i64: 2, 1, 128>}, {pipeline_mode = #tpu.pipeline_mode<synchronous>, transform_indices = @transform_14, window_bounds = array<i64: 2, 128, 32>}, {pipeline_mode = #tpu.pipeline_mode<synchronous>, transform_indices = @transform_15, window_bounds = array<i64: 2, 1, 32>}, {pipeline_mode = #tpu.pipeline_mode<synchronous>, transform_indices = @transform_16, window_bounds = array<i64: 2, 1, 32>}, {pipeline_mode = #tpu.pipeline_mode<synchronous>, transform_indices = @transform_17, window_bounds = array<i64: 2, 1, 32>}, {pipeline_mode = #tpu.pipeline_mode<synchronous>, transform_indices = @transform_18, window_bounds = array<i64: 32, 128>}, {pipeline_mode = #tpu.pipeline_mode<synchronous>, transform_indices = @transform_19, window_bounds = array<i64: 1, 128>}, {pipeline_mode = #tpu.pipeline_mode<synchronous>, transform_indices = @transform_20, window_bounds = array<i64: 2, 8, 128>}, {pipeline_mode = #tpu.pipeline_mode<synchronous>, transform_indices = @transform_21, window_bounds = array<i64: 2, 8, 32>}]} {
    %c0 = arith.constant 0 : index
    %c0_0 = arith.constant 0 : index
    %0 = vector.load %arg1[%c0, %c0_0] : memref<16x10xf32, #tpu.memory_space<vmem>>, vector<16x10xf32>
    %c0_1 = arith.constant 0 : index
    %c0_2 = arith.constant 0 : index
    %1 = vector.load %arg4[%c0_1, %c0_2] : memref<10x32xf32, #tpu.memory_space<vmem>>, vector<10x32xf32>
    %cst = arith.constant dense<0.000000e+00> : vector<16x32xf32>
    %2 = tpu.matmul %0, %1, %cst {dimension_numbers = #tpu.dot_dimension_numbers<[1], [0], [0], [1], [0, 0, 1, 1], [], []>} : vector<16x10xf32>, vector<10x32xf32>, vector<16x32xf32> -> vector<16x32xf32>
    %c0_3 = arith.constant 0 : index
    %c0_4 = arith.constant 0 : index
    %3 = vector.load %arg5[%c0_3, %c0_4] : memref<1x32xf32, #tpu.memory_space<vmem>>, vector<1x32xf32>
    %4 = vector.broadcast %3 : vector<1x32xf32> to vector<16x32xf32>
    %5 = arith.addf %2, %4 : vector<16x32xf32>
    %6 = vector.shape_cast %5 : vector<16x32xf32> to vector<2x8x32xf32>
    %c0_5 = arith.constant 0 : index
    %c0_6 = arith.constant 0 : index
    %c0_7 = arith.constant 0 : index
    %7 = vector.load %arg22[%c0_5, %c0_6, %c0_7] : memref<2x8x32xf32, #tpu.memory_space<vmem>>, vector<2x8x32xf32>
    tpu.vector_store %arg22[%c0_5, %c0_6, %c0_7], %6 {strides = array<i32>} : memref<2x8x32xf32, #tpu.memory_space<vmem>>, vector<2x8x32xf32>,
    %c0_8 = arith.constant 0 : index
    %c0_9 = arith.constant 0 : index
    %c0_10 = arith.constant 0 : index
    %8 = vector.load %arg2[%c0_8, %c0_9, %c0_10] : memref<2x1x32xf32, #tpu.memory_space<vmem>>, vector<2x1x32xf32>
    %c0_11 = arith.constant 0 : index
    %c6 = arith.constant 6 : index
    %c0_12 = arith.constant 0 : index
    %9 = vector.load %arg22[%c0_11, %c6, %c0_12] : memref<2x8x32xf32, #tpu.memory_space<vmem>>, vector<2x1x32xf32>
    tpu.vector_store %arg22[%c0_11, %c6, %c0_12], %8 {strides = array<i32>} : memref<2x8x32xf32, #tpu.memory_space<vmem>>, vector<2x1x32xf32>,
    %cst_13 = arith.constant 0.000000e+00 : f32
    %10 = vector.broadcast %cst_13 : f32 to vector<2x1x32xf32>
    %c0_14 = arith.constant 0 : index
    %c7 = arith.constant 7 : index
    %c0_15 = arith.constant 0 : index
    %11 = vector.load %arg22[%c0_14, %c7, %c0_15] : memref<2x8x32xf32, #tpu.memory_space<vmem>>, vector<2x1x32xf32>
    tpu.vector_store %arg22[%c0_14, %c7, %c0_15], %10 {strides = array<i32>} : memref<2x8x32xf32, #tpu.memory_space<vmem>>, vector<2x1x32xf32>,
    %c0_16 = arith.constant 0 : index
    %c0_17 = arith.constant 0 : index
    %c0_18 = arith.constant 0 : index
    %12 = vector.load %arg3[%c0_16, %c0_17, %c0_18] : memref<2x8x8xf32, #tpu.memory_space<vmem>>, vector<2x8x8xf32>
    %cst_19 = arith.constant 0.000000e+00 : f32
    %13 = vector.broadcast %cst_19 : f32 to vector<2x8x8xf32>
    %14 = arith.cmpf oeq, %12, %13 : vector<2x8x8xf32>
    %cst_20 = arith.constant -1.000000e+09 : f32
    %cst_21 = arith.constant 0.000000e+00 : f32
    %15 = vector.broadcast %cst_20 : f32 to vector<2x8x8xf32>
    %16 = vector.broadcast %cst_21 : f32 to vector<2x8x8xf32>
    %17 = arith.select %14, %15, %16 : vector<2x8x8xi1>, vector<2x8x8xf32>
    %c0_22 = arith.constant 0 : index
    %c0_23 = arith.constant 0 : index
    %c0_24 = arith.constant 0 : index
    %18 = vector.load %arg22[%c0_22, %c0_23, %c0_24] : memref<2x8x32xf32, #tpu.memory_space<vmem>>, vector<2x8x32xf32>
    %19 = vector.shape_cast %18 : vector<2x8x32xf32> to vector<16x32xf32>
    %c0_25 = arith.constant 0 : index
    %c0_26 = arith.constant 0 : index
    %c0_27 = arith.constant 0 : index
    %20 = vector.load %arg6[%c0_25, %c0_26, %c0_27] : memref<2x32x32xf32, #tpu.memory_space<vmem>>, vector<1x32x32xf32>
    %21 = vector.shape_cast %20 : vector<1x32x32xf32> to vector<32x32xf32>
    %cst_28 = arith.constant dense<0.000000e+00> : vector<16x32xf32>
    %22 = tpu.matmul %19, %21, %cst_28 {dimension_numbers = #tpu.dot_dimension_numbers<[1], [0], [0], [1], [0, 0, 1, 1], [], []>} : vector<16x32xf32>, vector<32x32xf32>, vector<16x32xf32> -> vector<16x32xf32>
    %cst_29 = arith.constant 0.707106769 : f32
    %23 = vector.broadcast %cst_29 : f32 to vector<16x32xf32>
    %24 = arith.mulf %22, %23 : vector<16x32xf32>
    %25 = vector.shape_cast %24 : vector<16x32xf32> to vector<2x8x32xf32>
    %c0_30 = arith.constant 0 : index
    %c0_31 = arith.constant 0 : index
    %c0_32 = arith.constant 0 : index
    %26 = vector.load %arg7[%c0_30, %c0_31, %c0_32] : memref<2x32x32xf32, #tpu.memory_space<vmem>>, vector<1x32x32xf32>
    %27 = vector.shape_cast %26 : vector<1x32x32xf32> to vector<32x32xf32>
    %cst_33 = arith.constant dense<0.000000e+00> : vector<16x32xf32>
    %28 = tpu.matmul %19, %27, %cst_33 {dimension_numbers = #tpu.dot_dimension_numbers<[1], [0], [0], [1], [0, 0, 1, 1], [], []>} : vector<16x32xf32>, vector<32x32xf32>, vector<16x32xf32> -> vector<16x32xf32>
    %cst_34 = arith.constant 0.707106769 : f32
    %29 = vector.broadcast %cst_34 : f32 to vector<16x32xf32>
    %30 = arith.mulf %28, %29 : vector<16x32xf32>
    %31 = vector.shape_cast %30 : vector<16x32xf32> to vector<2x8x32xf32>
    %c0_35 = arith.constant 0 : index
    %c0_36 = arith.constant 0 : index
    %c0_37 = arith.constant 0 : index
    %32 = vector.load %arg8[%c0_35, %c0_36, %c0_37] : memref<2x32x32xf32, #tpu.memory_space<vmem>>, vector<1x32x32xf32>
    %33 = vector.shape_cast %32 : vector<1x32x32xf32> to vector<32x32xf32>
    %cst_38 = arith.constant dense<0.000000e+00> : vector<16x32xf32>
    %34 = tpu.matmul %19, %33, %cst_38 {dimension_numbers = #tpu.dot_dimension_numbers<[1], [0], [0], [1], [0, 0, 1, 1], [], []>} : vector<16x32xf32>, vector<32x32xf32>, vector<16x32xf32> -> vector<16x32xf32>
    %35 = vector.shape_cast %34 : vector<16x32xf32> to vector<2x8x32xf32>
    %36 = vector.extract_strided_slice %25 {offsets = [0, 0, 0], sizes = [2, 8, 4], strides = [1, 1, 1]} : vector<2x8x32xf32> to vector<2x8x4xf32>
    %37 = vector.extract_strided_slice %31 {offsets = [0, 0, 0], sizes = [2, 8, 4], strides = [1, 1, 1]} : vector<2x8x32xf32> to vector<2x8x4xf32>
    "tpu.trace_start"() <{level = 10 : i32, message = "bqe,bke->bqk"}> : () -> ()
    %cst_39 = arith.constant dense<0.000000e+00> : vector<2x8x8xf32>
    %38 = tpu.matmul %36, %37, %cst_39 {dimension_numbers = #tpu.dot_dimension_numbers<[2], [2], [1], [1], [0, 0, 0, 1, 1, 1], [0], [0]>} : vector<2x8x4xf32>, vector<2x8x4xf32>, vector<2x8x8xf32> -> vector<2x8x8xf32>
    "tpu.trace_stop"() : () -> ()
    %39 = arith.addf %38, %17 : vector<2x8x8xf32>
    %cst_40 = arith.constant dense<0xFF800000> : vector<2x8xf32>
    %40 = vector.multi_reduction <maximumf>, %39, %cst_40 [2] : vector<2x8x8xf32> to vector<2x8xf32>
    %41 = vector.shape_cast %40 : vector<2x8xf32> to vector<2x8x1xf32>
    %42 = vector.broadcast %41 : vector<2x8x1xf32> to vector<2x8x8xf32>
    %43 = arith.subf %39, %42 : vector<2x8x8xf32>
    %44 = math.exp %43 : vector<2x8x8xf32>
    %cst_41 = arith.constant dense<0.000000e+00> : vector<2x8xf32>
    %45 = vector.multi_reduction <add>, %44, %cst_41 [2] : vector<2x8x8xf32> to vector<2x8xf32>
    %46 = vector.shape_cast %45 : vector<2x8xf32> to vector<2x8x1xf32>
    %47 = vector.broadcast %46 : vector<2x8x1xf32> to vector<2x8x8xf32>
    %48 = arith.divf %44, %47 : vector<2x8x8xf32>
    %49 = vector.extract_strided_slice %35 {offsets = [0, 0, 0], sizes = [2, 8, 4], strides = [1, 1, 1]} : vector<2x8x32xf32> to vector<2x8x4xf32>
    "tpu.trace_start"() <{level = 10 : i32, message = "bqk,bke->bqe"}> : () -> ()
    %cst_42 = arith.constant dense<0.000000e+00> : vector<2x8x4xf32>
    %50 = tpu.matmul %48, %49, %cst_42 {dimension_numbers = #tpu.dot_dimension_numbers<[2], [1], [1], [2], [0, 0, 0, 1, 1, 2], [0], [0]>} : vector<2x8x8xf32>, vector<2x8x4xf32>, vector<2x8x4xf32> -> vector<2x8x4xf32>
    "tpu.trace_stop"() : () -> ()
    %c0_43 = arith.constant 0 : index
    %c0_44 = arith.constant 0 : index
    %c0_45 = arith.constant 0 : index
    %51 = vector.load %arg23[%c0_43, %c0_44, %c0_45] : memref<2x8x32xf32, #tpu.memory_space<vmem>>, vector<2x8x4xf32>
    tpu.vector_store %arg23[%c0_43, %c0_44, %c0_45], %50 {strides = array<i32>} : memref<2x8x32xf32, #tpu.memory_space<vmem>>, vector<2x8x4xf32>,
    %52 = vector.extract_strided_slice %25 {offsets = [0, 0, 4], sizes = [2, 8, 4], strides = [1, 1, 1]} : vector<2x8x32xf32> to vector<2x8x4xf32>
    %53 = vector.extract_strided_slice %31 {offsets = [0, 0, 4], sizes = [2, 8, 4], strides = [1, 1, 1]} : vector<2x8x32xf32> to vector<2x8x4xf32>
    "tpu.trace_start"() <{level = 10 : i32, message = "bqe,bke->bqk"}> : () -> ()
    %cst_46 = arith.constant dense<0.000000e+00> : vector<2x8x8xf32>
    %54 = tpu.matmul %52, %53, %cst_46 {dimension_numbers = #tpu.dot_dimension_numbers<[2], [2], [1], [1], [0, 0, 0, 1, 1, 1], [0], [0]>} : vector<2x8x4xf32>, vector<2x8x4xf32>, vector<2x8x8xf32> -> vector<2x8x8xf32>
    "tpu.trace_stop"() : () -> ()
    %55 = arith.addf %54, %17 : vector<2x8x8xf32>
    %cst_47 = arith.constant dense<0xFF800000> : vector<2x8xf32>
    %56 = vector.multi_reduction <maximumf>, %55, %cst_47 [2] : vector<2x8x8xf32> to vector<2x8xf32>
    %57 = vector.shape_cast %56 : vector<2x8xf32> to vector<2x8x1xf32>
    %58 = vector.broadcast %57 : vector<2x8x1xf32> to vector<2x8x8xf32>
    %59 = arith.subf %55, %58 : vector<2x8x8xf32>
    %60 = math.exp %59 : vector<2x8x8xf32>
    %cst_48 = arith.constant dense<0.000000e+00> : vector<2x8xf32>
    %61 = vector.multi_reduction <add>, %60, %cst_48 [2] : vector<2x8x8xf32> to vector<2x8xf32>
    %62 = vector.shape_cast %61 : vector<2x8xf32> to vector<2x8x1xf32>
    %63 = vector.broadcast %62 : vector<2x8x1xf32> to vector<2x8x8xf32>
    %64 = arith.divf %60, %63 : vector<2x8x8xf32>
    %65 = vector.extract_strided_slice %35 {offsets = [0, 0, 4], sizes = [2, 8, 4], strides = [1, 1, 1]} : vector<2x8x32xf32> to vector<2x8x4xf32>
    "tpu.trace_start"() <{level = 10 : i32, message = "bqk,bke->bqe"}> : () -> ()
    %cst_49 = arith.constant dense<0.000000e+00> : vector<2x8x4xf32>
    %66 = tpu.matmul %64, %65, %cst_49 {dimension_numbers = #tpu.dot_dimension_numbers<[2], [1], [1], [2], [0, 0, 0, 1, 1, 2], [0], [0]>} : vector<2x8x8xf32>, vector<2x8x4xf32>, vector<2x8x4xf32> -> vector<2x8x4xf32>
    "tpu.trace_stop"() : () -> ()
    %c0_50 = arith.constant 0 : index
    %c0_51 = arith.constant 0 : index
    %c4 = arith.constant 4 : index
    %67 = vector.load %arg23[%c0_50, %c0_51, %c4] : memref<2x8x32xf32, #tpu.memory_space<vmem>>, vector<2x8x4xf32>
    tpu.vector_store %arg23[%c0_50, %c0_51, %c4], %66 {strides = array<i32>} : memref<2x8x32xf32, #tpu.memory_space<vmem>>, vector<2x8x4xf32>,
    %68 = vector.extract_strided_slice %25 {offsets = [0, 0, 8], sizes = [2, 8, 4], strides = [1, 1, 1]} : vector<2x8x32xf32> to vector<2x8x4xf32>
    %69 = vector.extract_strided_slice %31 {offsets = [0, 0, 8], sizes = [2, 8, 4], strides = [1, 1, 1]} : vector<2x8x32xf32> to vector<2x8x4xf32>
    "tpu.trace_start"() <{level = 10 : i32, message = "bqe,bke->bqk"}> : () -> ()
    %cst_52 = arith.constant dense<0.000000e+00> : vector<2x8x8xf32>
    %70 = tpu.matmul %68, %69, %cst_52 {dimension_numbers = #tpu.dot_dimension_numbers<[2], [2], [1], [1], [0, 0, 0, 1, 1, 1], [0], [0]>} : vector<2x8x4xf32>, vector<2x8x4xf32>, vector<2x8x8xf32> -> vector<2x8x8xf32>
    "tpu.trace_stop"() : () -> ()
    %71 = arith.addf %70, %17 : vector<2x8x8xf32>
    %cst_53 = arith.constant dense<0xFF800000> : vector<2x8xf32>
    %72 = vector.multi_reduction <maximumf>, %71, %cst_53 [2] : vector<2x8x8xf32> to vector<2x8xf32>
    %73 = vector.shape_cast %72 : vector<2x8xf32> to vector<2x8x1xf32>
    %74 = vector.broadcast %73 : vector<2x8x1xf32> to vector<2x8x8xf32>
    %75 = arith.subf %71, %74 : vector<2x8x8xf32>
    %76 = math.exp %75 : vector<2x8x8xf32>
    %cst_54 = arith.constant dense<0.000000e+00> : vector<2x8xf32>
    %77 = vector.multi_reduction <add>, %76, %cst_54 [2] : vector<2x8x8xf32> to vector<2x8xf32>
    %78 = vector.shape_cast %77 : vector<2x8xf32> to vector<2x8x1xf32>
    %79 = vector.broadcast %78 : vector<2x8x1xf32> to vector<2x8x8xf32>
    %80 = arith.divf %76, %79 : vector<2x8x8xf32>
    %81 = vector.extract_strided_slice %35 {offsets = [0, 0, 8], sizes = [2, 8, 4], strides = [1, 1, 1]} : vector<2x8x32xf32> to vector<2x8x4xf32>
    "tpu.trace_start"() <{level = 10 : i32, message = "bqk,bke->bqe"}> : () -> ()
    %cst_55 = arith.constant dense<0.000000e+00> : vector<2x8x4xf32>
    %82 = tpu.matmul %80, %81, %cst_55 {dimension_numbers = #tpu.dot_dimension_numbers<[2], [1], [1], [2], [0, 0, 0, 1, 1, 2], [0], [0]>} : vector<2x8x8xf32>, vector<2x8x4xf32>, vector<2x8x4xf32> -> vector<2x8x4xf32>
    "tpu.trace_stop"() : () -> ()
    %c0_56 = arith.constant 0 : index
    %c0_57 = arith.constant 0 : index
    %c8 = arith.constant 8 : index
    %83 = vector.load %arg23[%c0_56, %c0_57, %c8] : memref<2x8x32xf32, #tpu.memory_space<vmem>>, vector<2x8x4xf32>
    tpu.vector_store %arg23[%c0_56, %c0_57, %c8], %82 {strides = array<i32>} : memref<2x8x32xf32, #tpu.memory_space<vmem>>, vector<2x8x4xf32>,
    %84 = vector.extract_strided_slice %25 {offsets = [0, 0, 12], sizes = [2, 8, 4], strides = [1, 1, 1]} : vector<2x8x32xf32> to vector<2x8x4xf32>
    %85 = vector.extract_strided_slice %31 {offsets = [0, 0, 12], sizes = [2, 8, 4], strides = [1, 1, 1]} : vector<2x8x32xf32> to vector<2x8x4xf32>
    "tpu.trace_start"() <{level = 10 : i32, message = "bqe,bke->bqk"}> : () -> ()
    %cst_58 = arith.constant dense<0.000000e+00> : vector<2x8x8xf32>
    %86 = tpu.matmul %84, %85, %cst_58 {dimension_numbers = #tpu.dot_dimension_numbers<[2], [2], [1], [1], [0, 0, 0, 1, 1, 1], [0], [0]>} : vector<2x8x4xf32>, vector<2x8x4xf32>, vector<2x8x8xf32> -> vector<2x8x8xf32>
    "tpu.trace_stop"() : () -> ()
    %87 = arith.addf %86, %17 : vector<2x8x8xf32>
    %cst_59 = arith.constant dense<0xFF800000> : vector<2x8xf32>
    %88 = vector.multi_reduction <maximumf>, %87, %cst_59 [2] : vector<2x8x8xf32> to vector<2x8xf32>
    %89 = vector.shape_cast %88 : vector<2x8xf32> to vector<2x8x1xf32>
    %90 = vector.broadcast %89 : vector<2x8x1xf32> to vector<2x8x8xf32>
    %91 = arith.subf %87, %90 : vector<2x8x8xf32>
    %92 = math.exp %91 : vector<2x8x8xf32>
    %cst_60 = arith.constant dense<0.000000e+00> : vector<2x8xf32>
    %93 = vector.multi_reduction <add>, %92, %cst_60 [2] : vector<2x8x8xf32> to vector<2x8xf32>
    %94 = vector.shape_cast %93 : vector<2x8xf32> to vector<2x8x1xf32>
    %95 = vector.broadcast %94 : vector<2x8x1xf32> to vector<2x8x8xf32>
    %96 = arith.divf %92, %95 : vector<2x8x8xf32>
    %97 = vector.extract_strided_slice %35 {offsets = [0, 0, 12], sizes = [2, 8, 4], strides = [1, 1, 1]} : vector<2x8x32xf32> to vector<2x8x4xf32>
    "tpu.trace_start"() <{level = 10 : i32, message = "bqk,bke->bqe"}> : () -> ()
    %cst_61 = arith.constant dense<0.000000e+00> : vector<2x8x4xf32>
    %98 = tpu.matmul %96, %97, %cst_61 {dimension_numbers = #tpu.dot_dimension_numbers<[2], [1], [1], [2], [0, 0, 0, 1, 1, 2], [0], [0]>} : vector<2x8x8xf32>, vector<2x8x4xf32>, vector<2x8x4xf32> -> vector<2x8x4xf32>
    "tpu.trace_stop"() : () -> ()
    %c0_62 = arith.constant 0 : index
    %c0_63 = arith.constant 0 : index
    %c12 = arith.constant 12 : index
    %99 = vector.load %arg23[%c0_62, %c0_63, %c12] : memref<2x8x32xf32, #tpu.memory_space<vmem>>, vector<2x8x4xf32>
    tpu.vector_store %arg23[%c0_62, %c0_63, %c12], %98 {strides = array<i32>} : memref<2x8x32xf32, #tpu.memory_space<vmem>>, vector<2x8x4xf32>,
    %100 = vector.extract_strided_slice %25 {offsets = [0, 0, 16], sizes = [2, 8, 4], strides = [1, 1, 1]} : vector<2x8x32xf32> to vector<2x8x4xf32>
    %101 = vector.extract_strided_slice %31 {offsets = [0, 0, 16], sizes = [2, 8, 4], strides = [1, 1, 1]} : vector<2x8x32xf32> to vector<2x8x4xf32>
    "tpu.trace_start"() <{level = 10 : i32, message = "bqe,bke->bqk"}> : () -> ()
    %cst_64 = arith.constant dense<0.000000e+00> : vector<2x8x8xf32>
    %102 = tpu.matmul %100, %101, %cst_64 {dimension_numbers = #tpu.dot_dimension_numbers<[2], [2], [1], [1], [0, 0, 0, 1, 1, 1], [0], [0]>} : vector<2x8x4xf32>, vector<2x8x4xf32>, vector<2x8x8xf32> -> vector<2x8x8xf32>
    "tpu.trace_stop"() : () -> ()
    %103 = arith.addf %102, %17 : vector<2x8x8xf32>
    %cst_65 = arith.constant dense<0xFF800000> : vector<2x8xf32>
    %104 = vector.multi_reduction <maximumf>, %103, %cst_65 [2] : vector<2x8x8xf32> to vector<2x8xf32>
    %105 = vector.shape_cast %104 : vector<2x8xf32> to vector<2x8x1xf32>
    %106 = vector.broadcast %105 : vector<2x8x1xf32> to vector<2x8x8xf32>
    %107 = arith.subf %103, %106 : vector<2x8x8xf32>
    %108 = math.exp %107 : vector<2x8x8xf32>
    %cst_66 = arith.constant dense<0.000000e+00> : vector<2x8xf32>
    %109 = vector.multi_reduction <add>, %108, %cst_66 [2] : vector<2x8x8xf32> to vector<2x8xf32>
    %110 = vector.shape_cast %109 : vector<2x8xf32> to vector<2x8x1xf32>
    %111 = vector.broadcast %110 : vector<2x8x1xf32> to vector<2x8x8xf32>
    %112 = arith.divf %108, %111 : vector<2x8x8xf32>
    %113 = vector.extract_strided_slice %35 {offsets = [0, 0, 16], sizes = [2, 8, 4], strides = [1, 1, 1]} : vector<2x8x32xf32> to vector<2x8x4xf32>
    "tpu.trace_start"() <{level = 10 : i32, message = "bqk,bke->bqe"}> : () -> ()
    %cst_67 = arith.constant dense<0.000000e+00> : vector<2x8x4xf32>
    %114 = tpu.matmul %112, %113, %cst_67 {dimension_numbers = #tpu.dot_dimension_numbers<[2], [1], [1], [2], [0, 0, 0, 1, 1, 2], [0], [0]>} : vector<2x8x8xf32>, vector<2x8x4xf32>, vector<2x8x4xf32> -> vector<2x8x4xf32>
    "tpu.trace_stop"() : () -> ()
    %c0_68 = arith.constant 0 : index
    %c0_69 = arith.constant 0 : index
    %c16 = arith.constant 16 : index
    %115 = vector.load %arg23[%c0_68, %c0_69, %c16] : memref<2x8x32xf32, #tpu.memory_space<vmem>>, vector<2x8x4xf32>
    tpu.vector_store %arg23[%c0_68, %c0_69, %c16], %114 {strides = array<i32>} : memref<2x8x32xf32, #tpu.memory_space<vmem>>, vector<2x8x4xf32>,
    %116 = vector.extract_strided_slice %25 {offsets = [0, 0, 20], sizes = [2, 8, 4], strides = [1, 1, 1]} : vector<2x8x32xf32> to vector<2x8x4xf32>
    %117 = vector.extract_strided_slice %31 {offsets = [0, 0, 20], sizes = [2, 8, 4], strides = [1, 1, 1]} : vector<2x8x32xf32> to vector<2x8x4xf32>
    "tpu.trace_start"() <{level = 10 : i32, message = "bqe,bke->bqk"}> : () -> ()
    %cst_70 = arith.constant dense<0.000000e+00> : vector<2x8x8xf32>
    %118 = tpu.matmul %116, %117, %cst_70 {dimension_numbers = #tpu.dot_dimension_numbers<[2], [2], [1], [1], [0, 0, 0, 1, 1, 1], [0], [0]>} : vector<2x8x4xf32>, vector<2x8x4xf32>, vector<2x8x8xf32> -> vector<2x8x8xf32>
    "tpu.trace_stop"() : () -> ()
    %119 = arith.addf %118, %17 : vector<2x8x8xf32>
    %cst_71 = arith.constant dense<0xFF800000> : vector<2x8xf32>
    %120 = vector.multi_reduction <maximumf>, %119, %cst_71 [2] : vector<2x8x8xf32> to vector<2x8xf32>
    %121 = vector.shape_cast %120 : vector<2x8xf32> to vector<2x8x1xf32>
    %122 = vector.broadcast %121 : vector<2x8x1xf32> to vector<2x8x8xf32>
    %123 = arith.subf %119, %122 : vector<2x8x8xf32>
    %124 = math.exp %123 : vector<2x8x8xf32>
    %cst_72 = arith.constant dense<0.000000e+00> : vector<2x8xf32>
    %125 = vector.multi_reduction <add>, %124, %cst_72 [2] : vector<2x8x8xf32> to vector<2x8xf32>
    %126 = vector.shape_cast %125 : vector<2x8xf32> to vector<2x8x1xf32>
    %127 = vector.broadcast %126 : vector<2x8x1xf32> to vector<2x8x8xf32>
    %128 = arith.divf %124, %127 : vector<2x8x8xf32>
    %129 = vector.extract_strided_slice %35 {offsets = [0, 0, 20], sizes = [2, 8, 4], strides = [1, 1, 1]} : vector<2x8x32xf32> to vector<2x8x4xf32>
    "tpu.trace_start"() <{level = 10 : i32, message = "bqk,bke->bqe"}> : () -> ()
    %cst_73 = arith.constant dense<0.000000e+00> : vector<2x8x4xf32>
    %130 = tpu.matmul %128, %129, %cst_73 {dimension_numbers = #tpu.dot_dimension_numbers<[2], [1], [1], [2], [0, 0, 0, 1, 1, 2], [0], [0]>} : vector<2x8x8xf32>, vector<2x8x4xf32>, vector<2x8x4xf32> -> vector<2x8x4xf32>
    "tpu.trace_stop"() : () -> ()
    %c0_74 = arith.constant 0 : index
    %c0_75 = arith.constant 0 : index
    %c20 = arith.constant 20 : index
    %131 = vector.load %arg23[%c0_74, %c0_75, %c20] : memref<2x8x32xf32, #tpu.memory_space<vmem>>, vector<2x8x4xf32>
    tpu.vector_store %arg23[%c0_74, %c0_75, %c20], %130 {strides = array<i32>} : memref<2x8x32xf32, #tpu.memory_space<vmem>>, vector<2x8x4xf32>,
    %132 = vector.extract_strided_slice %25 {offsets = [0, 0, 24], sizes = [2, 8, 4], strides = [1, 1, 1]} : vector<2x8x32xf32> to vector<2x8x4xf32>
    %133 = vector.extract_strided_slice %31 {offsets = [0, 0, 24], sizes = [2, 8, 4], strides = [1, 1, 1]} : vector<2x8x32xf32> to vector<2x8x4xf32>
    "tpu.trace_start"() <{level = 10 : i32, message = "bqe,bke->bqk"}> : () -> ()
    %cst_76 = arith.constant dense<0.000000e+00> : vector<2x8x8xf32>
    %134 = tpu.matmul %132, %133, %cst_76 {dimension_numbers = #tpu.dot_dimension_numbers<[2], [2], [1], [1], [0, 0, 0, 1, 1, 1], [0], [0]>} : vector<2x8x4xf32>, vector<2x8x4xf32>, vector<2x8x8xf32> -> vector<2x8x8xf32>
    "tpu.trace_stop"() : () -> ()
    %135 = arith.addf %134, %17 : vector<2x8x8xf32>
    %cst_77 = arith.constant dense<0xFF800000> : vector<2x8xf32>
    %136 = vector.multi_reduction <maximumf>, %135, %cst_77 [2] : vector<2x8x8xf32> to vector<2x8xf32>
    %137 = vector.shape_cast %136 : vector<2x8xf32> to vector<2x8x1xf32>
    %138 = vector.broadcast %137 : vector<2x8x1xf32> to vector<2x8x8xf32>
    %139 = arith.subf %135, %138 : vector<2x8x8xf32>
    %140 = math.exp %139 : vector<2x8x8xf32>
    %cst_78 = arith.constant dense<0.000000e+00> : vector<2x8xf32>
    %141 = vector.multi_reduction <add>, %140, %cst_78 [2] : vector<2x8x8xf32> to vector<2x8xf32>
    %142 = vector.shape_cast %141 : vector<2x8xf32> to vector<2x8x1xf32>
    %143 = vector.broadcast %142 : vector<2x8x1xf32> to vector<2x8x8xf32>
    %144 = arith.divf %140, %143 : vector<2x8x8xf32>
    %145 = vector.extract_strided_slice %35 {offsets = [0, 0, 24], sizes = [2, 8, 4], strides = [1, 1, 1]} : vector<2x8x32xf32> to vector<2x8x4xf32>
    "tpu.trace_start"() <{level = 10 : i32, message = "bqk,bke->bqe"}> : () -> ()
    %cst_79 = arith.constant dense<0.000000e+00> : vector<2x8x4xf32>
    %146 = tpu.matmul %144, %145, %cst_79 {dimension_numbers = #tpu.dot_dimension_numbers<[2], [1], [1], [2], [0, 0, 0, 1, 1, 2], [0], [0]>} : vector<2x8x8xf32>, vector<2x8x4xf32>, vector<2x8x4xf32> -> vector<2x8x4xf32>
    "tpu.trace_stop"() : () -> ()
    %c0_80 = arith.constant 0 : index
    %c0_81 = arith.constant 0 : index
    %c24 = arith.constant 24 : index
    %147 = vector.load %arg23[%c0_80, %c0_81, %c24] : memref<2x8x32xf32, #tpu.memory_space<vmem>>, vector<2x8x4xf32>
    tpu.vector_store %arg23[%c0_80, %c0_81, %c24], %146 {strides = array<i32>} : memref<2x8x32xf32, #tpu.memory_space<vmem>>, vector<2x8x4xf32>,
    %148 = vector.extract_strided_slice %25 {offsets = [0, 0, 28], sizes = [2, 8, 4], strides = [1, 1, 1]} : vector<2x8x32xf32> to vector<2x8x4xf32>
    %149 = vector.extract_strided_slice %31 {offsets = [0, 0, 28], sizes = [2, 8, 4], strides = [1, 1, 1]} : vector<2x8x32xf32> to vector<2x8x4xf32>
    "tpu.trace_start"() <{level = 10 : i32, message = "bqe,bke->bqk"}> : () -> ()
    %cst_82 = arith.constant dense<0.000000e+00> : vector<2x8x8xf32>
    %150 = tpu.matmul %148, %149, %cst_82 {dimension_numbers = #tpu.dot_dimension_numbers<[2], [2], [1], [1], [0, 0, 0, 1, 1, 1], [0], [0]>} : vector<2x8x4xf32>, vector<2x8x4xf32>, vector<2x8x8xf32> -> vector<2x8x8xf32>
    "tpu.trace_stop"() : () -> ()
    %151 = arith.addf %150, %17 : vector<2x8x8xf32>
    %cst_83 = arith.constant dense<0xFF800000> : vector<2x8xf32>
    %152 = vector.multi_reduction <maximumf>, %151, %cst_83 [2] : vector<2x8x8xf32> to vector<2x8xf32>
    %153 = vector.shape_cast %152 : vector<2x8xf32> to vector<2x8x1xf32>
    %154 = vector.broadcast %153 : vector<2x8x1xf32> to vector<2x8x8xf32>
    %155 = arith.subf %151, %154 : vector<2x8x8xf32>
    %156 = math.exp %155 : vector<2x8x8xf32>
    %cst_84 = arith.constant dense<0.000000e+00> : vector<2x8xf32>
    %157 = vector.multi_reduction <add>, %156, %cst_84 [2] : vector<2x8x8xf32> to vector<2x8xf32>
    %158 = vector.shape_cast %157 : vector<2x8xf32> to vector<2x8x1xf32>
    %159 = vector.broadcast %158 : vector<2x8x1xf32> to vector<2x8x8xf32>
    %160 = arith.divf %156, %159 : vector<2x8x8xf32>
    %161 = vector.extract_strided_slice %35 {offsets = [0, 0, 28], sizes = [2, 8, 4], strides = [1, 1, 1]} : vector<2x8x32xf32> to vector<2x8x4xf32>
    "tpu.trace_start"() <{level = 10 : i32, message = "bqk,bke->bqe"}> : () -> ()
    %cst_85 = arith.constant dense<0.000000e+00> : vector<2x8x4xf32>
    %162 = tpu.matmul %160, %161, %cst_85 {dimension_numbers = #tpu.dot_dimension_numbers<[2], [1], [1], [2], [0, 0, 0, 1, 1, 2], [0], [0]>} : vector<2x8x8xf32>, vector<2x8x4xf32>, vector<2x8x4xf32> -> vector<2x8x4xf32>
    "tpu.trace_stop"() : () -> ()
    %c0_86 = arith.constant 0 : index
    %c0_87 = arith.constant 0 : index
    %c28 = arith.constant 28 : index
    %163 = vector.load %arg23[%c0_86, %c0_87, %c28] : memref<2x8x32xf32, #tpu.memory_space<vmem>>, vector<2x8x4xf32>
    tpu.vector_store %arg23[%c0_86, %c0_87, %c28], %162 {strides = array<i32>} : memref<2x8x32xf32, #tpu.memory_space<vmem>>, vector<2x8x4xf32>,
    %c0_88 = arith.constant 0 : index
    %c0_89 = arith.constant 0 : index
    %c0_90 = arith.constant 0 : index
    %164 = vector.load %arg23[%c0_88, %c0_89, %c0_90] : memref<2x8x32xf32, #tpu.memory_space<vmem>>, vector<2x8x32xf32>
    %165 = vector.shape_cast %164 : vector<2x8x32xf32> to vector<16x32xf32>
    %c0_91 = arith.constant 0 : index
    %c0_92 = arith.constant 0 : index
    %c0_93 = arith.constant 0 : index
    %166 = vector.load %arg9[%c0_91, %c0_92, %c0_93] : memref<2x32x32xf32, #tpu.memory_space<vmem>>, vector<1x32x32xf32>
    %167 = vector.shape_cast %166 : vector<1x32x32xf32> to vector<32x32xf32>
    %cst_94 = arith.constant dense<0.000000e+00> : vector<16x32xf32>
    %168 = tpu.matmul %165, %167, %cst_94 {dimension_numbers = #tpu.dot_dimension_numbers<[1], [0], [0], [1], [0, 0, 1, 1], [], []>} : vector<16x32xf32>, vector<32x32xf32>, vector<16x32xf32> -> vector<16x32xf32>
    %c0_95 = arith.constant 0 : index
    %c0_96 = arith.constant 0 : index
    %c0_97 = arith.constant 0 : index
    %169 = vector.load %arg10[%c0_95, %c0_96, %c0_97] : memref<2x1x32xf32, #tpu.memory_space<vmem>>, vector<1x1x32xf32>
    %170 = vector.shape_cast %169 : vector<1x1x32xf32> to vector<1x32xf32>
    %171 = vector.broadcast %170 : vector<1x32xf32> to vector<16x32xf32>
    %172 = arith.addf %168, %171 : vector<16x32xf32>
    %173 = arith.addf %172, %19 : vector<16x32xf32>
    %c0_98 = arith.constant 0 : index
    %c0_99 = arith.constant 0 : index
    %c0_100 = arith.constant 0 : index
    %174 = vector.load %arg11[%c0_98, %c0_99, %c0_100] : memref<2x1x32xf32, #tpu.memory_space<vmem>>, vector<1x1x32xf32>
    %175 = vector.shape_cast %174 : vector<1x1x32xf32> to vector<1x32xf32>
    %c0_101 = arith.constant 0 : index
    %c0_102 = arith.constant 0 : index
    %c0_103 = arith.constant 0 : index
    %176 = vector.load %arg12[%c0_101, %c0_102, %c0_103] : memref<2x1x32xf32, #tpu.memory_space<vmem>>, vector<1x1x32xf32>
    %177 = vector.shape_cast %176 : vector<1x1x32xf32> to vector<1x32xf32>
    %cst_104 = arith.constant dense<0.000000e+00> : vector<16xf32>
    %178 = vector.multi_reduction <add>, %173, %cst_104 [1] : vector<16x32xf32> to vector<16xf32>
    %179 = vector.shape_cast %178 : vector<16xf32> to vector<16x1xf32>
    %cst_105 = arith.constant 3.200000e+01 : f32
    %180 = vector.broadcast %cst_105 : f32 to vector<16x1xf32>
    %181 = arith.divf %179, %180 : vector<16x1xf32>
    %182 = vector.broadcast %181 : vector<16x1xf32> to vector<16x32xf32>
    %183 = arith.subf %173, %182 : vector<16x32xf32>
    %184 = arith.mulf %183, %183 : vector<16x32xf32>
    %cst_106 = arith.constant dense<0.000000e+00> : vector<16xf32>
    %185 = vector.multi_reduction <add>, %184, %cst_106 [1] : vector<16x32xf32> to vector<16xf32>
    %186 = vector.shape_cast %185 : vector<16xf32> to vector<16x1xf32>
    %cst_107 = arith.constant 3.200000e+01 : f32
    %187 = vector.broadcast %cst_107 : f32 to vector<16x1xf32>
    %188 = arith.divf %186, %187 : vector<16x1xf32>
    %189 = vector.broadcast %181 : vector<16x1xf32> to vector<16x32xf32>
    %190 = arith.subf %173, %189 : vector<16x32xf32>
    %cst_108 = arith.constant 9.99999974E-6 : f32
    %191 = vector.broadcast %cst_108 : f32 to vector<16x1xf32>
    %192 = arith.addf %188, %191 : vector<16x1xf32>
    %193 = math.rsqrt %192 : vector<16x1xf32>
    %194 = vector.broadcast %193 : vector<16x1xf32> to vector<16x32xf32>
    %195 = arith.mulf %190, %194 : vector<16x32xf32>
    %196 = vector.broadcast %175 : vector<1x32xf32> to vector<16x32xf32>
    %197 = arith.mulf %195, %196 : vector<16x32xf32>
    %198 = vector.broadcast %177 : vector<1x32xf32> to vector<16x32xf32>
    %199 = arith.addf %197, %198 : vector<16x32xf32>
    %c0_109 = arith.constant 0 : index
    %c0_110 = arith.constant 0 : index
    %c0_111 = arith.constant 0 : index
    %200 = vector.load %arg13[%c0_109, %c0_110, %c0_111] : memref<2x32x128xf32, #tpu.memory_space<vmem>>, vector<1x32x128xf32>
    %201 = vector.shape_cast %200 : vector<1x32x128xf32> to vector<32x128xf32>
    %cst_112 = arith.constant dense<0.000000e+00> : vector<16x128xf32>
    %202 = tpu.matmul %199, %201, %cst_112 {dimension_numbers = #tpu.dot_dimension_numbers<[1], [0], [0], [1], [0, 0, 1, 1], [], []>} : vector<16x32xf32>, vector<32x128xf32>, vector<16x128xf32> -> vector<16x128xf32>
    %c0_113 = arith.constant 0 : index
    %c0_114 = arith.constant 0 : index
    %c0_115 = arith.constant 0 : index
    %203 = vector.load %arg14[%c0_113, %c0_114, %c0_115] : memref<2x1x128xf32, #tpu.memory_space<vmem>>, vector<1x1x128xf32>
    %204 = vector.shape_cast %203 : vector<1x1x128xf32> to vector<1x128xf32>
    %205 = vector.broadcast %204 : vector<1x128xf32> to vector<16x128xf32>
    %206 = arith.addf %202, %205 : vector<16x128xf32>
    %cst_116 = arith.constant 0.000000e+00 : f32
    %207 = vector.broadcast %cst_116 : f32 to vector<16x128xf32>
    %208 = arith.maximumf %206, %207 : vector<16x128xf32>
    %c0_117 = arith.constant 0 : index
    %c0_118 = arith.constant 0 : index
    %c0_119 = arith.constant 0 : index
    %209 = vector.load %arg15[%c0_117, %c0_118, %c0_119] : memref<2x128x32xf32, #tpu.memory_space<vmem>>, vector<1x128x32xf32>
    %210 = vector.shape_cast %209 : vector<1x128x32xf32> to vector<128x32xf32>
    %cst_120 = arith.constant dense<0.000000e+00> : vector<16x32xf32>
    %211 = tpu.matmul %208, %210, %cst_120 {dimension_numbers = #tpu.dot_dimension_numbers<[1], [0], [0], [1], [0, 0, 1, 1], [], []>} : vector<16x128xf32>, vector<128x32xf32>, vector<16x32xf32> -> vector<16x32xf32>
    %c0_121 = arith.constant 0 : index
    %c0_122 = arith.constant 0 : index
    %c0_123 = arith.constant 0 : index
    %212 = vector.load %arg16[%c0_121, %c0_122, %c0_123] : memref<2x1x32xf32, #tpu.memory_space<vmem>>, vector<1x1x32xf32>
    %213 = vector.shape_cast %212 : vector<1x1x32xf32> to vector<1x32xf32>
    %214 = vector.broadcast %213 : vector<1x32xf32> to vector<16x32xf32>
    %215 = arith.addf %211, %214 : vector<16x32xf32>
    %216 = arith.addf %215, %199 : vector<16x32xf32>
    %c0_124 = arith.constant 0 : index
    %c0_125 = arith.constant 0 : index
    %c0_126 = arith.constant 0 : index
    %217 = vector.load %arg17[%c0_124, %c0_125, %c0_126] : memref<2x1x32xf32, #tpu.memory_space<vmem>>, vector<1x1x32xf32>
    %218 = vector.shape_cast %217 : vector<1x1x32xf32> to vector<1x32xf32>
    %c0_127 = arith.constant 0 : index
    %c0_128 = arith.constant 0 : index
    %c0_129 = arith.constant 0 : index
    %219 = vector.load %arg18[%c0_127, %c0_128, %c0_129] : memref<2x1x32xf32, #tpu.memory_space<vmem>>, vector<1x1x32xf32>
    %220 = vector.shape_cast %219 : vector<1x1x32xf32> to vector<1x32xf32>
    %cst_130 = arith.constant dense<0.000000e+00> : vector<16xf32>
    %221 = vector.multi_reduction <add>, %216, %cst_130 [1] : vector<16x32xf32> to vector<16xf32>
    %222 = vector.shape_cast %221 : vector<16xf32> to vector<16x1xf32>
    %cst_131 = arith.constant 3.200000e+01 : f32
    %223 = vector.broadcast %cst_131 : f32 to vector<16x1xf32>
    %224 = arith.divf %222, %223 : vector<16x1xf32>
    %225 = vector.broadcast %224 : vector<16x1xf32> to vector<16x32xf32>
    %226 = arith.subf %216, %225 : vector<16x32xf32>
    %227 = arith.mulf %226, %226 : vector<16x32xf32>
    %cst_132 = arith.constant dense<0.000000e+00> : vector<16xf32>
    %228 = vector.multi_reduction <add>, %227, %cst_132 [1] : vector<16x32xf32> to vector<16xf32>
    %229 = vector.shape_cast %228 : vector<16xf32> to vector<16x1xf32>
    %cst_133 = arith.constant 3.200000e+01 : f32
    %230 = vector.broadcast %cst_133 : f32 to vector<16x1xf32>
    %231 = arith.divf %229, %230 : vector<16x1xf32>
    %232 = vector.broadcast %224 : vector<16x1xf32> to vector<16x32xf32>
    %233 = arith.subf %216, %232 : vector<16x32xf32>
    %cst_134 = arith.constant 9.99999974E-6 : f32
    %234 = vector.broadcast %cst_134 : f32 to vector<16x1xf32>
    %235 = arith.addf %231, %234 : vector<16x1xf32>
    %236 = math.rsqrt %235 : vector<16x1xf32>
    %237 = vector.broadcast %236 : vector<16x1xf32> to vector<16x32xf32>
    %238 = arith.mulf %233, %237 : vector<16x32xf32>
    %239 = vector.broadcast %218 : vector<1x32xf32> to vector<16x32xf32>
    %240 = arith.mulf %238, %239 : vector<16x32xf32>
    %241 = vector.broadcast %220 : vector<1x32xf32> to vector<16x32xf32>
    %242 = arith.addf %240, %241 : vector<16x32xf32>
    %243 = vector.shape_cast %242 : vector<16x32xf32> to vector<2x8x32xf32>
    %244 = vector.shape_cast %243 : vector<2x8x32xf32> to vector<16x32xf32>
    %c1 = arith.constant 1 : index
    %c0_135 = arith.constant 0 : index
    %c0_136 = arith.constant 0 : index
    %245 = vector.load %arg6[%c1, %c0_135, %c0_136] : memref<2x32x32xf32, #tpu.memory_space<vmem>>, vector<1x32x32xf32>
    %246 = vector.shape_cast %245 : vector<1x32x32xf32> to vector<32x32xf32>
    %cst_137 = arith.constant dense<0.000000e+00> : vector<16x32xf32>
    %247 = tpu.matmul %244, %246, %cst_137 {dimension_numbers = #tpu.dot_dimension_numbers<[1], [0], [0], [1], [0, 0, 1, 1], [], []>} : vector<16x32xf32>, vector<32x32xf32>, vector<16x32xf32> -> vector<16x32xf32>
    %cst_138 = arith.constant 0.707106769 : f32
    %248 = vector.broadcast %cst_138 : f32 to vector<16x32xf32>
    %249 = arith.mulf %247, %248 : vector<16x32xf32>
    %250 = vector.shape_cast %249 : vector<16x32xf32> to vector<2x8x32xf32>
    %c1_139 = arith.constant 1 : index
    %c0_140 = arith.constant 0 : index
    %c0_141 = arith.constant 0 : index
    %251 = vector.load %arg7[%c1_139, %c0_140, %c0_141] : memref<2x32x32xf32, #tpu.memory_space<vmem>>, vector<1x32x32xf32>
    %252 = vector.shape_cast %251 : vector<1x32x32xf32> to vector<32x32xf32>
    %cst_142 = arith.constant dense<0.000000e+00> : vector<16x32xf32>
    %253 = tpu.matmul %244, %252, %cst_142 {dimension_numbers = #tpu.dot_dimension_numbers<[1], [0], [0], [1], [0, 0, 1, 1], [], []>} : vector<16x32xf32>, vector<32x32xf32>, vector<16x32xf32> -> vector<16x32xf32>
    %cst_143 = arith.constant 0.707106769 : f32
    %254 = vector.broadcast %cst_143 : f32 to vector<16x32xf32>
    %255 = arith.mulf %253, %254 : vector<16x32xf32>
    %256 = vector.shape_cast %255 : vector<16x32xf32> to vector<2x8x32xf32>
    %c1_144 = arith.constant 1 : index
    %c0_145 = arith.constant 0 : index
    %c0_146 = arith.constant 0 : index
    %257 = vector.load %arg8[%c1_144, %c0_145, %c0_146] : memref<2x32x32xf32, #tpu.memory_space<vmem>>, vector<1x32x32xf32>
    %258 = vector.shape_cast %257 : vector<1x32x32xf32> to vector<32x32xf32>
    %cst_147 = arith.constant dense<0.000000e+00> : vector<16x32xf32>
    %259 = tpu.matmul %244, %258, %cst_147 {dimension_numbers = #tpu.dot_dimension_numbers<[1], [0], [0], [1], [0, 0, 1, 1], [], []>} : vector<16x32xf32>, vector<32x32xf32>, vector<16x32xf32> -> vector<16x32xf32>
    %260 = vector.shape_cast %259 : vector<16x32xf32> to vector<2x8x32xf32>
    %261 = vector.extract_strided_slice %250 {offsets = [0, 0, 0], sizes = [2, 8, 4], strides = [1, 1, 1]} : vector<2x8x32xf32> to vector<2x8x4xf32>
    %262 = vector.extract_strided_slice %256 {offsets = [0, 0, 0], sizes = [2, 8, 4], strides = [1, 1, 1]} : vector<2x8x32xf32> to vector<2x8x4xf32>
    "tpu.trace_start"() <{level = 10 : i32, message = "bqe,bke->bqk"}> : () -> ()
    %cst_148 = arith.constant dense<0.000000e+00> : vector<2x8x8xf32>
    %263 = tpu.matmul %261, %262, %cst_148 {dimension_numbers = #tpu.dot_dimension_numbers<[2], [2], [1], [1], [0, 0, 0, 1, 1, 1], [0], [0]>} : vector<2x8x4xf32>, vector<2x8x4xf32>, vector<2x8x8xf32> -> vector<2x8x8xf32>
    "tpu.trace_stop"() : () -> ()
    %264 = arith.addf %263, %17 : vector<2x8x8xf32>
    %cst_149 = arith.constant dense<0xFF800000> : vector<2x8xf32>
    %265 = vector.multi_reduction <maximumf>, %264, %cst_149 [2] : vector<2x8x8xf32> to vector<2x8xf32>
    %266 = vector.shape_cast %265 : vector<2x8xf32> to vector<2x8x1xf32>
    %267 = vector.broadcast %266 : vector<2x8x1xf32> to vector<2x8x8xf32>
    %268 = arith.subf %264, %267 : vector<2x8x8xf32>
    %269 = math.exp %268 : vector<2x8x8xf32>
    %cst_150 = arith.constant dense<0.000000e+00> : vector<2x8xf32>
    %270 = vector.multi_reduction <add>, %269, %cst_150 [2] : vector<2x8x8xf32> to vector<2x8xf32>
    %271 = vector.shape_cast %270 : vector<2x8xf32> to vector<2x8x1xf32>
    %272 = vector.broadcast %271 : vector<2x8x1xf32> to vector<2x8x8xf32>
    %273 = arith.divf %269, %272 : vector<2x8x8xf32>
    %274 = vector.extract_strided_slice %260 {offsets = [0, 0, 0], sizes = [2, 8, 4], strides = [1, 1, 1]} : vector<2x8x32xf32> to vector<2x8x4xf32>
    "tpu.trace_start"() <{level = 10 : i32, message = "bqk,bke->bqe"}> : () -> ()
    %cst_151 = arith.constant dense<0.000000e+00> : vector<2x8x4xf32>
    %275 = tpu.matmul %273, %274, %cst_151 {dimension_numbers = #tpu.dot_dimension_numbers<[2], [1], [1], [2], [0, 0, 0, 1, 1, 2], [0], [0]>} : vector<2x8x8xf32>, vector<2x8x4xf32>, vector<2x8x4xf32> -> vector<2x8x4xf32>
    "tpu.trace_stop"() : () -> ()
    %c0_152 = arith.constant 0 : index
    %c0_153 = arith.constant 0 : index
    %c0_154 = arith.constant 0 : index
    %276 = vector.load %arg23[%c0_152, %c0_153, %c0_154] : memref<2x8x32xf32, #tpu.memory_space<vmem>>, vector<2x8x4xf32>
    tpu.vector_store %arg23[%c0_152, %c0_153, %c0_154], %275 {strides = array<i32>} : memref<2x8x32xf32, #tpu.memory_space<vmem>>, vector<2x8x4xf32>,
    %277 = vector.extract_strided_slice %250 {offsets = [0, 0, 4], sizes = [2, 8, 4], strides = [1, 1, 1]} : vector<2x8x32xf32> to vector<2x8x4xf32>
    %278 = vector.extract_strided_slice %256 {offsets = [0, 0, 4], sizes = [2, 8, 4], strides = [1, 1, 1]} : vector<2x8x32xf32> to vector<2x8x4xf32>
    "tpu.trace_start"() <{level = 10 : i32, message = "bqe,bke->bqk"}> : () -> ()
    %cst_155 = arith.constant dense<0.000000e+00> : vector<2x8x8xf32>
    %279 = tpu.matmul %277, %278, %cst_155 {dimension_numbers = #tpu.dot_dimension_numbers<[2], [2], [1], [1], [0, 0, 0, 1, 1, 1], [0], [0]>} : vector<2x8x4xf32>, vector<2x8x4xf32>, vector<2x8x8xf32> -> vector<2x8x8xf32>
    "tpu.trace_stop"() : () -> ()
    %280 = arith.addf %279, %17 : vector<2x8x8xf32>
    %cst_156 = arith.constant dense<0xFF800000> : vector<2x8xf32>
    %281 = vector.multi_reduction <maximumf>, %280, %cst_156 [2] : vector<2x8x8xf32> to vector<2x8xf32>
    %282 = vector.shape_cast %281 : vector<2x8xf32> to vector<2x8x1xf32>
    %283 = vector.broadcast %282 : vector<2x8x1xf32> to vector<2x8x8xf32>
    %284 = arith.subf %280, %283 : vector<2x8x8xf32>
    %285 = math.exp %284 : vector<2x8x8xf32>
    %cst_157 = arith.constant dense<0.000000e+00> : vector<2x8xf32>
    %286 = vector.multi_reduction <add>, %285, %cst_157 [2] : vector<2x8x8xf32> to vector<2x8xf32>
    %287 = vector.shape_cast %286 : vector<2x8xf32> to vector<2x8x1xf32>
    %288 = vector.broadcast %287 : vector<2x8x1xf32> to vector<2x8x8xf32>
    %289 = arith.divf %285, %288 : vector<2x8x8xf32>
    %290 = vector.extract_strided_slice %260 {offsets = [0, 0, 4], sizes = [2, 8, 4], strides = [1, 1, 1]} : vector<2x8x32xf32> to vector<2x8x4xf32>
    "tpu.trace_start"() <{level = 10 : i32, message = "bqk,bke->bqe"}> : () -> ()
    %cst_158 = arith.constant dense<0.000000e+00> : vector<2x8x4xf32>
    %291 = tpu.matmul %289, %290, %cst_158 {dimension_numbers = #tpu.dot_dimension_numbers<[2], [1], [1], [2], [0, 0, 0, 1, 1, 2], [0], [0]>} : vector<2x8x8xf32>, vector<2x8x4xf32>, vector<2x8x4xf32> -> vector<2x8x4xf32>
    "tpu.trace_stop"() : () -> ()
    %c0_159 = arith.constant 0 : index
    %c0_160 = arith.constant 0 : index
    %c4_161 = arith.constant 4 : index
    %292 = vector.load %arg23[%c0_159, %c0_160, %c4_161] : memref<2x8x32xf32, #tpu.memory_space<vmem>>, vector<2x8x4xf32>
    tpu.vector_store %arg23[%c0_159, %c0_160, %c4_161], %291 {strides = array<i32>} : memref<2x8x32xf32, #tpu.memory_space<vmem>>, vector<2x8x4xf32>,
    %293 = vector.extract_strided_slice %250 {offsets = [0, 0, 8], sizes = [2, 8, 4], strides = [1, 1, 1]} : vector<2x8x32xf32> to vector<2x8x4xf32>
    %294 = vector.extract_strided_slice %256 {offsets = [0, 0, 8], sizes = [2, 8, 4], strides = [1, 1, 1]} : vector<2x8x32xf32> to vector<2x8x4xf32>
    "tpu.trace_start"() <{level = 10 : i32, message = "bqe,bke->bqk"}> : () -> ()
    %cst_162 = arith.constant dense<0.000000e+00> : vector<2x8x8xf32>
    %295 = tpu.matmul %293, %294, %cst_162 {dimension_numbers = #tpu.dot_dimension_numbers<[2], [2], [1], [1], [0, 0, 0, 1, 1, 1], [0], [0]>} : vector<2x8x4xf32>, vector<2x8x4xf32>, vector<2x8x8xf32> -> vector<2x8x8xf32>
    "tpu.trace_stop"() : () -> ()
    %296 = arith.addf %295, %17 : vector<2x8x8xf32>
    %cst_163 = arith.constant dense<0xFF800000> : vector<2x8xf32>
    %297 = vector.multi_reduction <maximumf>, %296, %cst_163 [2] : vector<2x8x8xf32> to vector<2x8xf32>
    %298 = vector.shape_cast %297 : vector<2x8xf32> to vector<2x8x1xf32>
    %299 = vector.broadcast %298 : vector<2x8x1xf32> to vector<2x8x8xf32>
    %300 = arith.subf %296, %299 : vector<2x8x8xf32>
    %301 = math.exp %300 : vector<2x8x8xf32>
    %cst_164 = arith.constant dense<0.000000e+00> : vector<2x8xf32>
    %302 = vector.multi_reduction <add>, %301, %cst_164 [2] : vector<2x8x8xf32> to vector<2x8xf32>
    %303 = vector.shape_cast %302 : vector<2x8xf32> to vector<2x8x1xf32>
    %304 = vector.broadcast %303 : vector<2x8x1xf32> to vector<2x8x8xf32>
    %305 = arith.divf %301, %304 : vector<2x8x8xf32>
    %306 = vector.extract_strided_slice %260 {offsets = [0, 0, 8], sizes = [2, 8, 4], strides = [1, 1, 1]} : vector<2x8x32xf32> to vector<2x8x4xf32>
    "tpu.trace_start"() <{level = 10 : i32, message = "bqk,bke->bqe"}> : () -> ()
    %cst_165 = arith.constant dense<0.000000e+00> : vector<2x8x4xf32>
    %307 = tpu.matmul %305, %306, %cst_165 {dimension_numbers = #tpu.dot_dimension_numbers<[2], [1], [1], [2], [0, 0, 0, 1, 1, 2], [0], [0]>} : vector<2x8x8xf32>, vector<2x8x4xf32>, vector<2x8x4xf32> -> vector<2x8x4xf32>
    "tpu.trace_stop"() : () -> ()
    %c0_166 = arith.constant 0 : index
    %c0_167 = arith.constant 0 : index
    %c8_168 = arith.constant 8 : index
    %308 = vector.load %arg23[%c0_166, %c0_167, %c8_168] : memref<2x8x32xf32, #tpu.memory_space<vmem>>, vector<2x8x4xf32>
    tpu.vector_store %arg23[%c0_166, %c0_167, %c8_168], %307 {strides = array<i32>} : memref<2x8x32xf32, #tpu.memory_space<vmem>>, vector<2x8x4xf32>,
    %309 = vector.extract_strided_slice %250 {offsets = [0, 0, 12], sizes = [2, 8, 4], strides = [1, 1, 1]} : vector<2x8x32xf32> to vector<2x8x4xf32>
    %310 = vector.extract_strided_slice %256 {offsets = [0, 0, 12], sizes = [2, 8, 4], strides = [1, 1, 1]} : vector<2x8x32xf32> to vector<2x8x4xf32>
    "tpu.trace_start"() <{level = 10 : i32, message = "bqe,bke->bqk"}> : () -> ()
    %cst_169 = arith.constant dense<0.000000e+00> : vector<2x8x8xf32>
    %311 = tpu.matmul %309, %310, %cst_169 {dimension_numbers = #tpu.dot_dimension_numbers<[2], [2], [1], [1], [0, 0, 0, 1, 1, 1], [0], [0]>} : vector<2x8x4xf32>, vector<2x8x4xf32>, vector<2x8x8xf32> -> vector<2x8x8xf32>
    "tpu.trace_stop"() : () -> ()
    %312 = arith.addf %311, %17 : vector<2x8x8xf32>
    %cst_170 = arith.constant dense<0xFF800000> : vector<2x8xf32>
    %313 = vector.multi_reduction <maximumf>, %312, %cst_170 [2] : vector<2x8x8xf32> to vector<2x8xf32>
    %314 = vector.shape_cast %313 : vector<2x8xf32> to vector<2x8x1xf32>
    %315 = vector.broadcast %314 : vector<2x8x1xf32> to vector<2x8x8xf32>
    %316 = arith.subf %312, %315 : vector<2x8x8xf32>
    %317 = math.exp %316 : vector<2x8x8xf32>
    %cst_171 = arith.constant dense<0.000000e+00> : vector<2x8xf32>
    %318 = vector.multi_reduction <add>, %317, %cst_171 [2] : vector<2x8x8xf32> to vector<2x8xf32>
    %319 = vector.shape_cast %318 : vector<2x8xf32> to vector<2x8x1xf32>
    %320 = vector.broadcast %319 : vector<2x8x1xf32> to vector<2x8x8xf32>
    %321 = arith.divf %317, %320 : vector<2x8x8xf32>
    %322 = vector.extract_strided_slice %260 {offsets = [0, 0, 12], sizes = [2, 8, 4], strides = [1, 1, 1]} : vector<2x8x32xf32> to vector<2x8x4xf32>
    "tpu.trace_start"() <{level = 10 : i32, message = "bqk,bke->bqe"}> : () -> ()
    %cst_172 = arith.constant dense<0.000000e+00> : vector<2x8x4xf32>
    %323 = tpu.matmul %321, %322, %cst_172 {dimension_numbers = #tpu.dot_dimension_numbers<[2], [1], [1], [2], [0, 0, 0, 1, 1, 2], [0], [0]>} : vector<2x8x8xf32>, vector<2x8x4xf32>, vector<2x8x4xf32> -> vector<2x8x4xf32>
    "tpu.trace_stop"() : () -> ()
    %c0_173 = arith.constant 0 : index
    %c0_174 = arith.constant 0 : index
    %c12_175 = arith.constant 12 : index
    %324 = vector.load %arg23[%c0_173, %c0_174, %c12_175] : memref<2x8x32xf32, #tpu.memory_space<vmem>>, vector<2x8x4xf32>
    tpu.vector_store %arg23[%c0_173, %c0_174, %c12_175], %323 {strides = array<i32>} : memref<2x8x32xf32, #tpu.memory_space<vmem>>, vector<2x8x4xf32>,
    %325 = vector.extract_strided_slice %250 {offsets = [0, 0, 16], sizes = [2, 8, 4], strides = [1, 1, 1]} : vector<2x8x32xf32> to vector<2x8x4xf32>
    %326 = vector.extract_strided_slice %256 {offsets = [0, 0, 16], sizes = [2, 8, 4], strides = [1, 1, 1]} : vector<2x8x32xf32> to vector<2x8x4xf32>
    "tpu.trace_start"() <{level = 10 : i32, message = "bqe,bke->bqk"}> : () -> ()
    %cst_176 = arith.constant dense<0.000000e+00> : vector<2x8x8xf32>
    %327 = tpu.matmul %325, %326, %cst_176 {dimension_numbers = #tpu.dot_dimension_numbers<[2], [2], [1], [1], [0, 0, 0, 1, 1, 1], [0], [0]>} : vector<2x8x4xf32>, vector<2x8x4xf32>, vector<2x8x8xf32> -> vector<2x8x8xf32>
    "tpu.trace_stop"() : () -> ()
    %328 = arith.addf %327, %17 : vector<2x8x8xf32>
    %cst_177 = arith.constant dense<0xFF800000> : vector<2x8xf32>
    %329 = vector.multi_reduction <maximumf>, %328, %cst_177 [2] : vector<2x8x8xf32> to vector<2x8xf32>
    %330 = vector.shape_cast %329 : vector<2x8xf32> to vector<2x8x1xf32>
    %331 = vector.broadcast %330 : vector<2x8x1xf32> to vector<2x8x8xf32>
    %332 = arith.subf %328, %331 : vector<2x8x8xf32>
    %333 = math.exp %332 : vector<2x8x8xf32>
    %cst_178 = arith.constant dense<0.000000e+00> : vector<2x8xf32>
    %334 = vector.multi_reduction <add>, %333, %cst_178 [2] : vector<2x8x8xf32> to vector<2x8xf32>
    %335 = vector.shape_cast %334 : vector<2x8xf32> to vector<2x8x1xf32>
    %336 = vector.broadcast %335 : vector<2x8x1xf32> to vector<2x8x8xf32>
    %337 = arith.divf %333, %336 : vector<2x8x8xf32>
    %338 = vector.extract_strided_slice %260 {offsets = [0, 0, 16], sizes = [2, 8, 4], strides = [1, 1, 1]} : vector<2x8x32xf32> to vector<2x8x4xf32>
    "tpu.trace_start"() <{level = 10 : i32, message = "bqk,bke->bqe"}> : () -> ()
    %cst_179 = arith.constant dense<0.000000e+00> : vector<2x8x4xf32>
    %339 = tpu.matmul %337, %338, %cst_179 {dimension_numbers = #tpu.dot_dimension_numbers<[2], [1], [1], [2], [0, 0, 0, 1, 1, 2], [0], [0]>} : vector<2x8x8xf32>, vector<2x8x4xf32>, vector<2x8x4xf32> -> vector<2x8x4xf32>
    "tpu.trace_stop"() : () -> ()
    %c0_180 = arith.constant 0 : index
    %c0_181 = arith.constant 0 : index
    %c16_182 = arith.constant 16 : index
    %340 = vector.load %arg23[%c0_180, %c0_181, %c16_182] : memref<2x8x32xf32, #tpu.memory_space<vmem>>, vector<2x8x4xf32>
    tpu.vector_store %arg23[%c0_180, %c0_181, %c16_182], %339 {strides = array<i32>} : memref<2x8x32xf32, #tpu.memory_space<vmem>>, vector<2x8x4xf32>,
    %341 = vector.extract_strided_slice %250 {offsets = [0, 0, 20], sizes = [2, 8, 4], strides = [1, 1, 1]} : vector<2x8x32xf32> to vector<2x8x4xf32>
    %342 = vector.extract_strided_slice %256 {offsets = [0, 0, 20], sizes = [2, 8, 4], strides = [1, 1, 1]} : vector<2x8x32xf32> to vector<2x8x4xf32>
    "tpu.trace_start"() <{level = 10 : i32, message = "bqe,bke->bqk"}> : () -> ()
    %cst_183 = arith.constant dense<0.000000e+00> : vector<2x8x8xf32>
    %343 = tpu.matmul %341, %342, %cst_183 {dimension_numbers = #tpu.dot_dimension_numbers<[2], [2], [1], [1], [0, 0, 0, 1, 1, 1], [0], [0]>} : vector<2x8x4xf32>, vector<2x8x4xf32>, vector<2x8x8xf32> -> vector<2x8x8xf32>
    "tpu.trace_stop"() : () -> ()
    %344 = arith.addf %343, %17 : vector<2x8x8xf32>
    %cst_184 = arith.constant dense<0xFF800000> : vector<2x8xf32>
    %345 = vector.multi_reduction <maximumf>, %344, %cst_184 [2] : vector<2x8x8xf32> to vector<2x8xf32>
    %346 = vector.shape_cast %345 : vector<2x8xf32> to vector<2x8x1xf32>
    %347 = vector.broadcast %346 : vector<2x8x1xf32> to vector<2x8x8xf32>
    %348 = arith.subf %344, %347 : vector<2x8x8xf32>
    %349 = math.exp %348 : vector<2x8x8xf32>
    %cst_185 = arith.constant dense<0.000000e+00> : vector<2x8xf32>
    %350 = vector.multi_reduction <add>, %349, %cst_185 [2] : vector<2x8x8xf32> to vector<2x8xf32>
    %351 = vector.shape_cast %350 : vector<2x8xf32> to vector<2x8x1xf32>
    %352 = vector.broadcast %351 : vector<2x8x1xf32> to vector<2x8x8xf32>
    %353 = arith.divf %349, %352 : vector<2x8x8xf32>
    %354 = vector.extract_strided_slice %260 {offsets = [0, 0, 20], sizes = [2, 8, 4], strides = [1, 1, 1]} : vector<2x8x32xf32> to vector<2x8x4xf32>
    "tpu.trace_start"() <{level = 10 : i32, message = "bqk,bke->bqe"}> : () -> ()
    %cst_186 = arith.constant dense<0.000000e+00> : vector<2x8x4xf32>
    %355 = tpu.matmul %353, %354, %cst_186 {dimension_numbers = #tpu.dot_dimension_numbers<[2], [1], [1], [2], [0, 0, 0, 1, 1, 2], [0], [0]>} : vector<2x8x8xf32>, vector<2x8x4xf32>, vector<2x8x4xf32> -> vector<2x8x4xf32>
    "tpu.trace_stop"() : () -> ()
    %c0_187 = arith.constant 0 : index
    %c0_188 = arith.constant 0 : index
    %c20_189 = arith.constant 20 : index
    %356 = vector.load %arg23[%c0_187, %c0_188, %c20_189] : memref<2x8x32xf32, #tpu.memory_space<vmem>>, vector<2x8x4xf32>
    tpu.vector_store %arg23[%c0_187, %c0_188, %c20_189], %355 {strides = array<i32>} : memref<2x8x32xf32, #tpu.memory_space<vmem>>, vector<2x8x4xf32>,
    %357 = vector.extract_strided_slice %250 {offsets = [0, 0, 24], sizes = [2, 8, 4], strides = [1, 1, 1]} : vector<2x8x32xf32> to vector<2x8x4xf32>
    %358 = vector.extract_strided_slice %256 {offsets = [0, 0, 24], sizes = [2, 8, 4], strides = [1, 1, 1]} : vector<2x8x32xf32> to vector<2x8x4xf32>
    "tpu.trace_start"() <{level = 10 : i32, message = "bqe,bke->bqk"}> : () -> ()
    %cst_190 = arith.constant dense<0.000000e+00> : vector<2x8x8xf32>
    %359 = tpu.matmul %357, %358, %cst_190 {dimension_numbers = #tpu.dot_dimension_numbers<[2], [2], [1], [1], [0, 0, 0, 1, 1, 1], [0], [0]>} : vector<2x8x4xf32>, vector<2x8x4xf32>, vector<2x8x8xf32> -> vector<2x8x8xf32>
    "tpu.trace_stop"() : () -> ()
    %360 = arith.addf %359, %17 : vector<2x8x8xf32>
    %cst_191 = arith.constant dense<0xFF800000> : vector<2x8xf32>
    %361 = vector.multi_reduction <maximumf>, %360, %cst_191 [2] : vector<2x8x8xf32> to vector<2x8xf32>
    %362 = vector.shape_cast %361 : vector<2x8xf32> to vector<2x8x1xf32>
    %363 = vector.broadcast %362 : vector<2x8x1xf32> to vector<2x8x8xf32>
    %364 = arith.subf %360, %363 : vector<2x8x8xf32>
    %365 = math.exp %364 : vector<2x8x8xf32>
    %cst_192 = arith.constant dense<0.000000e+00> : vector<2x8xf32>
    %366 = vector.multi_reduction <add>, %365, %cst_192 [2] : vector<2x8x8xf32> to vector<2x8xf32>
    %367 = vector.shape_cast %366 : vector<2x8xf32> to vector<2x8x1xf32>
    %368 = vector.broadcast %367 : vector<2x8x1xf32> to vector<2x8x8xf32>
    %369 = arith.divf %365, %368 : vector<2x8x8xf32>
    %370 = vector.extract_strided_slice %260 {offsets = [0, 0, 24], sizes = [2, 8, 4], strides = [1, 1, 1]} : vector<2x8x32xf32> to vector<2x8x4xf32>
    "tpu.trace_start"() <{level = 10 : i32, message = "bqk,bke->bqe"}> : () -> ()
    %cst_193 = arith.constant dense<0.000000e+00> : vector<2x8x4xf32>
    %371 = tpu.matmul %369, %370, %cst_193 {dimension_numbers = #tpu.dot_dimension_numbers<[2], [1], [1], [2], [0, 0, 0, 1, 1, 2], [0], [0]>} : vector<2x8x8xf32>, vector<2x8x4xf32>, vector<2x8x4xf32> -> vector<2x8x4xf32>
    "tpu.trace_stop"() : () -> ()
    %c0_194 = arith.constant 0 : index
    %c0_195 = arith.constant 0 : index
    %c24_196 = arith.constant 24 : index
    %372 = vector.load %arg23[%c0_194, %c0_195, %c24_196] : memref<2x8x32xf32, #tpu.memory_space<vmem>>, vector<2x8x4xf32>
    tpu.vector_store %arg23[%c0_194, %c0_195, %c24_196], %371 {strides = array<i32>} : memref<2x8x32xf32, #tpu.memory_space<vmem>>, vector<2x8x4xf32>,
    %373 = vector.extract_strided_slice %250 {offsets = [0, 0, 28], sizes = [2, 8, 4], strides = [1, 1, 1]} : vector<2x8x32xf32> to vector<2x8x4xf32>
    %374 = vector.extract_strided_slice %256 {offsets = [0, 0, 28], sizes = [2, 8, 4], strides = [1, 1, 1]} : vector<2x8x32xf32> to vector<2x8x4xf32>
    "tpu.trace_start"() <{level = 10 : i32, message = "bqe,bke->bqk"}> : () -> ()
    %cst_197 = arith.constant dense<0.000000e+00> : vector<2x8x8xf32>
    %375 = tpu.matmul %373, %374, %cst_197 {dimension_numbers = #tpu.dot_dimension_numbers<[2], [2], [1], [1], [0, 0, 0, 1, 1, 1], [0], [0]>} : vector<2x8x4xf32>, vector<2x8x4xf32>, vector<2x8x8xf32> -> vector<2x8x8xf32>
    "tpu.trace_stop"() : () -> ()
    %376 = arith.addf %375, %17 : vector<2x8x8xf32>
    %cst_198 = arith.constant dense<0xFF800000> : vector<2x8xf32>
    %377 = vector.multi_reduction <maximumf>, %376, %cst_198 [2] : vector<2x8x8xf32> to vector<2x8xf32>
    %378 = vector.shape_cast %377 : vector<2x8xf32> to vector<2x8x1xf32>
    %379 = vector.broadcast %378 : vector<2x8x1xf32> to vector<2x8x8xf32>
    %380 = arith.subf %376, %379 : vector<2x8x8xf32>
    %381 = math.exp %380 : vector<2x8x8xf32>
    %cst_199 = arith.constant dense<0.000000e+00> : vector<2x8xf32>
    %382 = vector.multi_reduction <add>, %381, %cst_199 [2] : vector<2x8x8xf32> to vector<2x8xf32>
    %383 = vector.shape_cast %382 : vector<2x8xf32> to vector<2x8x1xf32>
    %384 = vector.broadcast %383 : vector<2x8x1xf32> to vector<2x8x8xf32>
    %385 = arith.divf %381, %384 : vector<2x8x8xf32>
    %386 = vector.extract_strided_slice %260 {offsets = [0, 0, 28], sizes = [2, 8, 4], strides = [1, 1, 1]} : vector<2x8x32xf32> to vector<2x8x4xf32>
    "tpu.trace_start"() <{level = 10 : i32, message = "bqk,bke->bqe"}> : () -> ()
    %cst_200 = arith.constant dense<0.000000e+00> : vector<2x8x4xf32>
    %387 = tpu.matmul %385, %386, %cst_200 {dimension_numbers = #tpu.dot_dimension_numbers<[2], [1], [1], [2], [0, 0, 0, 1, 1, 2], [0], [0]>} : vector<2x8x8xf32>, vector<2x8x4xf32>, vector<2x8x4xf32> -> vector<2x8x4xf32>
    "tpu.trace_stop"() : () -> ()
    %c0_201 = arith.constant 0 : index
    %c0_202 = arith.constant 0 : index
    %c28_203 = arith.constant 28 : index
    %388 = vector.load %arg23[%c0_201, %c0_202, %c28_203] : memref<2x8x32xf32, #tpu.memory_space<vmem>>, vector<2x8x4xf32>
    tpu.vector_store %arg23[%c0_201, %c0_202, %c28_203], %387 {strides = array<i32>} : memref<2x8x32xf32, #tpu.memory_space<vmem>>, vector<2x8x4xf32>,
    %c0_204 = arith.constant 0 : index
    %c0_205 = arith.constant 0 : index
    %c0_206 = arith.constant 0 : index
    %389 = vector.load %arg23[%c0_204, %c0_205, %c0_206] : memref<2x8x32xf32, #tpu.memory_space<vmem>>, vector<2x8x32xf32>
    %390 = vector.shape_cast %389 : vector<2x8x32xf32> to vector<16x32xf32>
    %c1_207 = arith.constant 1 : index
    %c0_208 = arith.constant 0 : index
    %c0_209 = arith.constant 0 : index
    %391 = vector.load %arg9[%c1_207, %c0_208, %c0_209] : memref<2x32x32xf32, #tpu.memory_space<vmem>>, vector<1x32x32xf32>
    %392 = vector.shape_cast %391 : vector<1x32x32xf32> to vector<32x32xf32>
    %cst_210 = arith.constant dense<0.000000e+00> : vector<16x32xf32>
    %393 = tpu.matmul %390, %392, %cst_210 {dimension_numbers = #tpu.dot_dimension_numbers<[1], [0], [0], [1], [0, 0, 1, 1], [], []>} : vector<16x32xf32>, vector<32x32xf32>, vector<16x32xf32> -> vector<16x32xf32>
    %c1_211 = arith.constant 1 : index
    %c0_212 = arith.constant 0 : index
    %c0_213 = arith.constant 0 : index
    %394 = vector.load %arg10[%c1_211, %c0_212, %c0_213] : memref<2x1x32xf32, #tpu.memory_space<vmem>>, vector<1x1x32xf32>
    %395 = vector.shape_cast %394 : vector<1x1x32xf32> to vector<1x32xf32>
    %396 = vector.broadcast %395 : vector<1x32xf32> to vector<16x32xf32>
    %397 = arith.addf %393, %396 : vector<16x32xf32>
    %398 = arith.addf %397, %244 : vector<16x32xf32>
    %c1_214 = arith.constant 1 : index
    %c0_215 = arith.constant 0 : index
    %c0_216 = arith.constant 0 : index
    %399 = vector.load %arg11[%c1_214, %c0_215, %c0_216] : memref<2x1x32xf32, #tpu.memory_space<vmem>>, vector<1x1x32xf32>
    %400 = vector.shape_cast %399 : vector<1x1x32xf32> to vector<1x32xf32>
    %c1_217 = arith.constant 1 : index
    %c0_218 = arith.constant 0 : index
    %c0_219 = arith.constant 0 : index
    %401 = vector.load %arg12[%c1_217, %c0_218, %c0_219] : memref<2x1x32xf32, #tpu.memory_space<vmem>>, vector<1x1x32xf32>
    %402 = vector.shape_cast %401 : vector<1x1x32xf32> to vector<1x32xf32>
    %cst_220 = arith.constant dense<0.000000e+00> : vector<16xf32>
    %403 = vector.multi_reduction <add>, %398, %cst_220 [1] : vector<16x32xf32> to vector<16xf32>
    %404 = vector.shape_cast %403 : vector<16xf32> to vector<16x1xf32>
    %cst_221 = arith.constant 3.200000e+01 : f32
    %405 = vector.broadcast %cst_221 : f32 to vector<16x1xf32>
    %406 = arith.divf %404, %405 : vector<16x1xf32>
    %407 = vector.broadcast %406 : vector<16x1xf32> to vector<16x32xf32>
    %408 = arith.subf %398, %407 : vector<16x32xf32>
    %409 = arith.mulf %408, %408 : vector<16x32xf32>
    %cst_222 = arith.constant dense<0.000000e+00> : vector<16xf32>
    %410 = vector.multi_reduction <add>, %409, %cst_222 [1] : vector<16x32xf32> to vector<16xf32>
    %411 = vector.shape_cast %410 : vector<16xf32> to vector<16x1xf32>
    %cst_223 = arith.constant 3.200000e+01 : f32
    %412 = vector.broadcast %cst_223 : f32 to vector<16x1xf32>
    %413 = arith.divf %411, %412 : vector<16x1xf32>
    %414 = vector.broadcast %406 : vector<16x1xf32> to vector<16x32xf32>
    %415 = arith.subf %398, %414 : vector<16x32xf32>
    %cst_224 = arith.constant 9.99999974E-6 : f32
    %416 = vector.broadcast %cst_224 : f32 to vector<16x1xf32>
    %417 = arith.addf %413, %416 : vector<16x1xf32>
    %418 = math.rsqrt %417 : vector<16x1xf32>
    %419 = vector.broadcast %418 : vector<16x1xf32> to vector<16x32xf32>
    %420 = arith.mulf %415, %419 : vector<16x32xf32>
    %421 = vector.broadcast %400 : vector<1x32xf32> to vector<16x32xf32>
    %422 = arith.mulf %420, %421 : vector<16x32xf32>
    %423 = vector.broadcast %402 : vector<1x32xf32> to vector<16x32xf32>
    %424 = arith.addf %422, %423 : vector<16x32xf32>
    %c1_225 = arith.constant 1 : index
    %c0_226 = arith.constant 0 : index
    %c0_227 = arith.constant 0 : index
    %425 = vector.load %arg13[%c1_225, %c0_226, %c0_227] : memref<2x32x128xf32, #tpu.memory_space<vmem>>, vector<1x32x128xf32>
    %426 = vector.shape_cast %425 : vector<1x32x128xf32> to vector<32x128xf32>
    %cst_228 = arith.constant dense<0.000000e+00> : vector<16x128xf32>
    %427 = tpu.matmul %424, %426, %cst_228 {dimension_numbers = #tpu.dot_dimension_numbers<[1], [0], [0], [1], [0, 0, 1, 1], [], []>} : vector<16x32xf32>, vector<32x128xf32>, vector<16x128xf32> -> vector<16x128xf32>
    %c1_229 = arith.constant 1 : index
    %c0_230 = arith.constant 0 : index
    %c0_231 = arith.constant 0 : index
    %428 = vector.load %arg14[%c1_229, %c0_230, %c0_231] : memref<2x1x128xf32, #tpu.memory_space<vmem>>, vector<1x1x128xf32>
    %429 = vector.shape_cast %428 : vector<1x1x128xf32> to vector<1x128xf32>
    %430 = vector.broadcast %429 : vector<1x128xf32> to vector<16x128xf32>
    %431 = arith.addf %427, %430 : vector<16x128xf32>
    %cst_232 = arith.constant 0.000000e+00 : f32
    %432 = vector.broadcast %cst_232 : f32 to vector<16x128xf32>
    %433 = arith.maximumf %431, %432 : vector<16x128xf32>
    %c1_233 = arith.constant 1 : index
    %c0_234 = arith.constant 0 : index
    %c0_235 = arith.constant 0 : index
    %434 = vector.load %arg15[%c1_233, %c0_234, %c0_235] : memref<2x128x32xf32, #tpu.memory_space<vmem>>, vector<1x128x32xf32>
    %435 = vector.shape_cast %434 : vector<1x128x32xf32> to vector<128x32xf32>
    %cst_236 = arith.constant dense<0.000000e+00> : vector<16x32xf32>
    %436 = tpu.matmul %433, %435, %cst_236 {dimension_numbers = #tpu.dot_dimension_numbers<[1], [0], [0], [1], [0, 0, 1, 1], [], []>} : vector<16x128xf32>, vector<128x32xf32>, vector<16x32xf32> -> vector<16x32xf32>
    %c1_237 = arith.constant 1 : index
    %c0_238 = arith.constant 0 : index
    %c0_239 = arith.constant 0 : index
    %437 = vector.load %arg16[%c1_237, %c0_238, %c0_239] : memref<2x1x32xf32, #tpu.memory_space<vmem>>, vector<1x1x32xf32>
    %438 = vector.shape_cast %437 : vector<1x1x32xf32> to vector<1x32xf32>
    %439 = vector.broadcast %438 : vector<1x32xf32> to vector<16x32xf32>
    %440 = arith.addf %436, %439 : vector<16x32xf32>
    %441 = arith.addf %440, %424 : vector<16x32xf32>
    %c1_240 = arith.constant 1 : index
    %c0_241 = arith.constant 0 : index
    %c0_242 = arith.constant 0 : index
    %442 = vector.load %arg17[%c1_240, %c0_241, %c0_242] : memref<2x1x32xf32, #tpu.memory_space<vmem>>, vector<1x1x32xf32>
    %443 = vector.shape_cast %442 : vector<1x1x32xf32> to vector<1x32xf32>
    %c1_243 = arith.constant 1 : index
    %c0_244 = arith.constant 0 : index
    %c0_245 = arith.constant 0 : index
    %444 = vector.load %arg18[%c1_243, %c0_244, %c0_245] : memref<2x1x32xf32, #tpu.memory_space<vmem>>, vector<1x1x32xf32>
    %445 = vector.shape_cast %444 : vector<1x1x32xf32> to vector<1x32xf32>
    %cst_246 = arith.constant dense<0.000000e+00> : vector<16xf32>
    %446 = vector.multi_reduction <add>, %441, %cst_246 [1] : vector<16x32xf32> to vector<16xf32>
    %447 = vector.shape_cast %446 : vector<16xf32> to vector<16x1xf32>
    %cst_247 = arith.constant 3.200000e+01 : f32
    %448 = vector.broadcast %cst_247 : f32 to vector<16x1xf32>
    %449 = arith.divf %447, %448 : vector<16x1xf32>
    %450 = vector.broadcast %449 : vector<16x1xf32> to vector<16x32xf32>
    %451 = arith.subf %441, %450 : vector<16x32xf32>
    %452 = arith.mulf %451, %451 : vector<16x32xf32>
    %cst_248 = arith.constant dense<0.000000e+00> : vector<16xf32>
    %453 = vector.multi_reduction <add>, %452, %cst_248 [1] : vector<16x32xf32> to vector<16xf32>
    %454 = vector.shape_cast %453 : vector<16xf32> to vector<16x1xf32>
    %cst_249 = arith.constant 3.200000e+01 : f32
    %455 = vector.broadcast %cst_249 : f32 to vector<16x1xf32>
    %456 = arith.divf %454, %455 : vector<16x1xf32>
    %457 = vector.broadcast %449 : vector<16x1xf32> to vector<16x32xf32>
    %458 = arith.subf %441, %457 : vector<16x32xf32>
    %cst_250 = arith.constant 9.99999974E-6 : f32
    %459 = vector.broadcast %cst_250 : f32 to vector<16x1xf32>
    %460 = arith.addf %456, %459 : vector<16x1xf32>
    %461 = math.rsqrt %460 : vector<16x1xf32>
    %462 = vector.broadcast %461 : vector<16x1xf32> to vector<16x32xf32>
    %463 = arith.mulf %458, %462 : vector<16x32xf32>
    %464 = vector.broadcast %443 : vector<1x32xf32> to vector<16x32xf32>
    %465 = arith.mulf %463, %464 : vector<16x32xf32>
    %466 = vector.broadcast %445 : vector<1x32xf32> to vector<16x32xf32>
    %467 = arith.addf %465, %466 : vector<16x32xf32>
    %468 = vector.shape_cast %467 : vector<16x32xf32> to vector<2x8x32xf32>
    %469 = vector.shape_cast %468 : vector<2x8x32xf32> to vector<16x32xf32>
    %c0_251 = arith.constant 0 : index
    %c0_252 = arith.constant 0 : index
    %470 = vector.load %arg19[%c0_251, %c0_252] : memref<32x128xf32, #tpu.memory_space<vmem>>, vector<32x128xf32>
    %cst_253 = arith.constant dense<0.000000e+00> : vector<16x128xf32>
    %471 = tpu.matmul %469, %470, %cst_253 {dimension_numbers = #tpu.dot_dimension_numbers<[1], [0], [0], [1], [0, 0, 1, 1], [], []>} : vector<16x32xf32>, vector<32x128xf32>, vector<16x128xf32> -> vector<16x128xf32>
    %c0_254 = arith.constant 0 : index
    %c0_255 = arith.constant 0 : index
    %472 = vector.load %arg20[%c0_254, %c0_255] : memref<1x128xf32, #tpu.memory_space<vmem>>, vector<1x128xf32>
    %473 = vector.broadcast %472 : vector<1x128xf32> to vector<16x128xf32>
    %474 = arith.addf %471, %473 : vector<16x128xf32>
    %475 = vector.shape_cast %474 : vector<16x128xf32> to vector<2x8x128xf32>
    %c0_256 = arith.constant 0 : index
    %c0_257 = arith.constant 0 : index
    %c0_258 = arith.constant 0 : index
    %476 = vector.load %arg21[%c0_256, %c0_257, %c0_258] : memref<2x8x128xf32, #tpu.memory_space<vmem>>, vector<2x8x128xf32>
    tpu.vector_store %arg21[%c0_256, %c0_257, %c0_258], %475 {strides = array<i32>} : memref<2x8x128xf32, #tpu.memory_space<vmem>>, vector<2x8x128xf32>,
    return
  }
  func.func @transform_0(%arg0: i32) -> (i32, i32) {
    %c0_i32 = arith.constant 0 : i32
    %c0_i32_0 = arith.constant 0 : i32
    %c0_i32_1 = arith.constant 0 : i32
    return %c0_i32, %c0_i32_0 : i32, i32
  }
  func.func @transform_1(%arg0: i32) -> (i32, i32, i32) {
    %c0_i32 = arith.constant 0 : i32
    %c0_i32_0 = arith.constant 0 : i32
    %c0_i32_1 = arith.constant 0 : i32
    %c0_i32_2 = arith.constant 0 : i32
    return %c0_i32, %c0_i32_0, %c0_i32_1 : i32, i32, i32
  }
  func.func @transform_2(%arg0: i32) -> (i32, i32, i32) {
    %c0_i32 = arith.constant 0 : i32
    %c0_i32_0 = arith.constant 0 : i32
    %c0_i32_1 = arith.constant 0 : i32
    %c0_i32_2 = arith.constant 0 : i32
    return %c0_i32, %c0_i32_0, %c0_i32_1 : i32, i32, i32
  }
  func.func @transform_3(%arg0: i32) -> (i32, i32) {
    %c0_i32 = arith.constant 0 : i32
    %c0_i32_0 = arith.constant 0 : i32
    %c0_i32_1 = arith.constant 0 : i32
    return %c0_i32, %c0_i32_0 : i32, i32
  }
  func.func @transform_4(%arg0: i32) -> (i32, i32) {
    %c0_i32 = arith.constant 0 : i32
    %c0_i32_0 = arith.constant 0 : i32
    %c0_i32_1 = arith.constant 0 : i32
    return %c0_i32, %c0_i32_0 : i32, i32
  }
  func.func @transform_5(%arg0: i32) -> (i32, i32, i32) {
    %c0_i32 = arith.constant 0 : i32
    %c0_i32_0 = arith.constant 0 : i32
    %c0_i32_1 = arith.constant 0 : i32
    %c0_i32_2 = arith.constant 0 : i32
    return %c0_i32, %c0_i32_0, %c0_i32_1 : i32, i32, i32
  }
  func.func @transform_6(%arg0: i32) -> (i32, i32, i32) {
    %c0_i32 = arith.constant 0 : i32
    %c0_i32_0 = arith.constant 0 : i32
    %c0_i32_1 = arith.constant 0 : i32
    %c0_i32_2 = arith.constant 0 : i32
    return %c0_i32, %c0_i32_0, %c0_i32_1 : i32, i32, i32
  }
  func.func @transform_7(%arg0: i32) -> (i32, i32, i32) {
    %c0_i32 = arith.constant 0 : i32
    %c0_i32_0 = arith.constant 0 : i32
    %c0_i32_1 = arith.constant 0 : i32
    %c0_i32_2 = arith.constant 0 : i32
    return %c0_i32, %c0_i32_0, %c0_i32_1 : i32, i32, i32
  }
  func.func @transform_8(%arg0: i32) -> (i32, i32, i32) {
    %c0_i32 = arith.constant 0 : i32
    %c0_i32_0 = arith.constant 0 : i32
    %c0_i32_1 = arith.constant 0 : i32
    %c0_i32_2 = arith.constant 0 : i32
    return %c0_i32, %c0_i32_0, %c0_i32_1 : i32, i32, i32
  }
  func.func @transform_9(%arg0: i32) -> (i32, i32, i32) {
    %c0_i32 = arith.constant 0 : i32
    %c0_i32_0 = arith.constant 0 : i32
    %c0_i32_1 = arith.constant 0 : i32
    %c0_i32_2 = arith.constant 0 : i32
    return %c0_i32, %c0_i32_0, %c0_i32_1 : i32, i32, i32
  }
  func.func @transform_10(%arg0: i32) -> (i32, i32, i32) {
    %c0_i32 = arith.constant 0 : i32
    %c0_i32_0 = arith.constant 0 : i32
    %c0_i32_1 = arith.constant 0 : i32
    %c0_i32_2 = arith.constant 0 : i32
    return %c0_i32, %c0_i32_0, %c0_i32_1 : i32, i32, i32
  }
  func.func @transform_11(%arg0: i32) -> (i32, i32, i32) {
    %c0_i32 = arith.constant 0 : i32
    %c0_i32_0 = arith.constant 0 : i32
    %c0_i32_1 = arith.constant 0 : i32
    %c0_i32_2 = arith.constant 0 : i32
    return %c0_i32, %c0_i32_0, %c0_i32_1 : i32, i32, i32
  }
  func.func @transform_12(%arg0: i32) -> (i32, i32, i32) {
    %c0_i32 = arith.constant 0 : i32
    %c0_i32_0 = arith.constant 0 : i32
    %c0_i32_1 = arith.constant 0 : i32
    %c0_i32_2 = arith.constant 0 : i32
    return %c0_i32, %c0_i32_0, %c0_i32_1 : i32, i32, i32
  }
  func.func @transform_13(%arg0: i32) -> (i32, i32, i32) {
    %c0_i32 = arith.constant 0 : i32
    %c0_i32_0 = arith.constant 0 : i32
    %c0_i32_1 = arith.constant 0 : i32
    %c0_i32_2 = arith.constant 0 : i32
    return %c0_i32, %c0_i32_0, %c0_i32_1 : i32, i32, i32
  }
  func.func @transform_14(%arg0: i32) -> (i32, i32, i32) {
    %c0_i32 = arith.constant 0 : i32
    %c0_i32_0 = arith.constant 0 : i32
    %c0_i32_1 = arith.constant 0 : i32
    %c0_i32_2 = arith.constant 0 : i32
    return %c0_i32, %c0_i32_0, %c0_i32_1 : i32, i32, i32
  }
  func.func @transform_15(%arg0: i32) -> (i32, i32, i32) {
    %c0_i32 = arith.constant 0 : i32
    %c0_i32_0 = arith.constant 0 : i32
    %c0_i32_1 = arith.constant 0 : i32
    %c0_i32_2 = arith.constant 0 : i32
    return %c0_i32, %c0_i32_0, %c0_i32_1 : i32, i32, i32
  }
  func.func @transform_16(%arg0: i32) -> (i32, i32, i32) {
    %c0_i32 = arith.constant 0 : i32
    %c0_i32_0 = arith.constant 0 : i32
    %c0_i32_1 = arith.constant 0 : i32
    %c0_i32_2 = arith.constant 0 : i32
    return %c0_i32, %c0_i32_0, %c0_i32_1 : i32, i32, i32
  }
  func.func @transform_17(%arg0: i32) -> (i32, i32, i32) {
    %c0_i32 = arith.constant 0 : i32
    %c0_i32_0 = arith.constant 0 : i32
    %c0_i32_1 = arith.constant 0 : i32
    %c0_i32_2 = arith.constant 0 : i32
    return %c0_i32, %c0_i32_0, %c0_i32_1 : i32, i32, i32
  }
  func.func @transform_18(%arg0: i32) -> (i32, i32) {
    %c0_i32 = arith.constant 0 : i32
    %c0_i32_0 = arith.constant 0 : i32
    %c0_i32_1 = arith.constant 0 : i32
    return %c0_i32, %c0_i32_0 : i32, i32
  }
  func.func @transform_19(%arg0: i32) -> (i32, i32) {
    %c0_i32 = arith.constant 0 : i32
    %c0_i32_0 = arith.constant 0 : i32
    %c0_i32_1 = arith.constant 0 : i32
    return %c0_i32, %c0_i32_0 : i32, i32
  }
  func.func @transform_20(%arg0: i32) -> (i32, i32, i32) {
    %c0_i32 = arith.constant 0 : i32
    %c0_i32_0 = arith.constant 0 : i32
    %c0_i32_1 = arith.constant 0 : i32
    %c0_i32_2 = arith.constant 0 : i32
    return %c0_i32, %c0_i32_0, %c0_i32_1 : i32, i32, i32
  }
  func.func @transform_21(%arg0: i32) -> (i32, i32, i32) {
    %c0_i32 = arith.constant 0 : i32
    %c0_i32_0 = arith.constant 0 : i32
    %c0_i32_1 = arith.constant 0 : i32
    %c0_i32_2 = arith.constant 0 : i32
    return %c0_i32, %c0_i32_0, %c0_i32_1 : i32, i32, i32
  }
}

</mosaic_0001>

<bundles_post_ra>
// kernel: tpu_custom_call.1
= control target key start
LH: loop header
LB: loop body
LE: loop exit
PB: predicated region body
PF: predicated region fallthrough
CT: control target
= control target key end

     0   :  { %s9746_s0 = inlined_call_operand.hbm [shape: f32[16,10], index: 0, kind: input, shape index: {}]   ;;  %s9747_s1 = inlined_call_operand.vmem [shape: f32[2,1,32], index: 1, kind: input, shape index: {}]   ;;  %s9748_s2 = inlined_call_operand.hbm [shape: f32[2,8,8], index: 2, kind: input, shape index: {}]   ;;  %s9749_s3 = inlined_call_operand.hbm [shape: f32[10,32], index: 3, kind: input, shape index: {}]   ;;  %s9750_s4 = inlined_call_operand.vmem [shape: f32[1,32], index: 4, kind: input, shape index: {}]   ;;  %s9751_s5 = inlined_call_operand.vmem [shape: f32[2,32,32], index: 5, kind: input, shape index: {}]   ;;  %s9752_s6 = inlined_call_operand.vmem [shape: f32[2,32,32], index: 6, kind: input, shape index: {}]   ;;  %s9753_s7 = inlined_call_operand.vmem [shape: f32[2,32,32], index: 7, kind: input, shape index: {}]   ;;  %s9754_s8 = inlined_call_operand.vmem [shape: f32[2,32,32], index: 8, kind: input, shape index: {}]   ;;  %s9755_s9 = inlined_call_operand.vmem [shape: f32[2,1,32], index: 9, kind: input, shape index: {}]   ;;  %s9756_s10 = inlined_call_operand.hbm [shape: f32[2,1,32], index: 10, kind: input, shape index: {}]   ;;  %s9757_s11 = inlined_call_operand.vmem [shape: f32[2,1,32], index: 11, kind: input, shape index: {}]   ;;  %s9758_s12 = inlined_call_operand.vmem [shape: f32[2,32,128], index: 12, kind: input, shape index: {}]   ;;  %s9759_s13 = inlined_call_operand.vmem [shape: f32[2,1,128], index: 13, kind: input, shape index: {}]   ;;  %s9760_s14 = inlined_call_operand.vmem [shape: f32[2,128,32], index: 14, kind: input, shape index: {}]   ;;  %s9761_s15 = inlined_call_operand.vmem [shape: f32[2,1,32], index: 15, kind: input, shape index: {}]   ;;  %s9762_s16 = inlined_call_operand.vmem [shape: f32[2,1,32], index: 16, kind: input, shape index: {}]   ;;  %s9763_s17 = inlined_call_operand.vmem [shape: f32[2,1,32], index: 17, kind: input, shape index: {}]   ;;  %s9764_s18 = inlined_call_operand.vmem [shape: f32[32,128], index: 18, kind: input, shape index: {}]   ;;  %s9765_s19 = inlined_call_operand.vmem [shape: f32[1,128], index: 19, kind: input, shape index: {}]   ;;  %s9766_s20 = inlined_call_operand.hbm [shape: f32[2,8,128], index: 20, kind: output, shape index: {0}]   ;;  %s9767_s21 = inlined_call_operand.hbm [shape: f32[2,8,32], index: 21, kind: output, shape index: {1}]  }
   0x1   :  { %9789 = sst [smem:[#allocation19_spill]] %s9746_s0 }
   0x2   :  { %9790 = sst [smem:[#allocation20_spill]] %s9747_s1 }
   0x3   :  { %9791 = sst [smem:[#allocation21_spill]] %s9748_s2 }
   0x4   :  { %9792 = sst [smem:[#allocation22_spill]] %s9749_s3 }
   0x5   :  { %9793 = sst [smem:[#allocation23_spill]] %s9750_s4 }
   0x6   :  { %9794 = sst [smem:[#allocation24_spill]] %s9751_s5 }
   0x7   :  { %9795 = sst [smem:[#allocation25_spill]] %s9765_s19 }
   0x8   :  { %9796 = sst [smem:[#allocation26_spill]] %s9766_s20 }
   0x9   :  { %9797 = sst [smem:[#allocation27_spill]] %s9767_s21 }
   0xa   :  { %27 = vsyncpa [#allocation4], 0 }
   0xb   :  { %28 = vsyncpa [#allocation7], 0 }
   0xc   :  { %29 = vsyncpa [#allocation10], 0 }
   0xd   :  { %30 = vsyncpa [#allocation5], 0 }
   0xe   :  { %31 = vsyncpa [#allocation13], 0  ;;  %s8451_s2 = smov [#allocation6]   ;;  %s8452_s26 = smov [#allocation3]  }
   0xf   :  { %s51_s25 = sshll.u32 %s8451_s2, 4  ;;  %s37_s27 = sshll.u32 %s8452_s26, 4  ;;  %s52_s25 = int_to_ptr.vmem [resolvable:$true] %s51_s25  ;;  %s8586_s27 = int_to_ptr.vmem [resolvable:$true] %s37_s27 }
  0x10   :  { %s9798_s29 = sld [smem:[#allocation21_spill]] }
  0x16   :  { %s8309_s0 = scalar_lea.hbm %s9798_s29, 256 }
  0x17   :  { %p8310_p0 = scmp.ne.s32.totalorder %s9798_s29, %s8309_s0  ;;  %p8313_p1 = scmp.lt.u32.totalorder %s8309_s0, %s9798_s29 }
  0x19   :  { %p8315_p2 = pnand %p8313_p1, %p8310_p0 }
  0x1b   :  { %8318 = shalt.err (!%p8315_p2)
}
  0x1c   :  { %s8319_s23 = scalar_lea.vmem %s52_s25, 256  ;;  %p8324_p4 = scmp.lt.s32.totalorder %s52_s25, %s52_s25 }
  0x1d   :  { %p8320_p3 = scmp.ne.s32.totalorder %s52_s25, %s8319_s23  ;;  %p8325_p5 = scmp.lt.s32.totalorder %s8319_s23, %s8319_s23 }
  0x1f   :  { %p8326_p6 = por %p8325_p5, %p8324_p4 }
  0x21   :  { %p8327_p7 = pnand %p8326_p6, %p8320_p3 }
  0x23   :  { %8330 = shalt.err (!%p8327_p7)
}
  0x24   :  { %s9775_s1 = smov 128   ;;  %s9787_s24 = smov 8  }
  0x25   :  { %57 = dma.hbm_to_vmem [thread:$0]  %s9798_s29, 256, %s52_s25, [#allocation7], %s9775_s1, %s9775_s1, %s9787_s24  }
  0x26   :  { %s9799_s0 = sld [smem:[#allocation19_spill]] }
  0x2c   :  { %s8331_s4 = scalar_lea.hbm %s9799_s0, 256 }
  0x2d   :  { %p8332_p8 = scmp.ne.s32.totalorder %s9799_s0, %s8331_s4  ;;  %p8335_p9 = scmp.lt.u32.totalorder %s8331_s4, %s9799_s0 }
  0x2f   :  { %p8337_p10 = pnand %p8335_p9, %p8332_p8 }
  0x31   :  { %8340 = shalt.err (!%p8337_p10)
}
  0x32   :  { %s8341_s20 = scalar_lea.vmem %s8586_s27, 256  ;;  %p8346_p12 = scmp.lt.s32.totalorder %s8586_s27, %s8586_s27 }
  0x33   :  { %p8342_p11 = scmp.ne.s32.totalorder %s8586_s27, %s8341_s20  ;;  %p8347_p13 = scmp.lt.s32.totalorder %s8341_s20, %s8341_s20 }
  0x35   :  { %p8348_p0 = por %p8347_p13, %p8346_p12 }
  0x37   :  { %p8349_p1 = pnand %p8348_p0, %p8342_p11 }
  0x39   :  { %8352 = shalt.err (!%p8349_p1)
}
  0x3a   :  { %43 = dma.hbm_to_vmem [thread:$0]  %s9799_s0, 256, %s8586_s27, [#allocation4], %s9775_s1, %s9775_s1, %s9787_s24  }
  0x3b   :  { %s8455_s2 = smov [#allocation8]   ;;  %s8456_s3 = smov [#allocation9]  }
  0x3c   :  { %s63_s26 = sshll.u32 %s8455_s2, 4  ;;  %s87_s28 = sshll.u32 %s8456_s3, 4  ;;  %s64_s26 = int_to_ptr.vmem [resolvable:$true] %s63_s26  ;;  %s8623_s28 = int_to_ptr.vmem [resolvable:$true] %s87_s28 }
  0x3d   :  { %s9800_s30 = sld [smem:[#allocation22_spill]] }
  0x43   :  { %s8353_s5 = scalar_lea.hbm %s9800_s30, 256 }
  0x44   :  { %p8354_p2 = scmp.ne.s32.totalorder %s9800_s30, %s8353_s5  ;;  %p8357_p3 = scmp.lt.u32.totalorder %s8353_s5, %s9800_s30 }
  0x46   :  { %p8359_p4 = pnand %p8357_p3, %p8354_p2 }
  0x48   :  { %8362 = shalt.err (!%p8359_p4)
}
  0x49   :  { %s8363_s27 = scalar_lea.vmem %s64_s26, 256  ;;  %p8368_p6 = scmp.lt.s32.totalorder %s64_s26, %s64_s26 }
  0x4a   :  { %p8364_p5 = scmp.ne.s32.totalorder %s64_s26, %s8363_s27  ;;  %p8369_p7 = scmp.lt.s32.totalorder %s8363_s27, %s8363_s27 }
  0x4c   :  { %p8370_p8 = por %p8369_p7, %p8368_p6 }
  0x4e   :  { %p8371_p9 = pnand %p8370_p8, %p8364_p5 }
  0x50   :  { %8374 = shalt.err (!%p8371_p9)
}
  0x51   :  { %69 = dma.hbm_to_vmem [thread:$0]  %s9800_s30, 256, %s64_s26, [#allocation7], %s9775_s1, %s9775_s1, %s9787_s24  }
  0x52   :  { %s8375_s19 = scalar_lea.hbm %s9756_s10, 32 }
  0x53   :  { %p8376_p10 = scmp.ne.s32.totalorder %s9756_s10, %s8375_s19  ;;  %p8379_p11 = scmp.lt.u32.totalorder %s8375_s19, %s9756_s10 }
  0x55   :  { %p8381_p12 = pnand %p8379_p11, %p8376_p10 }
  0x57   :  { %8384 = shalt.err (!%p8381_p12)
}
  0x58   :  { %s8385_s5 = scalar_lea.vmem %s8623_s28, 32  ;;  %p8390_p0 = scmp.lt.s32.totalorder %s8623_s28, %s8623_s28 }
  0x59   :  { %p8386_p13 = scmp.ne.s32.totalorder %s8623_s28, %s8385_s5  ;;  %p8391_p1 = scmp.lt.s32.totalorder %s8385_s5, %s8385_s5 }
  0x5b   :  { %p8392_p2 = por %p8391_p1, %p8390_p0 }
  0x5d   :  { %p8393_p3 = pnand %p8392_p2, %p8386_p13 }
  0x5f   :  { %8396 = shalt.err (!%p8393_p3)
}
  0x60   :  { %s9781_s26 = smov 16   ;;  %s8458_s30 = smov 1  }
  0x61   :  { %93 = dma.hbm_to_vmem [thread:$0]  %s9756_s10, 32, %s8623_s28, [#allocation10], %s9781_s26, %s9781_s26, %s8458_s30  }
  0x62   :  { %8441 = dma.done.wait [#allocation4], 256  }
  0x63   :  { %8442 = vsyncadd [#allocation4], 4294967040 }
  0x64   :  { %8443 = dma.done.wait [#allocation7], 512  }
  0x65   :  { %8444 = vsyncadd [#allocation7], 4294966784 }
  0x66   :  { %8445 = dma.done.wait [#allocation10], 32  }
  0x67   :  { %8446 = vsyncadd [#allocation10], 4294967264  ;;  %vm142_vm0 = vcmask 1041408   ;;  %vm135_vm1 = vcmask 80896   ;;  %vm8459_vm2 = vmmov 1   ;;  %v126_v0 = vld [vmem:[#allocation8] sm:$0xff] }
  0x68   :  { %vm7981_vm3 = vmpackc.low %vm142_vm0, %vm8459_vm2  ;;  %v127_v1 = vld [vmem:[#allocation8 + $0x8] sm:$0x3]  ;;  %v124_v2 = vld [vmem:[#allocation3] sm:$0xff]  ;;  %s9801_s27 = sld [smem:[#allocation24_spill]]  ;;  %v8460_v20 = vmov 0.0   ;;  %s9802_s21 = sld [smem:[#allocation23_spill]] }
  0x69   :  { %v7980_v3 = vpack.c.bf16 %v127_v1, %v126_v0  ;;  %7466 = vmatprep.mubr.msk.f32.mxu0 %vm135_vm1, %v124_v2  ;;  %v125_v4 = vld [vmem:[#allocation3 + $0x8] sm:$0xff]  ;;  %v407_v8 = vld [vmem:[%s9753_s7] sm:$0xff]  ;;  %v408_v9 = vld [vmem:[%s9753_s7 + $0x8] sm:$0xff]  ;;  %vm221_vm4 = vcmask 261120   ;;  %s9803_s20 = sld [smem:[#allocation20_spill]]  ;;  %vm226_vm5 = vcmask 253952  }
  0x6a   :  { %v8002_v10 = vpack.c.bf16 %v408_v9, %v407_v8  ;;  %v409_v13 = vld [vmem:[%s9753_s7 + $0x10] sm:$0xff]  ;;  %v410_v15 = vld [vmem:[%s9753_s7 + $0x18] sm:$0xff]  ;;  %v326_v17 = vld [vmem:[%s9752_s6] sm:$0xff]  ;;  %vm8461_vm6 = vmmov 0   ;;  %vm486_vm7 = vcmask 31744   ;;  %s8462_s0 = smov 124  }
  0x6b   :  { %7982 = vmatprep.subr.msk.bf16.mxu0 %vm7981_vm3, %v7980_v3  ;;  %v8006_v16 = vpack.c.bf16 %v410_v15, %v409_v13  ;;  %v327_v18 = vld [vmem:[%s9752_s6 + $0x8] sm:$0xff]  ;;  %v328_v28 = vld [vmem:[%s9752_s6 + $0x10] sm:$0xff]  ;;  %v329_v29 = vld [vmem:[%s9752_s6 + $0x18] sm:$0xff]  ;;  %vm639_vm10 = vcmask 64512   ;;  %s8463_s25 = smov 120   ;;  %s8464_s29 = smov 116  }
  0x6c   :  { %7985 = vmatpush3.bf16.msk.msra.mxu0 %vm7981_vm3, %v7980_v3  ;;  %8003 = vmatprep.subr.bf16.mxu1 %v8002_v10  ;;  %v7994_v19 = vpack.c.bf16 %v327_v18, %v326_v17  ;;  %v7998_v31 = vpack.c.bf16 %v329_v29, %v328_v28  ;;  %v231_v43 = vld [vmem:[#allocation6] sm:$0xff]  ;;  %v232_v44 = vld [vmem:[#allocation6 + $0x8] sm:$0xff]  ;;  %s8465_s2 = smov 112   ;;  %s8466_s19 = smov 108   ;;  %vm1150_vm11 = vcmask 64544   ;;  %vm1491_vm12 = vcmask 97344  }
  0x6d   :  { %8005 = vmatpush3.bf16.msra.mxu1 %v8002_v10  ;;  %vm233_vm8 = vcmp.eq.f32.partialorder %v231_v43, 0.0  ;;  %vm234_vm9 = vcmp.eq.f32.partialorder %v232_v44, 0.0  ;;  %s8468_s3 = smov 100   ;;  %s8469_s4 = smov 4   ;;  %vm1832_vm13 = vcmask 130144   ;;  %vm2173_vm14 = vcmask 162944  }
  0x6e   :  { %v239_v5 = vld [vmem:[%s9801_s27] sm:$0xff]  ;;  %v240_v6 = vld [vmem:[%s9801_s27 + $0x8] sm:$0xff]  ;;  %v241_v11 = vld [vmem:[%s9801_s27 + $0x10] sm:$0xff]  ;;  %8007 = vmatprep.subr.bf16.mxu1 %v8006_v16  ;;  %v8755_v45 = vsel %vm233_vm8, -1e+09, %v8460_v20  ;;  %s9779_s5 = smov 20  }
  0x6f   :  { %7467 = vmatmul.mubr.msk.f32.vlgmr.msra.gmra.mrb[0].mxu0 %vm135_vm1, %v125_v4  ;;  %v7986_v7 = vpack.c.bf16 %v240_v6, %v239_v5  ;;  %v242_v12 = vld [vmem:[%s9801_s27 + $0x18] sm:$0xff]  ;;  %v7049_v21 = vld [vmem:[%s9802_s21] ss:$0 sm:$0xff]  ;;  %v225_v24 = vld [vmem:[%s9803_s20 + $0x1] sm:$0x1]  ;;  %s8467_s21 = smov 104  }
  0x70   :  { %v7990_v14 = vpack.c.bf16 %v242_v12, %v241_v11  ;;  %v224_v27 = vld [vmem:[%s9803_s20] sm:$0x1]  ;;  %v8759_v49 = vsel %vm234_vm9, -1e+09, %v8460_v20  ;;  %s9785_s20 = smov 12   ;;  %s9777_s30 = smov 24  }
  0x71   :  { %7987 = vmatprep.subr.bf16.mxu0 %v7986_v7  ;;  %8009 = vmatpush3.bf16.msra.mxu1 %v8006_v16  ;;  %vm2514_vm15 = vcmask 195744   ;;  %vm2855_vm0 = vcmask 228544   ;;  %s9783_s22 = smov 28   ;;  %vm3196_vm1 = vcmask 261344  }
  0x72   :  { %7989 = vmatpush3.bf16.msra.mxu0 %v7986_v7  ;;  %7512 = vmatprep.subr.mxu1 %v8460_v20 }
  0x73   :  { %7991 = vmatprep.subr.bf16.mxu0 %v7990_v14 }
  0x76   :  { %7993 = vmatpush3.bf16.msra.mxu0 %v7990_v14 }
  0x77   :  { %7995 = vmatprep.subr.bf16.mxu0 %v7994_v19 }
 0x142   :  { %v7468_v22 = vpop.f32.mrb[0].mxu0 }
 0x143   :  { %v218_v23 = vadd.f32 %v7468_v22, %v7049_v21  ;;  %v212_v25 = vpop.f32.mrb[1].mxu0 }
 0x144   :  { %v213_v26 = vadd.f32 %v7049_v21, %v212_v25 }
 0x145   :  { %223 = vst.msk [vmem:[#allocation12 + $0x8] sm:$0xff] %vm221_vm4, %v218_v23 }
 0x146   :  { %228 = vst.msk [vmem:[#allocation12 + $0xe] sm:$0x1] %vm226_vm5, %v225_v24  ;;  %230 = vst.msk [vmem:[#allocation12 + $0xf] sm:$0x1] %vm226_vm5, %v8460_v20 }
 0x147   :  { %222 = vst.msk [vmem:[#allocation12] sm:$0xff] %vm221_vm4, %v213_v26 }
 0x148   :  { %227 = vst.msk [vmem:[#allocation12 + $0x6] sm:$0x1] %vm226_vm5, %v224_v27  ;;  %229 = vst.msk [vmem:[#allocation12 + $0x7] sm:$0x1] %vm226_vm5, %v8460_v20 }
 0x14d   :  { %v238_v32 = vld [vmem:[#allocation12 + $0x8] sm:$0xff] }
 0x14f   :  { %v237_v30 = vld [vmem:[#allocation12] sm:$0xff] }
 0x150   :  { %7477 = vmatprep.mubr.msk.f32.mxu0 %vm221_vm4, %v237_v30  ;;  %7499 = vmatprep.mubr.msk.f32.mxu1 %vm221_vm4, %v237_v30 }
 0x151   :  { %7478 = vmatmul.mubr.msk.f32.vlgmr.msra.gmra.mrb[2].mxu0 %vm221_vm4, %v238_v32  ;;  %7500 = vmatmul.mubr.msk.f32.vlgmr.msra.gmra.mrb[0].mxu1 %vm221_vm4, %v238_v32 }
 0x152   :  { %7997 = vmatpush3.bf16.msra.mxu0 %v7994_v19  ;;  %7488 = vmatprep.mubr.msk.f32.mxu0 %vm221_vm4, %v237_v30 }
 0x153   :  { %7999 = vmatprep.subr.bf16.mxu0 %v7998_v31  ;;  %7514 = vmatprep.mubr.msk.f32.mxu1 %vm8461_vm6, %v8460_v20 }
 0x156   :  { %8001 = vmatpush3.bf16.msra.mxu0 %v7998_v31 }
 0x157   :  { %7502 = vmatprep.subr.mxu0 %v8460_v20 }
 0x159   :  { %7489 = vmatmul.mubr.msk.f32.vlgmr.msra.gmra.mrb[4].mxu0 %vm221_vm4, %v238_v32 }
 0x15a   :  { %7504 = vmatprep.mubr.msk.f32.mxu0 %vm8461_vm6, %v8460_v20 }
 0x224   :  { %v7479_v33 = vpop.f32.mrb[2].mxu0  ;;  %v8720_v34 = vpop.f32.mrb[0].mxu1 }
 0x225   :  { %v315_v35 = vpop.f32.mrb[3].mxu0  ;;  %v8722_v36 = vpop.f32.mrb[1].mxu1  ;;  %v8745_v42 = vmul.f32 0.70710677, %v7479_v33 }
 0x226   :  { %7513 = vmatpush3.msra.mxu1 %v8722_v36  ;;  %v8734_v41 = vmul.f32 0.70710677, %v315_v35 }
 0x227   :  { %7522 = vmatprep.subr.mxu1 %v8460_v20 }
 0x22c   :  { %v7490_v37 = vpop.f32.mrb[4].mxu0 }
 0x22d   :  { %v8726_v38 = vmul.f32 0.70710677, %v7490_v37  ;;  %v396_v39 = vpop.f32.mrb[5].mxu0 }
 0x22e   :  { %v8728_v40 = vmul.f32 0.70710677, %v396_v39 }
 0x22f   :  { %890 = vrot.lane.b32.xlu1 %v8726_v38, %s8462_s0 }
 0x230   :  { %7503 = vmatpush3.xpose.msk.msra.mxu0 %vm486_vm7, %v8728_v40 }
 0x231   :  { %7507 = vmatprep.subr.mxu0 %v8460_v20 }
 0x233   :  { %810 = vrot.lane.b32.xlu1 %v8734_v41, %s8462_s0  ;;  %7505 = vmatmul.mubr.msk.f32.vlgmr.msra.gmra.mrb[6].mxu0 %vm486_vm7, %v8734_v41 }
 0x234   :  { %7508 = vmatpush3.xpose.msk.msra.mxu0 %vm486_vm7, %v8726_v38  ;;  %7509 = vmatprep.mubr.msk.f32.mxu0 %vm8461_vm6, %v8460_v20 }
 0x235   :  { %7517 = vmatprep.subr.mxu0 %v8460_v20 }
 0x237   :  { %7510 = vmatmul.mubr.msk.f32.vlgmr.msra.gmra.mrb[8].mxu0 %vm486_vm7, %v8745_v42 }
 0x238   :  { %7518 = vmatpush3.msra.mxu0 %v8720_v34  ;;  %7519 = vmatprep.mubr.msk.f32.mxu0 %vm8461_vm6, %v8460_v20 }
 0x239   :  { %7527 = vmatprep.subr.mxu0 %v8460_v20 }
 0x2a1   :  { %v891_v1 = vpop.permute.xlu1 %890 }
 0x2a5   :  { %v811_v2 = vpop.permute.xlu1 %810 }
 0x306   :  { %v559_v46 = vpop.f32.mrb[6].mxu0 }
 0x307   :  { %v560_v47 = vadd.f32 %v559_v46, %v8755_v45  ;;  %v7506_v48 = vpop.f32.mrb[7].mxu0 }
 0x309   :  { %v640_v50 = vsel %vm639_vm10, %v560_v47, -inf }
 0x30a   :  { %641 = vmax.xlane.f32.xlu0 %v640_v50  ;;  %v635_v51 = vpop.f32.mrb[8].mxu0 }
 0x30b   :  { %v636_v52 = vadd.f32 %v635_v51, %v8759_v49  ;;  %v7511_v53 = vpop.f32.mrb[9].mxu0 }
 0x30d   :  { %v643_v54 = vsel %vm639_vm10, %v636_v52, -inf }
 0x30e   :  { %644 = vmax.xlane.f32.xlu0 %v643_v54 }
 0x324   :  { %812 = vrot.lane.b32.xlu0 %v8728_v40, %s8462_s0 }
 0x397   :  { %v642_v55 = vpop.xlane.xlu0 %641 }
 0x398   :  { %v646_v56 = vsub.f32 %v560_v47, %v642_v55 }
 0x39a   :  { %v648_v57 = vmul.f32 1.442695, %v646_v56 }
 0x39b   :  { %v645_v58 = vpop.xlane.xlu0 %644 }
 0x39c   :  { %8163 = vpow2.f32 %v648_v57  ;;  %v647_v59 = vsub.f32 %v636_v52, %v645_v58 }
 0x39e   :  { %v650_v60 = vmul.f32 1.442695, %v647_v59 }
 0x39f   :  { %v813_v7 = vpop.permute.xlu0 %812 }
 0x3a0   :  { %8165 = vpow2.f32 %v650_v60 }
 0x3a6   :  { %v8164_v61 = vpop.eup %8163 }
 0x3a7   :  { %v652_v62 = vsel %vm639_vm10, %v8164_v61, 0.0 }
 0x3a8   :  { %653 = vadd.xlane.f32.xlu1 %v652_v62 }
 0x3aa   :  { %v8166_v63 = vpop.eup %8165 }
 0x3ab   :  { %v655_v0 = vsel %vm639_vm10, %v8166_v63, 0.0 }
 0x3ac   :  { %656 = vadd.xlane.f32.xlu1 %v655_v0 }
 0x3bd   :  { %888 = vrot.lane.b32.xlu1 %v8745_v42, %s8462_s0 }
 0x435   :  { %v654_v3 = vpop.xlane.xlu1 %653 }
 0x436   :  { %8167 = vrcp.f32 %v654_v3 }
 0x439   :  { %v657_v4 = vpop.xlane.xlu1 %656 }
 0x43a   :  { %8169 = vrcp.f32 %v657_v4 }
 0x43d   :  { %v889_v10 = vpop.permute.xlu1 %888 }
 0x440   :  { %v8168_v5 = vpop.eup %8167 }
 0x441   :  { %v659_v6 = vmul.f32 %v8168_v5, %v8164_v61 }
 0x443   :  { %7515 = vmatmul.mubr.msk.f32.vlgmr.msra.gmra.mrb[2].mxu1 %vm639_vm10, %v659_v6 }
 0x444   :  { %v8170_v8 = vpop.eup %8169  ;;  %7523 = vmatpush3.xpose.msk.msra.mxu1 %vm486_vm7, %v813_v7  ;;  %7524 = vmatprep.mubr.msk.f32.mxu1 %vm8461_vm6, %v8460_v20 }
 0x445   :  { %v661_v9 = vmul.f32 %v8170_v8, %v8166_v63  ;;  %7532 = vmatprep.subr.mxu1 %v8460_v20 }
 0x447   :  { %7520 = vmatmul.mubr.msk.f32.vlgmr.msra.gmra.mrb[10].mxu0 %vm639_vm10, %v661_v9  ;;  %7525 = vmatmul.mubr.msk.f32.vlgmr.msra.gmra.mrb[4].mxu1 %vm486_vm7, %v811_v2 }
 0x448   :  { %7528 = vmatpush3.xpose.msk.msra.mxu0 %vm486_vm7, %v891_v1  ;;  %7529 = vmatprep.mubr.msk.f32.mxu0 %vm8461_vm6, %v8460_v20 }
 0x449   :  { %7537 = vmatprep.subr.mxu0 %v8460_v20  ;;  %7534 = vmatprep.mubr.msk.f32.mxu1 %vm8461_vm6, %v8460_v20 }
 0x44b   :  { %7530 = vmatmul.mubr.msk.f32.vlgmr.msra.gmra.mrb[12].mxu0 %vm486_vm7, %v889_v10 }
 0x44c   :  { %7539 = vmatprep.mubr.msk.f32.mxu0 %vm8461_vm6, %v8460_v20 }
 0x516   :  { %v731_v11 = vpop.f32.mrb[2].mxu1 }
 0x517   :  { %808 = vst.msk [vmem:[#allocation2] sm:$0xff] %vm486_vm7, %v731_v11  ;;  %v7516_v12 = vpop.f32.mrb[3].mxu1 }
 0x51a   :  { %v804_v13 = vpop.f32.mrb[10].mxu0  ;;  %v884_v14 = vpop.f32.mrb[4].mxu1 }
 0x51b   :  { %809 = vst.msk [vmem:[#allocation2 + $0x8] sm:$0xff] %vm486_vm7, %v804_v13  ;;  %v885_v15 = vadd.f32 %v884_v14, %v8755_v45  ;;  %v7521_v16 = vpop.f32.mrb[11].mxu0  ;;  %v7526_v17 = vpop.f32.mrb[5].mxu1 }
 0x51d   :  { %v966_v18 = vsel %vm639_vm10, %v885_v15, -inf }
 0x51e   :  { %967 = vmax.xlane.f32.xlu0 %v966_v18  ;;  %v962_v19 = vpop.f32.mrb[12].mxu0 }
 0x51f   :  { %v963_v21 = vadd.f32 %v962_v19, %v8759_v49  ;;  %v7531_v22 = vpop.f32.mrb[13].mxu0 }
 0x521   :  { %v969_v23 = vsel %vm639_vm10, %v963_v21, -inf }
 0x522   :  { %970 = vmax.xlane.f32.xlu1 %v969_v23 }
 0x533   :  { %1066 = vrot.lane.b32.xlu1 %v8720_v34, %s8462_s0 }
 0x534   :  { %989 = vrot.lane.b32.xlu0 %v8722_v36, %s8462_s0 }
 0x537   :  { %1155 = vrot.lane.b32.xlu1 %v8728_v40, %s8463_s25 }
 0x53b   :  { %1233 = vrot.lane.b32.xlu1 %v8726_v38, %s8463_s25 }
 0x53f   :  { %1231 = vrot.lane.b32.xlu1 %v8745_v42, %s8463_s25 }
 0x5ab   :  { %v968_v24 = vpop.xlane.xlu0 %967 }
 0x5ac   :  { %v972_v25 = vsub.f32 %v885_v15, %v968_v24 }
 0x5ae   :  { %v974_v26 = vmul.f32 1.442695, %v972_v25 }
 0x5af   :  { %v990_v27 = vpop.permute.xlu0 %989  ;;  %v971_v28 = vpop.xlane.xlu1 %970 }
 0x5b0   :  { %8171 = vpow2.f32 %v974_v26  ;;  %v973_v29 = vsub.f32 %v963_v21, %v971_v28  ;;  %7533 = vmatpush3.msra.mxu1 %v990_v27 }
 0x5b1   :  { %7542 = vmatprep.subr.mxu1 %v8460_v20 }
 0x5b2   :  { %v976_v30 = vmul.f32 1.442695, %v973_v29 }
 0x5b3   :  { %v1067_v31 = vpop.permute.xlu1 %1066 }
 0x5b4   :  { %8173 = vpow2.f32 %v976_v30  ;;  %7538 = vmatpush3.msra.mxu0 %v1067_v31 }
 0x5b5   :  { %7547 = vmatprep.subr.mxu0 %v8460_v20 }
 0x5b7   :  { %v1156_v44 = vpop.permute.xlu1 %1155 }
 0x5ba   :  { %v8172_v32 = vpop.eup %8171 }
 0x5bb   :  { %v978_v33 = vsel %vm639_vm10, %v8172_v32, 0.0  ;;  %v1234_v50 = vpop.permute.xlu1 %1233 }
 0x5bc   :  { %979 = vadd.xlane.f32.xlu0 %v978_v33 }
 0x5be   :  { %v8174_v35 = vpop.eup %8173 }
 0x5bf   :  { %v981_v37 = vsel %vm639_vm10, %v8174_v35, 0.0  ;;  %v1232_v53 = vpop.permute.xlu1 %1231 }
 0x5c0   :  { %982 = vadd.xlane.f32.xlu0 %v981_v37 }
 0x5d6   :  { %1153 = vrot.lane.b32.xlu0 %v8734_v41, %s8463_s25 }
 0x649   :  { %v980_v39 = vpop.xlane.xlu0 %979 }
 0x64a   :  { %8175 = vrcp.f32 %v980_v39 }
 0x64d   :  { %v983_v43 = vpop.xlane.xlu0 %982 }
 0x64e   :  { %8177 = vrcp.f32 %v983_v43 }
 0x651   :  { %v1154_v52 = vpop.permute.xlu0 %1153 }
 0x654   :  { %v8176_v46 = vpop.eup %8175 }
 0x655   :  { %v985_v47 = vmul.f32 %v8176_v46, %v8172_v32 }
 0x657   :  { %7535 = vmatmul.mubr.msk.f32.vlgmr.msra.gmra.mrb[6].mxu1 %vm639_vm10, %v985_v47 }
 0x658   :  { %v8178_v48 = vpop.eup %8177  ;;  %7543 = vmatpush3.xpose.msk.msra.mxu1 %vm486_vm7, %v1156_v44  ;;  %7544 = vmatprep.mubr.msk.f32.mxu1 %vm8461_vm6, %v8460_v20 }
 0x659   :  { %v987_v51 = vmul.f32 %v8178_v48, %v8174_v35  ;;  %7552 = vmatprep.subr.mxu1 %v8460_v20 }
 0x65b   :  { %7540 = vmatmul.mubr.msk.f32.vlgmr.msra.gmra.mrb[14].mxu0 %vm639_vm10, %v987_v51  ;;  %7545 = vmatmul.mubr.msk.f32.vlgmr.msra.gmra.mrb[8].mxu1 %vm486_vm7, %v1154_v52 }
 0x65c   :  { %7548 = vmatpush3.xpose.msk.msra.mxu0 %vm486_vm7, %v1234_v50  ;;  %7549 = vmatprep.mubr.msk.f32.mxu0 %vm8461_vm6, %v8460_v20 }
 0x65d   :  { %7557 = vmatprep.subr.mxu0 %v8460_v20  ;;  %7554 = vmatprep.mubr.msk.f32.mxu1 %vm8461_vm6, %v8460_v20 }
 0x65f   :  { %7550 = vmatmul.mubr.msk.f32.vlgmr.msra.gmra.mrb[16].mxu0 %vm486_vm7, %v1232_v53 }
 0x660   :  { %7559 = vmatprep.mubr.msk.f32.mxu0 %vm8461_vm6, %v8460_v20 }
 0x72a   :  { %v8824_v54 = vpop.f32.mrb[6].mxu1 }
 0x72b   :  { %v7536_v55 = vpop.f32.mrb[7].mxu1 }
 0x72e   :  { %v8826_v56 = vpop.f32.mrb[14].mxu0  ;;  %v1227_v57 = vpop.f32.mrb[8].mxu1 }
 0x72f   :  { %v1228_v58 = vadd.f32 %v1227_v57, %v8755_v45  ;;  %v7541_v59 = vpop.f32.mrb[15].mxu0  ;;  %v7546_v60 = vpop.f32.mrb[9].mxu1 }
 0x731   :  { %v1309_v61 = vsel %vm639_vm10, %v1228_v58, -inf }
 0x732   :  { %1310 = vmax.xlane.f32.xlu0 %v1309_v61  ;;  %v1305_v62 = vpop.f32.mrb[16].mxu0 }
 0x733   :  { %v1306_v63 = vadd.f32 %v1305_v62, %v8759_v49  ;;  %v7551_v0 = vpop.f32.mrb[17].mxu0 }
 0x735   :  { %v1312_v1 = vsel %vm639_vm10, %v1306_v63, -inf }
 0x736   :  { %1313 = vmax.xlane.f32.xlu1 %v1312_v1 }
 0x747   :  { %1407 = vrot.lane.b32.xlu1 %v8720_v34, %s8463_s25 }
 0x748   :  { %1331 = vrot.lane.b32.xlu0 %v8722_v36, %s8463_s25 }
 0x74b   :  { %1496 = vrot.lane.b32.xlu1 %v8728_v40, %s8464_s29 }
 0x74f   :  { %1574 = vrot.lane.b32.xlu1 %v8726_v38, %s8464_s29 }
 0x753   :  { %1572 = vrot.lane.b32.xlu1 %v8745_v42, %s8464_s29 }
 0x7bf   :  { %v1311_v2 = vpop.xlane.xlu0 %1310 }
 0x7c0   :  { %v1315_v3 = vsub.f32 %v1228_v58, %v1311_v2 }
 0x7c2   :  { %v1317_v4 = vmul.f32 1.442695, %v1315_v3 }
 0x7c3   :  { %v1332_v5 = vpop.permute.xlu0 %1331  ;;  %v1314_v6 = vpop.xlane.xlu1 %1313 }
 0x7c4   :  { %8179 = vpow2.f32 %v1317_v4  ;;  %v1316_v7 = vsub.f32 %v1306_v63, %v1314_v6  ;;  %7553 = vmatpush3.msra.mxu1 %v1332_v5 }
 0x7c5   :  { %7562 = vmatprep.subr.mxu1 %v8460_v20 }
 0x7c6   :  { %v1319_v8 = vmul.f32 1.442695, %v1316_v7 }
 0x7c7   :  { %v1408_v9 = vpop.permute.xlu1 %1407 }
 0x7c8   :  { %8181 = vpow2.f32 %v1319_v8  ;;  %7558 = vmatpush3.msra.mxu0 %v1408_v9 }
 0x7c9   :  { %7567 = vmatprep.subr.mxu0 %v8460_v20 }
 0x7cb   :  { %v1497_v16 = vpop.permute.xlu1 %1496 }
 0x7ce   :  { %v8180_v10 = vpop.eup %8179 }
 0x7cf   :  { %v1321_v11 = vsel %vm639_vm10, %v8180_v10, 0.0  ;;  %v1575_v21 = vpop.permute.xlu1 %1574 }
 0x7d0   :  { %1322 = vadd.xlane.f32.xlu0 %v1321_v11 }
 0x7d2   :  { %v8182_v12 = vpop.eup %8181 }
 0x7d3   :  { %v1324_v13 = vsel %vm639_vm10, %v8182_v12, 0.0  ;;  %v1573_v24 = vpop.permute.xlu1 %1572 }
 0x7d4   :  { %1325 = vadd.xlane.f32.xlu0 %v1324_v13 }
 0x7ea   :  { %1494 = vrot.lane.b32.xlu0 %v8734_v41, %s8464_s29 }
 0x85d   :  { %v1323_v14 = vpop.xlane.xlu0 %1322 }
 0x85e   :  { %8183 = vrcp.f32 %v1323_v14 }
 0x861   :  { %v1326_v15 = vpop.xlane.xlu0 %1325 }
 0x862   :  { %8185 = vrcp.f32 %v1326_v15 }
 0x865   :  { %v1495_v23 = vpop.permute.xlu0 %1494 }
 0x868   :  { %v8184_v17 = vpop.eup %8183 }
 0x869   :  { %v1328_v18 = vmul.f32 %v8184_v17, %v8180_v10 }
 0x86b   :  { %7555 = vmatmul.mubr.msk.f32.vlgmr.msra.gmra.mrb[10].mxu1 %vm639_vm10, %v1328_v18 }
 0x86c   :  { %v8186_v19 = vpop.eup %8185  ;;  %7563 = vmatpush3.xpose.msk.msra.mxu1 %vm486_vm7, %v1497_v16  ;;  %7564 = vmatprep.mubr.msk.f32.mxu1 %vm8461_vm6, %v8460_v20 }
 0x86d   :  { %v1330_v22 = vmul.f32 %v8186_v19, %v8182_v12  ;;  %7572 = vmatprep.subr.mxu1 %v8460_v20 }
 0x86f   :  { %7560 = vmatmul.mubr.msk.f32.vlgmr.msra.gmra.mrb[18].mxu0 %vm639_vm10, %v1330_v22  ;;  %7565 = vmatmul.mubr.msk.f32.vlgmr.msra.gmra.mrb[12].mxu1 %vm486_vm7, %v1495_v23 }
 0x870   :  { %7568 = vmatpush3.xpose.msk.msra.mxu0 %vm486_vm7, %v1575_v21  ;;  %7569 = vmatprep.mubr.msk.f32.mxu0 %vm8461_vm6, %v8460_v20 }
 0x871   :  { %7577 = vmatprep.subr.mxu0 %v8460_v20  ;;  %7574 = vmatprep.mubr.msk.f32.mxu1 %vm8461_vm6, %v8460_v20 }
 0x873   :  { %7570 = vmatmul.mubr.msk.f32.vlgmr.msra.gmra.mrb[20].mxu0 %vm486_vm7, %v1573_v24 }
 0x874   :  { %7579 = vmatprep.mubr.msk.f32.mxu0 %vm8461_vm6, %v8460_v20 }
 0x93e   :  { %v8864_v25 = vpop.f32.mrb[10].mxu1 }
 0x93f   :  { %v7556_v26 = vpop.f32.mrb[11].mxu1 }
 0x942   :  { %v8866_v27 = vpop.f32.mrb[18].mxu0  ;;  %v1568_v28 = vpop.f32.mrb[12].mxu1 }
 0x943   :  { %v1569_v29 = vadd.f32 %v1568_v28, %v8755_v45  ;;  %v7561_v30 = vpop.f32.mrb[19].mxu0  ;;  %v7566_v31 = vpop.f32.mrb[13].mxu1 }
 0x945   :  { %v1650_v32 = vsel %vm639_vm10, %v1569_v29, -inf }
 0x946   :  { %1651 = vmax.xlane.f32.xlu0 %v1650_v32  ;;  %v1646_v33 = vpop.f32.mrb[20].mxu0 }
 0x947   :  { %v1647_v35 = vadd.f32 %v1646_v33, %v8759_v49  ;;  %v7571_v37 = vpop.f32.mrb[21].mxu0 }
 0x949   :  { %v1653_v39 = vsel %vm639_vm10, %v1647_v35, -inf }
 0x94a   :  { %1654 = vmax.xlane.f32.xlu1 %v1653_v39 }
 0x95b   :  { %1748 = vrot.lane.b32.xlu1 %v8720_v34, %s8464_s29 }
 0x95c   :  { %1672 = vrot.lane.b32.xlu0 %v8722_v36, %s8464_s29 }
 0x95f   :  { %1837 = vrot.lane.b32.xlu1 %v8728_v40, %s8465_s2 }
 0x963   :  { %1915 = vrot.lane.b32.xlu1 %v8726_v38, %s8465_s2 }
 0x967   :  { %1913 = vrot.lane.b32.xlu1 %v8745_v42, %s8465_s2 }
 0x9d3   :  { %v1652_v43 = vpop.xlane.xlu0 %1651 }
 0x9d4   :  { %v1656_v44 = vsub.f32 %v1569_v29, %v1652_v43 }
 0x9d6   :  { %v1658_v46 = vmul.f32 1.442695, %v1656_v44 }
 0x9d7   :  { %v1673_v47 = vpop.permute.xlu0 %1672  ;;  %v1655_v48 = vpop.xlane.xlu1 %1654 }
 0x9d8   :  { %8187 = vpow2.f32 %v1658_v46  ;;  %v1657_v50 = vsub.f32 %v1647_v35, %v1655_v48  ;;  %7573 = vmatpush3.msra.mxu1 %v1673_v47 }
 0x9d9   :  { %7582 = vmatprep.subr.mxu1 %v8460_v20 }
 0x9da   :  { %v1660_v51 = vmul.f32 1.442695, %v1657_v50 }
 0x9db   :  { %v1749_v52 = vpop.permute.xlu1 %1748 }
 0x9dc   :  { %8189 = vpow2.f32 %v1660_v51  ;;  %7578 = vmatpush3.msra.mxu0 %v1749_v52 }
 0x9dd   :  { %7587 = vmatprep.subr.mxu0 %v8460_v20 }
 0x9df   :  { %v1838_v61 = vpop.permute.xlu1 %1837 }
 0x9e2   :  { %v8188_v53 = vpop.eup %8187 }
 0x9e3   :  { %v1662_v55 = vsel %vm639_vm10, %v8188_v53, 0.0  ;;  %v1916_v1 = vpop.permute.xlu1 %1915 }
 0x9e4   :  { %1663 = vadd.xlane.f32.xlu0 %v1662_v55 }
 0x9e6   :  { %v8190_v57 = vpop.eup %8189 }
 0x9e7   :  { %v1665_v58 = vsel %vm639_vm10, %v8190_v57, 0.0  ;;  %v1914_v4 = vpop.permute.xlu1 %1913 }
 0x9e8   :  { %1666 = vadd.xlane.f32.xlu0 %v1665_v58 }
 0x9fe   :  { %1835 = vrot.lane.b32.xlu0 %v8734_v41, %s8465_s2 }
 0xa71   :  { %v1664_v59 = vpop.xlane.xlu0 %1663 }
 0xa72   :  { %8191 = vrcp.f32 %v1664_v59 }
 0xa75   :  { %v1667_v60 = vpop.xlane.xlu0 %1666 }
 0xa76   :  { %8193 = vrcp.f32 %v1667_v60 }
 0xa79   :  { %v1836_v3 = vpop.permute.xlu0 %1835 }
 0xa7c   :  { %v8192_v62 = vpop.eup %8191 }
 0xa7d   :  { %v1669_v63 = vmul.f32 %v8192_v62, %v8188_v53 }
 0xa7f   :  { %7575 = vmatmul.mubr.msk.f32.vlgmr.msra.gmra.mrb[14].mxu1 %vm639_vm10, %v1669_v63 }
 0xa80   :  { %v8194_v0 = vpop.eup %8193  ;;  %7583 = vmatpush3.xpose.msk.msra.mxu1 %vm486_vm7, %v1838_v61  ;;  %7584 = vmatprep.mubr.msk.f32.mxu1 %vm8461_vm6, %v8460_v20 }
 0xa81   :  { %v1671_v2 = vmul.f32 %v8194_v0, %v8190_v57  ;;  %7592 = vmatprep.subr.mxu1 %v8460_v20 }
 0xa83   :  { %7580 = vmatmul.mubr.msk.f32.vlgmr.msra.gmra.mrb[22].mxu0 %vm639_vm10, %v1671_v2  ;;  %7585 = vmatmul.mubr.msk.f32.vlgmr.msra.gmra.mrb[16].mxu1 %vm486_vm7, %v1836_v3 }
 0xa84   :  { %7588 = vmatpush3.xpose.msk.msra.mxu0 %vm486_vm7, %v1916_v1  ;;  %7589 = vmatprep.mubr.msk.f32.mxu0 %vm8461_vm6, %v8460_v20 }
 0xa85   :  { %7597 = vmatprep.subr.mxu0 %v8460_v20  ;;  %7594 = vmatprep.mubr.msk.f32.mxu1 %vm8461_vm6, %v8460_v20 }
 0xa87   :  { %7590 = vmatmul.mubr.msk.f32.vlgmr.msra.gmra.mrb[24].mxu0 %vm486_vm7, %v1914_v4 }
 0xa88   :  { %7599 = vmatprep.mubr.msk.f32.mxu0 %vm8461_vm6, %v8460_v20 }
 0xb52   :  { %v8904_v5 = vpop.f32.mrb[14].mxu1 }
 0xb53   :  { %v7576_v6 = vpop.f32.mrb[15].mxu1 }
 0xb56   :  { %v8906_v7 = vpop.f32.mrb[22].mxu0  ;;  %v1909_v8 = vpop.f32.mrb[16].mxu1 }
 0xb57   :  { %v1910_v9 = vadd.f32 %v1909_v8, %v8755_v45  ;;  %v7581_v10 = vpop.f32.mrb[23].mxu0  ;;  %v7586_v11 = vpop.f32.mrb[17].mxu1 }
 0xb59   :  { %v1991_v12 = vsel %vm639_vm10, %v1910_v9, -inf }
 0xb5a   :  { %1992 = vmax.xlane.f32.xlu0 %v1991_v12  ;;  %v1987_v13 = vpop.f32.mrb[24].mxu0 }
 0xb5b   :  { %v1988_v14 = vadd.f32 %v1987_v13, %v8759_v49  ;;  %v7591_v15 = vpop.f32.mrb[25].mxu0 }
 0xb5d   :  { %v1994_v16 = vsel %vm639_vm10, %v1988_v14, -inf }
 0xb5e   :  { %1995 = vmax.xlane.f32.xlu1 %v1994_v16 }
 0xb6f   :  { %2089 = vrot.lane.b32.xlu1 %v8720_v34, %s8465_s2 }
 0xb70   :  { %2013 = vrot.lane.b32.xlu0 %v8722_v36, %s8465_s2 }
 0xb73   :  { %2178 = vrot.lane.b32.xlu1 %v8728_v40, %s8466_s19 }
 0xb77   :  { %2256 = vrot.lane.b32.xlu1 %v8726_v38, %s8466_s19 }
 0xb7b   :  { %2254 = vrot.lane.b32.xlu1 %v8745_v42, %s8466_s19 }
 0xbe7   :  { %v1993_v17 = vpop.xlane.xlu0 %1992 }
 0xbe8   :  { %v1997_v18 = vsub.f32 %v1910_v9, %v1993_v17 }
 0xbea   :  { %v1999_v19 = vmul.f32 1.442695, %v1997_v18 }
 0xbeb   :  { %v2014_v21 = vpop.permute.xlu0 %2013  ;;  %v1996_v22 = vpop.xlane.xlu1 %1995 }
 0xbec   :  { %8195 = vpow2.f32 %v1999_v19  ;;  %v1998_v23 = vsub.f32 %v1988_v14, %v1996_v22  ;;  %7593 = vmatpush3.msra.mxu1 %v2014_v21 }
 0xbed   :  { %7602 = vmatprep.subr.mxu1 %v8460_v20 }
 0xbee   :  { %v2001_v24 = vmul.f32 1.442695, %v1998_v23 }
 0xbef   :  { %v2090_v26 = vpop.permute.xlu1 %2089 }
 0xbf0   :  { %8197 = vpow2.f32 %v2001_v24  ;;  %7598 = vmatpush3.msra.mxu0 %v2090_v26 }
 0xbf1   :  { %7607 = vmatprep.subr.mxu0 %v8460_v20 }
 0xbf3   :  { %v2179_v35 = vpop.permute.xlu1 %2178 }
 0xbf6   :  { %v8196_v28 = vpop.eup %8195 }
 0xbf7   :  { %v2003_v29 = vsel %vm639_vm10, %v8196_v28, 0.0  ;;  %v2257_v44 = vpop.permute.xlu1 %2256 }
 0xbf8   :  { %2004 = vadd.xlane.f32.xlu0 %v2003_v29 }
 0xbfa   :  { %v8198_v30 = vpop.eup %8197 }
 0xbfb   :  { %v2006_v31 = vsel %vm639_vm10, %v8198_v30, 0.0  ;;  %v2255_v48 = vpop.permute.xlu1 %2254 }
 0xbfc   :  { %2007 = vadd.xlane.f32.xlu0 %v2006_v31 }
 0xc12   :  { %2176 = vrot.lane.b32.xlu0 %v8734_v41, %s8466_s19 }
 0xc85   :  { %v2005_v32 = vpop.xlane.xlu0 %2004 }
 0xc86   :  { %8199 = vrcp.f32 %v2005_v32 }
 0xc89   :  { %v2008_v33 = vpop.xlane.xlu0 %2007 }
 0xc8a   :  { %8201 = vrcp.f32 %v2008_v33 }
 0xc8d   :  { %v2177_v47 = vpop.permute.xlu0 %2176 }
 0xc90   :  { %v8200_v37 = vpop.eup %8199 }
 0xc91   :  { %v2010_v39 = vmul.f32 %v8200_v37, %v8196_v28 }
 0xc93   :  { %7595 = vmatmul.mubr.msk.f32.vlgmr.msra.gmra.mrb[18].mxu1 %vm639_vm10, %v2010_v39 }
 0xc94   :  { %v8202_v43 = vpop.eup %8201  ;;  %7603 = vmatpush3.xpose.msk.msra.mxu1 %vm486_vm7, %v2179_v35  ;;  %7604 = vmatprep.mubr.msk.f32.mxu1 %vm8461_vm6, %v8460_v20 }
 0xc95   :  { %v2012_v46 = vmul.f32 %v8202_v43, %v8198_v30  ;;  %7612 = vmatprep.subr.mxu1 %v8460_v20 }
 0xc97   :  { %7600 = vmatmul.mubr.msk.f32.vlgmr.msra.gmra.mrb[26].mxu0 %vm639_vm10, %v2012_v46  ;;  %7605 = vmatmul.mubr.msk.f32.vlgmr.msra.gmra.mrb[20].mxu1 %vm486_vm7, %v2177_v47 }
 0xc98   :  { %7608 = vmatpush3.xpose.msk.msra.mxu0 %vm486_vm7, %v2257_v44  ;;  %7609 = vmatprep.mubr.msk.f32.mxu0 %vm8461_vm6, %v8460_v20 }
 0xc99   :  { %7617 = vmatprep.subr.mxu0 %v8460_v20  ;;  %7614 = vmatprep.mubr.msk.f32.mxu1 %vm8461_vm6, %v8460_v20 }
 0xc9b   :  { %7610 = vmatmul.mubr.msk.f32.vlgmr.msra.gmra.mrb[28].mxu0 %vm486_vm7, %v2255_v48 }
 0xc9c   :  { %7619 = vmatprep.mubr.msk.f32.mxu0 %vm8461_vm6, %v8460_v20 }
 0xd66   :  { %v8944_v50 = vpop.f32.mrb[18].mxu1 }
 0xd67   :  { %v7596_v51 = vpop.f32.mrb[19].mxu1 }
 0xd6a   :  { %v8946_v52 = vpop.f32.mrb[26].mxu0  ;;  %v2250_v53 = vpop.f32.mrb[20].mxu1 }
 0xd6b   :  { %v2251_v55 = vadd.f32 %v2250_v53, %v8755_v45  ;;  %v7601_v57 = vpop.f32.mrb[27].mxu0  ;;  %v7606_v58 = vpop.f32.mrb[21].mxu1 }
 0xd6d   :  { %v2332_v59 = vsel %vm639_vm10, %v2251_v55, -inf }
 0xd6e   :  { %2333 = vmax.xlane.f32.xlu0 %v2332_v59  ;;  %v2328_v60 = vpop.f32.mrb[28].mxu0 }
 0xd6f   :  { %v2329_v61 = vadd.f32 %v2328_v60, %v8759_v49  ;;  %v7611_v62 = vpop.f32.mrb[29].mxu0 }
 0xd71   :  { %v2335_v63 = vsel %vm639_vm10, %v2329_v61, -inf }
 0xd72   :  { %2336 = vmax.xlane.f32.xlu1 %v2335_v63 }
 0xd83   :  { %2430 = vrot.lane.b32.xlu1 %v8720_v34, %s8466_s19 }
 0xd84   :  { %2354 = vrot.lane.b32.xlu0 %v8722_v36, %s8466_s19 }
 0xd87   :  { %2519 = vrot.lane.b32.xlu1 %v8728_v40, %s8467_s21 }
 0xd8b   :  { %2597 = vrot.lane.b32.xlu1 %v8726_v38, %s8467_s21 }
 0xd8f   :  { %2595 = vrot.lane.b32.xlu1 %v8745_v42, %s8467_s21 }
 0xdfb   :  { %v2334_v0 = vpop.xlane.xlu0 %2333 }
 0xdfc   :  { %v2338_v1 = vsub.f32 %v2251_v55, %v2334_v0 }
 0xdfe   :  { %v2340_v2 = vmul.f32 1.442695, %v2338_v1 }
 0xdff   :  { %v2355_v3 = vpop.permute.xlu0 %2354  ;;  %v2337_v4 = vpop.xlane.xlu1 %2336 }
 0xe00   :  { %8203 = vpow2.f32 %v2340_v2  ;;  %v2339_v6 = vsub.f32 %v2329_v61, %v2337_v4  ;;  %7613 = vmatpush3.msra.mxu1 %v2355_v3 }
 0xe01   :  { %7622 = vmatprep.subr.mxu1 %v8460_v20 }
 0xe02   :  { %v2342_v8 = vmul.f32 1.442695, %v2339_v6 }
 0xe03   :  { %v2431_v9 = vpop.permute.xlu1 %2430 }
 0xe04   :  { %8205 = vpow2.f32 %v2342_v8  ;;  %7618 = vmatpush3.msra.mxu0 %v2431_v9 }
 0xe05   :  { %7627 = vmatprep.subr.mxu0 %v8460_v20 }
 0xe07   :  { %v2520_v16 = vpop.permute.xlu1 %2519 }
 0xe0a   :  { %v8204_v10 = vpop.eup %8203 }
 0xe0b   :  { %v2344_v11 = vsel %vm639_vm10, %v8204_v10, 0.0  ;;  %v2598_v21 = vpop.permute.xlu1 %2597 }
 0xe0c   :  { %2345 = vadd.xlane.f32.xlu0 %v2344_v11 }
 0xe0e   :  { %v8206_v12 = vpop.eup %8205 }
 0xe0f   :  { %v2347_v13 = vsel %vm639_vm10, %v8206_v12, 0.0  ;;  %v2596_v24 = vpop.permute.xlu1 %2595 }
 0xe10   :  { %2348 = vadd.xlane.f32.xlu0 %v2347_v13 }
 0xe26   :  { %2517 = vrot.lane.b32.xlu0 %v8734_v41, %s8467_s21 }
 0xe99   :  { %v2346_v14 = vpop.xlane.xlu0 %2345 }
 0xe9a   :  { %8207 = vrcp.f32 %v2346_v14 }
 0xe9d   :  { %v2349_v15 = vpop.xlane.xlu0 %2348 }
 0xe9e   :  { %8209 = vrcp.f32 %v2349_v15 }
 0xea1   :  { %v2518_v23 = vpop.permute.xlu0 %2517 }
 0xea4   :  { %v8208_v17 = vpop.eup %8207 }
 0xea5   :  { %v2351_v18 = vmul.f32 %v8208_v17, %v8204_v10 }
 0xea7   :  { %7615 = vmatmul.mubr.msk.f32.vlgmr.msra.gmra.mrb[22].mxu1 %vm639_vm10, %v2351_v18 }
 0xea8   :  { %v8210_v19 = vpop.eup %8209  ;;  %7623 = vmatpush3.xpose.msk.msra.mxu1 %vm486_vm7, %v2520_v16  ;;  %7624 = vmatprep.mubr.msk.f32.mxu1 %vm8461_vm6, %v8460_v20 }
 0xea9   :  { %v2353_v22 = vmul.f32 %v8210_v19, %v8206_v12  ;;  %7632 = vmatprep.subr.mxu1 %v8460_v20 }
 0xeab   :  { %7620 = vmatmul.mubr.msk.f32.vlgmr.msra.gmra.mrb[30].mxu0 %vm639_vm10, %v2353_v22  ;;  %7625 = vmatmul.mubr.msk.f32.vlgmr.msra.gmra.mrb[24].mxu1 %vm486_vm7, %v2518_v23 }
 0xeac   :  { %7628 = vmatpush3.xpose.msk.msra.mxu0 %vm486_vm7, %v2598_v21  ;;  %7629 = vmatprep.mubr.msk.f32.mxu0 %vm8461_vm6, %v8460_v20 }
 0xead   :  { %7637 = vmatprep.subr.mxu0 %v8460_v20  ;;  %7634 = vmatprep.mubr.msk.f32.mxu1 %vm8461_vm6, %v8460_v20 }
 0xeaf   :  { %7630 = vmatmul.mubr.msk.f32.vlgmr.msra.gmra.mrb[32].mxu0 %vm486_vm7, %v2596_v24 }
 0xeb0   :  { %7639 = vmatprep.mubr.msk.f32.mxu0 %vm8461_vm6, %v8460_v20 }
 0xf7a   :  { %v8984_v26 = vpop.f32.mrb[22].mxu1 }
 0xf7b   :  { %v7616_v28 = vpop.f32.mrb[23].mxu1 }
 0xf7e   :  { %v8986_v29 = vpop.f32.mrb[30].mxu0  ;;  %v2591_v30 = vpop.f32.mrb[24].mxu1 }
 0xf7f   :  { %v2592_v31 = vadd.f32 %v2591_v30, %v8755_v45  ;;  %v7621_v32 = vpop.f32.mrb[31].mxu0  ;;  %v7626_v33 = vpop.f32.mrb[25].mxu1 }
 0xf81   :  { %v2673_v35 = vsel %vm639_vm10, %v2592_v31, -inf }
 0xf82   :  { %2674 = vmax.xlane.f32.xlu0 %v2673_v35  ;;  %v2669_v37 = vpop.f32.mrb[32].mxu0 }
 0xf83   :  { %v2670_v39 = vadd.f32 %v2669_v37, %v8759_v49  ;;  %v7631_v43 = vpop.f32.mrb[33].mxu0 }
 0xf85   :  { %v2676_v44 = vsel %vm639_vm10, %v2670_v39, -inf }
 0xf86   :  { %2677 = vmax.xlane.f32.xlu1 %v2676_v44 }
 0xf97   :  { %2771 = vrot.lane.b32.xlu1 %v8720_v34, %s8467_s21 }
 0xf98   :  { %2695 = vrot.lane.b32.xlu0 %v8722_v36, %s8467_s21 }
 0xf9b   :  { %2860 = vrot.lane.b32.xlu1 %v8728_v40, %s8468_s3 }
 0xf9f   :  { %2938 = vrot.lane.b32.xlu1 %v8726_v38, %s8468_s3 }
 0xfa3   :  { %2936 = vrot.lane.b32.xlu1 %v8745_v42, %s8468_s3 }
0x100f   :  { %v2675_v46 = vpop.xlane.xlu0 %2674 }
0x1010   :  { %v2679_v47 = vsub.f32 %v2592_v31, %v2675_v46 }
0x1012   :  { %v2681_v48 = vmul.f32 1.442695, %v2679_v47 }
0x1013   :  { %v2696_v51 = vpop.permute.xlu0 %2695  ;;  %v2678_v53 = vpop.xlane.xlu1 %2677 }
0x1014   :  { %8211 = vpow2.f32 %v2681_v48  ;;  %v2680_v55 = vsub.f32 %v2670_v39, %v2678_v53  ;;  %7633 = vmatpush3.msra.mxu1 %v2696_v51  ;;  %v3201_v51 = vld [vmem:[%s9754_s8] sm:$0xff]  ;;  %v3202_v53 = vld [vmem:[%s9754_s8 + $0x8] sm:$0xff] }
0x1015   :  { %7642 = vmatprep.subr.mxu1 %v8460_v20 }
0x1016   :  { %v2683_v57 = vmul.f32 1.442695, %v2680_v55  ;;  %v8010_v55 = vpack.c.bf16 %v3202_v53, %v3201_v51 }
0x1017   :  { %v2772_v58 = vpop.permute.xlu1 %2771 }
0x1018   :  { %8213 = vpow2.f32 %v2683_v57  ;;  %7638 = vmatpush3.msra.mxu0 %v2772_v58  ;;  %v3203_v57 = vld [vmem:[%s9754_s8 + $0x10] sm:$0xff]  ;;  %v3204_v58 = vld [vmem:[%s9754_s8 + $0x18] sm:$0xff] }
0x1019   :  { %7647 = vmatprep.subr.mxu0 %v8460_v20 }
0x101b   :  { %v2861_v62 = vpop.permute.xlu1 %2860 }
0x101e   :  { %v8212_v38 = vpop.eup %8211 }
0x101f   :  { %v2685_v40 = vsel %vm639_vm10, %v8212_v38, 0.0  ;;  %v2939_v2 = vpop.permute.xlu1 %2938 }
0x1020   :  { %2686 = vadd.xlane.f32.xlu0 %v2685_v40 }
0x1022   :  { %v8214_v42 = vpop.eup %8213 }
0x1023   :  { %v2688_v59 = vsel %vm639_vm10, %v8214_v42, 0.0  ;;  %v2937_v4 = vpop.permute.xlu1 %2936 }
0x1024   :  { %2689 = vadd.xlane.f32.xlu0 %v2688_v59 }
0x103a   :  { %2858 = vrot.lane.b32.xlu0 %v8734_v41, %s8468_s3 }
0x10ad   :  { %v2687_v60 = vpop.xlane.xlu0 %2686 }
0x10ae   :  { %8215 = vrcp.f32 %v2687_v60 }
0x10b1   :  { %v2690_v61 = vpop.xlane.xlu0 %2689 }
0x10b2   :  { %8217 = vrcp.f32 %v2690_v61 }
0x10b5   :  { %v2859_v41 = vpop.permute.xlu0 %2858 }
0x10b8   :  { %v8216_v63 = vpop.eup %8215 }
0x10b9   :  { %v2692_v0 = vmul.f32 %v8216_v63, %v8212_v38  ;;  %v8014_v38 = vpack.c.bf16 %v3204_v58, %v3203_v57 }
0x10bb   :  { %7635 = vmatmul.mubr.msk.f32.vlgmr.msra.gmra.mrb[26].mxu1 %vm639_vm10, %v2692_v0 }
0x10bc   :  { %v8218_v1 = vpop.eup %8217  ;;  %7643 = vmatpush3.xpose.msk.msra.mxu1 %vm486_vm7, %v2861_v62  ;;  %7644 = vmatprep.mubr.msk.f32.mxu1 %vm8461_vm6, %v8460_v20 }
0x10bd   :  { %v2694_v3 = vmul.f32 %v8218_v1, %v8214_v42  ;;  %7652 = vmatprep.subr.mxu1 %v8460_v20  ;;  %v7107_v1 = vld [vmem:[%s9755_s9] ss:$0 sm:$0xff] }
0x10bf   :  { %7640 = vmatmul.mubr.msk.f32.vlgmr.msra.gmra.mrb[34].mxu0 %vm639_vm10, %v2694_v3  ;;  %7645 = vmatmul.mubr.msk.f32.vlgmr.msra.gmra.mrb[28].mxu1 %vm486_vm7, %v2859_v41 }
0x10c0   :  { %7648 = vmatpush3.xpose.msk.msra.mxu0 %vm486_vm7, %v2939_v2  ;;  %7649 = vmatprep.mubr.msk.f32.mxu0 %vm8461_vm6, %v8460_v20 }
0x10c1   :  { %7657 = vmatprep.subr.mxu0 %v8460_v20  ;;  %7654 = vmatprep.mubr.msk.f32.mxu1 %vm8461_vm6, %v8460_v20 }
0x10c3   :  { %7650 = vmatmul.mubr.msk.f32.vlgmr.msra.gmra.mrb[36].mxu0 %vm486_vm7, %v2937_v4 }
0x10c4   :  { %7659 = vmatprep.mubr.msk.f32.mxu0 %vm8461_vm6, %v8460_v20 }
0x118e   :  { %v9024_v6 = vpop.f32.mrb[26].mxu1 }
0x118f   :  { %v7636_v8 = vpop.f32.mrb[27].mxu1 }
0x1192   :  { %v2843_v9 = vpop.f32.mrb[34].mxu0  ;;  %v2932_v10 = vpop.f32.mrb[28].mxu1 }
0x1193   :  { %v2933_v11 = vadd.f32 %v2932_v10, %v8755_v45  ;;  %v7641_v12 = vpop.f32.mrb[35].mxu0  ;;  %v7646_v13 = vpop.f32.mrb[29].mxu1 }
0x1195   :  { %v3014_v14 = vsel %vm639_vm10, %v2933_v11, -inf }
0x1196   :  { %3015 = vmax.xlane.f32.xlu0 %v3014_v14  ;;  %v3010_v15 = vpop.f32.mrb[36].mxu0 }
0x1197   :  { %v3011_v16 = vadd.f32 %v3010_v15, %v8759_v49  ;;  %v7651_v17 = vpop.f32.mrb[37].mxu0 }
0x1199   :  { %v3017_v18 = vsel %vm639_vm10, %v3011_v16, -inf }
0x119a   :  { %3018 = vmax.xlane.f32.xlu1 %v3017_v18 }
0x11ab   :  { %3112 = vrot.lane.b32.xlu1 %v8720_v34, %s8468_s3 }
0x11af   :  { %1144 = vrot.lane.b32.xlu1 %v8824_v54, %s8469_s4 }
0x11b3   :  { %1146 = vrot.lane.b32.xlu1 %v8826_v56, %s8469_s4 }
0x11b7   :  { %1487 = vrot.lane.b32.xlu1 %v8866_v27, %s9787_s24 }
0x11bb   :  { %1828 = vrot.lane.b32.xlu1 %v8906_v7, %s9785_s20 }
0x11bf   :  { %2169 = vrot.lane.b32.xlu1 %v8946_v52, %s9781_s26 }
0x11c3   :  { %2510 = vrot.lane.b32.xlu1 %v8986_v29, %s9779_s5 }
0x11c7   :  { %2851 = vrot.lane.b32.xlu1 %v2843_v9, %s9777_s30  ;;  %v8308_v9 = vld [vmem:[#allocation12] sm:$0xff] }
0x1223   :  { %v3016_v34 = vpop.xlane.xlu0 %3015 }
0x1224   :  { %v3020_v54 = vsub.f32 %v2933_v11, %v3016_v34 }
0x1226   :  { %v3022_v56 = vmul.f32 1.442695, %v3020_v54 }
0x1227   :  { %v3019_v19 = vpop.xlane.xlu1 %3018 }
0x1228   :  { %8219 = vpow2.f32 %v3022_v56  ;;  %v3021_v27 = vsub.f32 %v3011_v16, %v3019_v19 }
0x122a   :  { %v3024_v21 = vmul.f32 1.442695, %v3021_v27  ;;  %v3340_v27 = vld [vmem:[%s9758_s12] sm:$0xff] }
0x122b   :  { %v3113_v22 = vpop.permute.xlu1 %3112 }
0x122c   :  { %8221 = vpow2.f32 %v3024_v21  ;;  %7658 = vmatpush3.msra.mxu0 %v3113_v22  ;;  %v3341_v21 = vld [vmem:[%s9758_s12 + $0x8] sm:$0xff]  ;;  %v3342_v22 = vld [vmem:[%s9758_s12 + $0x10] sm:$0xff] }
0x122f   :  { %v1145_v7 = vpop.permute.xlu1 %1144 }
0x1230   :  { %1151 = vst.msk [vmem:[#allocation2] sm:$0xff] %vm1150_vm11, %v1145_v7  ;;  %v8018_v7 = vpack.c.bf16 %v3341_v21, %v3340_v27 }
0x1232   :  { %v8220_v52 = vpop.eup %8219  ;;  %8019 = vmatprep.subr.bf16.mxu0 %v8018_v7 }
0x1233   :  { %v1147_v23 = vpop.permute.xlu1 %1146  ;;  %v3026_v24 = vsel %vm639_vm10, %v8220_v52, 0.0 }
0x1234   :  { %1152 = vst.msk [vmem:[#allocation2 + $0x8] sm:$0xff] %vm1150_vm11, %v1147_v23  ;;  %3027 = vadd.xlane.f32.xlu0 %v3026_v24  ;;  %v3434_v24 = vld [vmem:[%s9760_s14] sm:$0xff] }
0x1236   :  { %v8222_v28 = vpop.eup %8221 }
0x1237   :  { %v1488_v29 = vpop.permute.xlu1 %1487  ;;  %v3029_v30 = vsel %vm639_vm10, %v8222_v28, 0.0 }
0x1238   :  { %1493 = vst.msk [vmem:[#allocation2 + $0x8] sm:$0xff] %vm1491_vm12, %v1488_v29  ;;  %3030 = vadd.xlane.f32.xlu0 %v3029_v30  ;;  %v3436_v29 = vld [vmem:[%s9760_s14 + $0x10] sm:$0xff] }
0x123b   :  { %v1829_v31 = vpop.permute.xlu1 %1828 }
0x123c   :  { %1834 = vst.msk [vmem:[#allocation2 + $0x8] sm:$0xff] %vm1832_vm13, %v1829_v31  ;;  %v3437_v31 = vld [vmem:[%s9760_s14 + $0x18] sm:$0xff] }
0x123f   :  { %v2170_v32 = vpop.permute.xlu1 %2169 }
0x1240   :  { %2175 = vst.msk [vmem:[#allocation2 + $0x8] sm:$0xff] %vm2173_vm14, %v2170_v32  ;;  %v8030_v32 = vpack.c.bf16 %v3437_v31, %v3436_v29 }
0x1243   :  { %v2511_v33 = vpop.permute.xlu1 %2510 }
0x1244   :  { %2516 = vst.msk [vmem:[#allocation2 + $0x8] sm:$0xff] %vm2514_vm15, %v2511_v33  ;;  %v3438_v33 = vld [vmem:[%s9760_s14 + $0x20] sm:$0xff] }
0x1247   :  { %v2852_v35 = vpop.permute.xlu1 %2851 }
0x1248   :  { %2857 = vst.msk [vmem:[#allocation2 + $0x8] sm:$0xff] %vm2855_vm0, %v2852_v35  ;;  %v3439_v35 = vld [vmem:[%s9760_s14 + $0x28] sm:$0xff] }
0x124e   :  { %3036 = vrot.lane.b32.xlu0 %v8722_v36, %s8468_s3 }
0x1252   :  { %1485 = vrot.lane.b32.xlu0 %v8864_v25, %s9787_s24 }
0x1256   :  { %1826 = vrot.lane.b32.xlu0 %v8904_v5, %s9785_s20  ;;  %s9809_s20 = smov 28  }
0x125a   :  { %2167 = vrot.lane.b32.xlu0 %v8944_v50, %s9781_s26 }
0x125e   :  { %2508 = vrot.lane.b32.xlu0 %v8984_v26, %s9779_s5 }
0x1262   :  { %2849 = vrot.lane.b32.xlu0 %v9024_v6, %s9777_s30  ;;  %v8307_v6 = vld [vmem:[#allocation12 + $0x8] sm:$0xff] }
0x12c1   :  { %v3028_v37 = vpop.xlane.xlu0 %3027 }
0x12c2   :  { %8223 = vrcp.f32 %v3028_v37  ;;  %v8034_v37 = vpack.c.bf16 %v3439_v35, %v3438_v33  ;;  %v7119_v33 = vld [vmem:[%s9801_s27 + $0x28] sm:$0xff] }
0x12c5   :  { %v3031_v39 = vpop.xlane.xlu0 %3030 }
0x12c6   :  { %8225 = vrcp.f32 %v3031_v39  ;;  %v3440_v39 = vld [vmem:[%s9760_s14 + $0x30] sm:$0xff] }
0x12c9   :  { %v3037_v36 = vpop.permute.xlu0 %3036 }
0x12ca   :  { %7653 = vmatpush3.msra.mxu1 %v3037_v36  ;;  %v3441_v36 = vld [vmem:[%s9760_s14 + $0x38] sm:$0xff] }
0x12cb   :  { %8011 = vmatprep.subr.bf16.mxu1 %v8010_v55 }
0x12cc   :  { %v8224_v43 = vpop.eup %8223 }
0x12cd   :  { %v1486_v25 = vpop.permute.xlu0 %1485  ;;  %v3033_v44 = vmul.f32 %v8224_v43, %v8220_v52  ;;  %v3343_v52 = vld [vmem:[%s9758_s12 + $0x18] sm:$0xff]  ;;  %v8038_v43 = vpack.c.bf16 %v3441_v36, %v3440_v39 }
0x12ce   :  { %1492 = vst.msk [vmem:[#allocation2] sm:$0xff] %vm1491_vm12, %v1486_v25  ;;  %v8022_v23 = vpack.c.bf16 %v3343_v52, %v3342_v22  ;;  %v3442_v25 = vld [vmem:[%s9760_s14 + $0x40] sm:$0xff]  ;;  %v7121_v39 = vld [vmem:[%s9801_s27 + $0x38] sm:$0xff] }
0x12cf   :  { %7655 = vmatmul.mubr.msk.f32.vlgmr.msra.gmra.mrb[30].mxu1 %vm639_vm10, %v3033_v44  ;;  %v3443_v44 = vld [vmem:[%s9760_s14 + $0x48] sm:$0xff] }
0x12d0   :  { %v8226_v5 = vpop.eup %8225  ;;  %8013 = vmatpush3.bf16.msra.mxu1 %v8010_v55 }
0x12d1   :  { %v1827_v50 = vpop.permute.xlu0 %1826  ;;  %v3035_v46 = vmul.f32 %v8226_v5, %v8222_v28  ;;  %8015 = vmatprep.subr.bf16.mxu1 %v8014_v38  ;;  %v3435_v28 = vld [vmem:[%s9760_s14 + $0x8] sm:$0xff]  ;;  %v8042_v5 = vpack.c.bf16 %v3443_v44, %v3442_v25 }
0x12d2   :  { %1833 = vst.msk [vmem:[#allocation2] sm:$0xff] %vm1832_vm13, %v1827_v50  ;;  %v8026_v30 = vpack.c.bf16 %v3435_v28, %v3434_v24  ;;  %v3444_v50 = vld [vmem:[%s9760_s14 + $0x50] sm:$0xff]  ;;  %v7125_v25 = vld [vmem:[%s9752_s6 + $0x28] sm:$0xff] }
0x12d3   :  { %7660 = vmatmul.mubr.msk.f32.vlgmr.msra.gmra.mrb[38].mxu0 %vm639_vm10, %v3035_v46  ;;  %v3445_v46 = vld [vmem:[%s9760_s14 + $0x58] sm:$0xff] }
0x12d4   :  { %8017 = vmatpush3.bf16.msra.mxu1 %v8014_v38  ;;  %8021 = vmatpush3.bf16.msra.mxu0 %v8018_v7 }
0x12d5   :  { %v2168_v26 = vpop.permute.xlu0 %2167  ;;  %8023 = vmatprep.subr.bf16.mxu0 %v8022_v23  ;;  %8027 = vmatprep.subr.bf16.mxu1 %v8026_v30 }
0x12d6   :  { %2174 = vst.msk [vmem:[#allocation2] sm:$0xff] %vm2173_vm14, %v2168_v26  ;;  %v8046_v26 = vpack.c.bf16 %v3445_v46, %v3444_v50 }
0x12d8   :  { %8025 = vmatpush3.bf16.msra.mxu0 %v8022_v23 }
0x12d9   :  { %v2509_v47 = vpop.permute.xlu0 %2508 }
0x12da   :  { %2515 = vst.msk [vmem:[#allocation2] sm:$0xff] %vm2514_vm15, %v2509_v47  ;;  %v3446_v47 = vld [vmem:[%s9760_s14 + $0x60] sm:$0xff] }
0x12dd   :  { %v2850_v48 = vpop.permute.xlu0 %2849 }
0x12de   :  { %2856 = vst.msk [vmem:[#allocation2] sm:$0xff] %vm2855_vm0, %v2850_v48  ;;  %v3447_v48 = vld [vmem:[%s9760_s14 + $0x68] sm:$0xff] }
0x12df   :  { %v8050_v51 = vpack.c.bf16 %v3447_v48, %v3446_v47 }
0x13a2   :  { %v3108_v40 = vpop.f32.mrb[30].mxu1 }
0x13a3   :  { %3190 = vrot.lane.b32.xlu0 %v3108_v40, %s9783_s22  ;;  %v7656_v42 = vpop.f32.mrb[31].mxu1 }
0x13a6   :  { %v3184_v59 = vpop.f32.mrb[38].mxu0 }
0x13a7   :  { %3192 = vrot.lane.b32.xlu1 %v3184_v59, %s9783_s22  ;;  %v7661_v60 = vpop.f32.mrb[39].mxu0  ;;  %v7110_v59 = vld [vmem:[#allocation9] ss:$0 sm:$0xff] }
0x1415   :  { %v3191_v61 = vpop.permute.xlu0 %3190 }
0x1416   :  { %3197 = vst.msk [vmem:[#allocation2] sm:$0xff] %vm3196_vm1, %v3191_v61  ;;  %v7111_v61 = vld [vmem:[%s9757_s11] ss:$0 sm:$0xff] }
0x1419   :  { %v3193_v62 = vpop.permute.xlu1 %3192 }
0x141a   :  { %3198 = vst.msk [vmem:[#allocation2 + $0x8] sm:$0xff] %vm3196_vm1, %v3193_v62 }
0x141d   :  { %v3199_v63 = vld [vmem:[#allocation2] sm:$0xff] }
0x141e   :  { %7670 = vmatprep.mubr.msk.f32.mxu1 %vm221_vm4, %v3199_v63 }
0x1421   :  { %v3200_v0 = vld [vmem:[#allocation2 + $0x8] sm:$0xff] }
0x1422   :  { %7671 = vmatmul.mubr.msk.f32.vlgmr.msra.gmra.mrb[32].mxu1 %vm221_vm4, %v3200_v0 }
0x1423   :  { %8029 = vmatpush3.bf16.msra.mxu1 %v8026_v30 }
0x1424   :  { %8031 = vmatprep.subr.bf16.mxu1 %v8030_v32 }
0x1427   :  { %8033 = vmatpush3.bf16.msra.mxu1 %v8030_v32  ;;  %v7118_v32 = vld [vmem:[%s9801_s27 + $0x20] sm:$0xff] }
0x1428   :  { %8035 = vmatprep.subr.bf16.mxu1 %v8034_v37  ;;  %v8058_v35 = vpack.c.bf16 %v7119_v33, %v7118_v32 }
0x142a   :  { %8059 = vmatprep.subr.bf16.mxu0 %v8058_v35 }
0x142b   :  { %8037 = vmatpush3.bf16.msra.mxu1 %v8034_v37  ;;  %v7120_v37 = vld [vmem:[%s9801_s27 + $0x30] sm:$0xff] }
0x142c   :  { %8039 = vmatprep.subr.bf16.mxu1 %v8038_v43  ;;  %v8062_v36 = vpack.c.bf16 %v7121_v39, %v7120_v37 }
0x142f   :  { %8041 = vmatpush3.bf16.msra.mxu1 %v8038_v43  ;;  %v7124_v43 = vld [vmem:[%s9752_s6 + $0x20] sm:$0xff] }
0x1430   :  { %8043 = vmatprep.subr.bf16.mxu1 %v8042_v5  ;;  %v8066_v44 = vpack.c.bf16 %v7125_v25, %v7124_v43 }
0x1433   :  { %8045 = vmatpush3.bf16.msra.mxu1 %v8042_v5 }
0x1434   :  { %8047 = vmatprep.subr.bf16.mxu1 %v8046_v26 }
0x1437   :  { %8049 = vmatpush3.bf16.msra.mxu1 %v8046_v26 }
0x1438   :  { %8051 = vmatprep.subr.bf16.mxu1 %v8050_v51 }
0x143b   :  { %8053 = vmatpush3.bf16.msra.mxu1 %v8050_v51 }
0x14f5   :  { %v7672_v2 = vpop.f32.mrb[32].mxu1 }
0x14f6   :  { %v3290_v3 = vadd.f32 %v7672_v2, %v7107_v1  ;;  %v3284_v41 = vpop.f32.mrb[33].mxu1 }
0x14f7   :  { %v3285_v4 = vadd.f32 %v7107_v1, %v3284_v41  ;;  %v3448_v41 = vld [vmem:[%s9760_s14 + $0x70] sm:$0xff] }
0x14f8   :  { %v3294_v8 = vadd.f32 %v8307_v6, %v3290_v3 }
0x14f9   :  { %v3293_v10 = vadd.f32 %v8308_v9, %v3285_v4  ;;  %v3449_v4 = vld [vmem:[%s9760_s14 + $0x78] sm:$0xff] }
0x14fa   :  { %v3300_v11 = vsel %vm221_vm4, %v3294_v8, 0.0  ;;  %v8054_v6 = vpack.c.bf16 %v3449_v4, %v3448_v41  ;;  %v7133_v41 = vld [vmem:[%s9753_s7 + $0x38] sm:$0xff] }
0x14fb   :  { %3301 = vadd.xlane.f32.xlu1 %v3300_v11  ;;  %v3297_v12 = vsel %vm221_vm4, %v3293_v10, 0.0 }
0x14fc   :  { %3298 = vadd.xlane.f32.xlu0 %v3297_v12  ;;  %8055 = vmatprep.subr.bf16.mxu1 %v8054_v6 }
0x14fd   :  { %8057 = vmatpush3.bf16.msra.mxu1 %v8054_v6 }
0x14fe   :  { %7762 = vmatprep.subr.mxu1 %v8460_v20 }
0x1588   :  { %v3302_v13 = vpop.xlane.xlu1 %3301 }
0x1589   :  { %v3305_v14 = vmul.f32 0.03125, %v3302_v13  ;;  %v3299_v15 = vpop.xlane.xlu0 %3298 }
0x158a   :  { %v3304_v16 = vmul.f32 0.03125, %v3299_v15  ;;  %v7115_v15 = vld [vmem:[%s9761_s15] ss:$0 sm:$0xff] }
0x158b   :  { %v9096_v17 = vsub.f32 %v3294_v8, %v3305_v14  ;;  %v7112_v8 = vld [vmem:[%s9759_s13] ss:$0 sm:$0xff] }
0x158c   :  { %v3306_v18 = vsub.f32 %v3293_v10, %v3304_v16 }
0x158d   :  { %v3309_v56 = vmul.f32 %v9096_v17, %v9096_v17 }
0x158e   :  { %v3308_v34 = vmul.f32 %v3306_v18, %v3306_v18 }
0x158f   :  { %v3313_v19 = vsel %vm221_vm4, %v3309_v56, 0.0 }
0x1590   :  { %v3310_v54 = vsel %vm221_vm4, %v3308_v34, 0.0 }
0x1591   :  { %3311 = vadd.xlane.f32.xlu0 %v3310_v54 }
0x1595   :  { %3314 = vadd.xlane.f32.xlu0 %v3313_v19 }
0x161e   :  { %v3312_v53 = vpop.xlane.xlu0 %3311 }
0x161f   :  { %v3316_v55 = vmul.f32 0.03125, %v3312_v53  ;;  %v7116_v53 = vld [vmem:[%s9762_s16] ss:$0 sm:$0xff] }
0x1621   :  { %v3318_v57 = vadd.f32 1e-05, %v3316_v55 }
0x1622   :  { %v3315_v58 = vpop.xlane.xlu0 %3314 }
0x1623   :  { %8227 = vrsqrt.f32 %v3318_v57  ;;  %v3317_v38 = vmul.f32 0.03125, %v3315_v58 }
0x1625   :  { %v3319_v40 = vadd.f32 1e-05, %v3317_v38  ;;  %v7117_v38 = vld [vmem:[%s9763_s17] ss:$0 sm:$0xff] }
0x1627   :  { %8229 = vrsqrt.f32 %v3319_v40 }
0x162d   :  { %v8228_v42 = vpop.eup %8227 }
0x162e   :  { %v3322_v60 = vmul.f32 %v8228_v42, %v3306_v18 }
0x1630   :  { %v3330_v62 = vmul.f32 %v7110_v59, %v3322_v60  ;;  %v7127_v60 = vld [vmem:[%s9752_s6 + $0x38] sm:$0xff] }
0x1631   :  { %v8230_v63 = vpop.eup %8229 }
0x1632   :  { %v3323_v0 = vmul.f32 %v8230_v63, %v9096_v17  ;;  %v3338_v1 = vadd.f32 %v7111_v61, %v3330_v62 }
0x1634   :  { %v3331_v2 = vmul.f32 %v7110_v59, %v3323_v0  ;;  %7681 = vmatprep.mubr.msk.f32.mxu0 %vm221_vm4, %v3338_v1  ;;  %v7126_v59 = vld [vmem:[%s9752_s6 + $0x30] sm:$0xff]  ;;  %v7130_v0 = vld [vmem:[%s9753_s7 + $0x20] sm:$0xff] }
0x1635   :  { %v8070_v63 = vpack.c.bf16 %v7127_v60, %v7126_v59 }
0x1636   :  { %v3339_v3 = vadd.f32 %v7111_v61, %v3331_v2 }
0x1638   :  { %7682 = vmatmul.mubr.msk.f32.vlgmr.msra.gmra.mrb[40].mxu0 %vm221_vm4, %v3339_v3 }
0x1639   :  { %8061 = vmatpush3.bf16.msra.mxu0 %v8058_v35 }
0x163a   :  { %8063 = vmatprep.subr.bf16.mxu0 %v8062_v36 }
0x163d   :  { %8065 = vmatpush3.bf16.msra.mxu0 %v8062_v36 }
0x163e   :  { %8067 = vmatprep.subr.bf16.mxu0 %v8066_v44 }
0x170b   :  { %v7683_v9 = vpop.f32.mrb[40].mxu0 }
0x170c   :  { %v3429_v10 = vadd.f32 %v7683_v9, %v7112_v8  ;;  %v3423_v11 = vpop.f32.mrb[41].mxu0 }
0x170d   :  { %v3424_v12 = vadd.f32 %v7112_v8, %v3423_v11 }
0x170e   :  { %v3433_v14 = vmax.f32 %v3429_v10, 0.0 }
0x170f   :  { %v3432_v13 = vmax.f32 %v3424_v12, 0.0 }
0x1711   :  { %7716 = vmatprep.mubr.f32.mxu1 %v3432_v13 }
0x1712   :  { %7717 = vmatmul.mubr.f32.vlgmr.msra.gmra.mrb[34].mxu1 %v3433_v14 }
0x1713   :  { %7764 = vmatprep.mubr.msk.f32.mxu1 %vm8461_vm6, %v8460_v20 }
0x17e5   :  { %v7718_v16 = vpop.f32.mrb[34].mxu1 }
0x17e6   :  { %v3529_v17 = vadd.f32 %v7718_v16, %v7115_v15  ;;  %v3523_v18 = vpop.f32.mrb[35].mxu1 }
0x17e7   :  { %v3524_v34 = vadd.f32 %v7115_v15, %v3523_v18 }
0x17e8   :  { %v3533_v54 = vadd.f32 %v3529_v17, %v3339_v3  ;;  %v7132_v3 = vld [vmem:[%s9753_s7 + $0x30] sm:$0xff] }
0x17e9   :  { %v3532_v56 = vadd.f32 %v3524_v34, %v3338_v1  ;;  %v7131_v1 = vld [vmem:[%s9753_s7 + $0x28] sm:$0xff]  ;;  %v8078_v4 = vpack.c.bf16 %v7133_v41, %v7132_v3  ;;  %s9804_s7 = smov 8  }
0x17ea   :  { %v3539_v19 = vsel %vm221_vm4, %v3533_v54, 0.0  ;;  %v8074_v2 = vpack.c.bf16 %v7131_v1, %v7130_v0 }
0x17eb   :  { %3540 = vadd.xlane.f32.xlu1 %v3539_v19  ;;  %v3536_v27 = vsel %vm221_vm4, %v3532_v56, 0.0 }
0x17ec   :  { %3537 = vadd.xlane.f32.xlu0 %v3536_v27 }
0x1878   :  { %v3541_v21 = vpop.xlane.xlu1 %3540 }
0x1879   :  { %v3543_v22 = vmul.f32 0.03125, %v3541_v21  ;;  %v3538_v7 = vpop.xlane.xlu0 %3537 }
0x187a   :  { %v3542_v52 = vmul.f32 0.03125, %v3538_v7 }
0x187b   :  { %v3545_v23 = vsub.f32 %v3533_v54, %v3543_v22 }
0x187c   :  { %v3544_v24 = vsub.f32 %v3532_v56, %v3542_v52 }
0x187d   :  { %v3547_v28 = vmul.f32 %v3545_v23, %v3545_v23 }
0x187e   :  { %v3546_v29 = vmul.f32 %v3544_v24, %v3544_v24 }
0x187f   :  { %v3551_v30 = vsel %vm221_vm4, %v3547_v28, 0.0 }
0x1880   :  { %3552 = vadd.xlane.f32.xlu1 %v3551_v30  ;;  %v3548_v31 = vsel %vm221_vm4, %v3546_v29, 0.0 }
0x1881   :  { %3549 = vadd.xlane.f32.xlu0 %v3548_v31 }
0x190d   :  { %v3553_v5 = vpop.xlane.xlu1 %3552 }
0x190e   :  { %v3555_v50 = vmul.f32 0.03125, %v3553_v5  ;;  %v3550_v46 = vpop.xlane.xlu0 %3549 }
0x190f   :  { %v3554_v26 = vmul.f32 0.03125, %v3550_v46 }
0x1910   :  { %v3557_v47 = vadd.f32 1e-05, %v3555_v50 }
0x1911   :  { %v3556_v48 = vadd.f32 1e-05, %v3554_v26 }
0x1912   :  { %8231 = vrsqrt.f32 %v3557_v47 }
0x1913   :  { %8233 = vrsqrt.f32 %v3556_v48 }
0x191c   :  { %v8232_v51 = vpop.eup %8231 }
0x191d   :  { %v8234_v55 = vpop.eup %8233  ;;  %v3561_v57 = vmul.f32 %v8232_v51, %v3545_v23 }
0x191e   :  { %v3560_v58 = vmul.f32 %v8234_v55, %v3544_v24 }
0x191f   :  { %v3569_v40 = vmul.f32 %v7116_v53, %v3561_v57 }
0x1920   :  { %v3568_v42 = vmul.f32 %v7116_v53, %v3560_v58 }
0x1921   :  { %v9213_v62 = vadd.f32 %v7117_v38, %v3569_v40 }
0x1922   :  { %v9211_v61 = vadd.f32 %v7117_v38, %v3568_v42 }
0x1924   :  { %7727 = vmatprep.mubr.msk.f32.mxu0 %vm221_vm4, %v9211_v61 }
0x1925   :  { %7728 = vmatmul.mubr.msk.f32.vlgmr.msra.gmra.mrb[42].mxu0 %vm221_vm4, %v9213_v62 }
0x1926   :  { %8069 = vmatpush3.bf16.msra.mxu0 %v8066_v44  ;;  %7738 = vmatprep.mubr.msk.f32.mxu0 %vm221_vm4, %v9211_v61 }
0x1927   :  { %8071 = vmatprep.subr.bf16.mxu0 %v8070_v63 }
0x192a   :  { %8073 = vmatpush3.bf16.msra.mxu0 %v8070_v63 }
0x192b   :  { %8075 = vmatprep.subr.bf16.mxu0 %v8074_v2 }
0x192d   :  { %7739 = vmatmul.mubr.msk.f32.vlgmr.msra.gmra.mrb[44].mxu0 %vm221_vm4, %v9213_v62 }
0x192e   :  { %8077 = vmatpush3.bf16.msra.mxu0 %v8074_v2  ;;  %7749 = vmatprep.mubr.msk.f32.mxu0 %vm221_vm4, %v9211_v61 }
0x192f   :  { %8079 = vmatprep.subr.bf16.mxu0 %v8078_v4 }
0x1932   :  { %8081 = vmatpush3.bf16.msra.mxu0 %v8078_v4 }
0x1933   :  { %7752 = vmatprep.subr.mxu0 %v8460_v20 }
0x1935   :  { %7750 = vmatmul.mubr.msk.f32.vlgmr.msra.gmra.mrb[46].mxu0 %vm221_vm4, %v9213_v62 }
0x1936   :  { %7754 = vmatprep.mubr.msk.f32.mxu0 %vm8461_vm6, %v8460_v20 }
0x19f8   :  { %v7729_v6 = vpop.f32.mrb[42].mxu0 }
0x19f9   :  { %v3655_v8 = vpop.f32.mrb[43].mxu0  ;;  %v9259_v15 = vmul.f32 0.70710677, %v7729_v6 }
0x19fa   :  { %v9246_v12 = vmul.f32 0.70710677, %v3655_v8 }
0x1a00   :  { %v7740_v9 = vpop.f32.mrb[44].mxu0 }
0x1a01   :  { %v3737_v10 = vpop.f32.mrb[45].mxu0  ;;  %v9249_v13 = vmul.f32 0.70710677, %v7740_v9 }
0x1a02   :  { %v9242_v11 = vmul.f32 0.70710677, %v3737_v10 }
0x1a04   :  { %7753 = vmatpush3.xpose.msk.msra.mxu0 %vm486_vm7, %v9242_v11 }
0x1a05   :  { %7757 = vmatprep.subr.mxu0 %v8460_v20 }
0x1a07   :  { %7755 = vmatmul.mubr.msk.f32.vlgmr.msra.gmra.mrb[48].mxu0 %vm486_vm7, %v9246_v12 }
0x1a08   :  { %v9253_v14 = vpop.f32.mrb[46].mxu0  ;;  %7758 = vmatpush3.xpose.msk.msra.mxu0 %vm486_vm7, %v9249_v13  ;;  %7759 = vmatprep.mubr.msk.f32.mxu0 %vm8461_vm6, %v8460_v20 }
0x1a09   :  { %v9261_v16 = vpop.f32.mrb[47].mxu0  ;;  %7767 = vmatprep.subr.mxu0 %v8460_v20 }
0x1a0a   :  { %7763 = vmatpush3.msra.mxu1 %v9261_v16 }
0x1a0b   :  { %7760 = vmatmul.mubr.msk.f32.vlgmr.msra.gmra.mrb[50].mxu0 %vm486_vm7, %v9259_v15  ;;  %7772 = vmatprep.subr.mxu1 %v8460_v20 }
0x1a0c   :  { %7768 = vmatpush3.msra.mxu0 %v9253_v14  ;;  %7769 = vmatprep.mubr.msk.f32.mxu0 %vm8461_vm6, %v8460_v20 }
0x1a0d   :  { %7777 = vmatprep.subr.mxu0 %v8460_v20 }
0x1ada   :  { %v3900_v17 = vpop.f32.mrb[48].mxu0 }
0x1adb   :  { %v3901_v18 = vadd.f32 %v3900_v17, %v8755_v45  ;;  %v7756_v34 = vpop.f32.mrb[49].mxu0 }
0x1add   :  { %v3980_v54 = vsel %vm639_vm10, %v3901_v18, -inf }
0x1ade   :  { %3981 = vmax.xlane.f32.xlu0 %v3980_v54  ;;  %v3976_v56 = vpop.f32.mrb[50].mxu0 }
0x1adf   :  { %v3977_v19 = vadd.f32 %v3976_v56, %v8759_v49  ;;  %v7761_v27 = vpop.f32.mrb[51].mxu0 }
0x1ae1   :  { %v3983_v21 = vsel %vm639_vm10, %v3977_v19, -inf }
0x1ae2   :  { %3984 = vmax.xlane.f32.xlu1 %v3983_v21 }
0x1af3   :  { %4230 = vrot.lane.b32.xlu1 %v9249_v13, %s8462_s0 }
0x1af7   :  { %4150 = vrot.lane.b32.xlu1 %v9246_v12, %s8462_s0 }
0x1b6b   :  { %v3982_v22 = vpop.xlane.xlu0 %3981 }
0x1b6c   :  { %v3986_v7 = vsub.f32 %v3901_v18, %v3982_v22 }
0x1b6e   :  { %v3988_v52 = vmul.f32 1.442695, %v3986_v7 }
0x1b6f   :  { %v3985_v23 = vpop.xlane.xlu1 %3984 }
0x1b70   :  { %8235 = vpow2.f32 %v3988_v52  ;;  %v3987_v24 = vsub.f32 %v3977_v19, %v3985_v23 }
0x1b72   :  { %v3990_v28 = vmul.f32 1.442695, %v3987_v24 }
0x1b73   :  { %v4231_v33 = vpop.permute.xlu1 %4230 }
0x1b74   :  { %8237 = vpow2.f32 %v3990_v28 }
0x1b77   :  { %v4151_v35 = vpop.permute.xlu1 %4150 }
0x1b7a   :  { %v8236_v29 = vpop.eup %8235 }
0x1b7b   :  { %v3992_v30 = vsel %vm639_vm10, %v8236_v29, 0.0 }
0x1b7c   :  { %3993 = vadd.xlane.f32.xlu0 %v3992_v30 }
0x1b7e   :  { %v8238_v31 = vpop.eup %8237 }
0x1b7f   :  { %v3995_v32 = vsel %vm639_vm10, %v8238_v31, 0.0 }
0x1b80   :  { %3996 = vadd.xlane.f32.xlu1 %v3995_v32 }
0x1b91   :  { %4228 = vrot.lane.b32.xlu1 %v9259_v15, %s8462_s0 }
0x1b92   :  { %4152 = vrot.lane.b32.xlu0 %v9242_v11, %s8462_s0 }
0x1c09   :  { %v3994_v37 = vpop.xlane.xlu0 %3993 }
0x1c0a   :  { %8239 = vrcp.f32 %v3994_v37 }
0x1c0d   :  { %v3997_v39 = vpop.xlane.xlu1 %3996  ;;  %v4153_v25 = vpop.permute.xlu0 %4152 }
0x1c0e   :  { %8241 = vrcp.f32 %v3997_v39 }
0x1c11   :  { %v4229_v50 = vpop.permute.xlu1 %4228 }
0x1c14   :  { %v8240_v36 = vpop.eup %8239 }
0x1c15   :  { %v3999_v43 = vmul.f32 %v8240_v36, %v8236_v29 }
0x1c17   :  { %7765 = vmatmul.mubr.msk.f32.vlgmr.msra.gmra.mrb[36].mxu1 %vm639_vm10, %v3999_v43 }
0x1c18   :  { %v8242_v44 = vpop.eup %8241  ;;  %7773 = vmatpush3.xpose.msk.msra.mxu1 %vm486_vm7, %v4153_v25  ;;  %7774 = vmatprep.mubr.msk.f32.mxu1 %vm8461_vm6, %v8460_v20 }
0x1c19   :  { %v4001_v5 = vmul.f32 %v8242_v44, %v8238_v31  ;;  %7782 = vmatprep.subr.mxu1 %v8460_v20 }
0x1c1b   :  { %7770 = vmatmul.mubr.msk.f32.vlgmr.msra.gmra.mrb[52].mxu0 %vm639_vm10, %v4001_v5  ;;  %7775 = vmatmul.mubr.msk.f32.vlgmr.msra.gmra.mrb[38].mxu1 %vm486_vm7, %v4151_v35 }
0x1c1c   :  { %7778 = vmatpush3.xpose.msk.msra.mxu0 %vm486_vm7, %v4231_v33  ;;  %7779 = vmatprep.mubr.msk.f32.mxu0 %vm8461_vm6, %v8460_v20 }
0x1c1d   :  { %7787 = vmatprep.subr.mxu0 %v8460_v20  ;;  %7784 = vmatprep.mubr.msk.f32.mxu1 %vm8461_vm6, %v8460_v20 }
0x1c1f   :  { %7780 = vmatmul.mubr.msk.f32.vlgmr.msra.gmra.mrb[54].mxu0 %vm486_vm7, %v4229_v50 }
0x1c20   :  { %7789 = vmatprep.mubr.msk.f32.mxu0 %vm8461_vm6, %v8460_v20 }
0x1cea   :  { %v4071_v46 = vpop.f32.mrb[36].mxu1 }
0x1ceb   :  { %4148 = vst.msk [vmem:[#allocation2] sm:$0xff] %vm486_vm7, %v4071_v46  ;;  %v7766_v26 = vpop.f32.mrb[37].mxu1 }
0x1cee   :  { %v4144_v47 = vpop.f32.mrb[52].mxu0  ;;  %v4224_v48 = vpop.f32.mrb[38].mxu1 }
0x1cef   :  { %4149 = vst.msk [vmem:[#allocation2 + $0x8] sm:$0xff] %vm486_vm7, %v4144_v47  ;;  %v4225_v51 = vadd.f32 %v4224_v48, %v8755_v45  ;;  %v7771_v53 = vpop.f32.mrb[53].mxu0  ;;  %v7776_v55 = vpop.f32.mrb[39].mxu1 }
0x1cf1   :  { %v4306_v57 = vsel %vm639_vm10, %v4225_v51, -inf }
0x1cf2   :  { %4307 = vmax.xlane.f32.xlu0 %v4306_v57  ;;  %v4302_v58 = vpop.f32.mrb[54].mxu0 }
0x1cf3   :  { %v4303_v38 = vadd.f32 %v4302_v58, %v8759_v49  ;;  %v7781_v40 = vpop.f32.mrb[55].mxu0 }
0x1cf5   :  { %v4309_v42 = vsel %vm639_vm10, %v4303_v38, -inf }
0x1cf6   :  { %4310 = vmax.xlane.f32.xlu1 %v4309_v42 }
0x1d07   :  { %4406 = vrot.lane.b32.xlu1 %v9253_v14, %s8462_s0 }
0x1d08   :  { %4329 = vrot.lane.b32.xlu0 %v9261_v16, %s8462_s0  ;;  %s9805_s0 = smov 12  }
0x1d0b   :  { %4494 = vrot.lane.b32.xlu1 %v9242_v11, %s8463_s25 }
0x1d0f   :  { %4572 = vrot.lane.b32.xlu1 %v9249_v13, %s8463_s25 }
0x1d13   :  { %4570 = vrot.lane.b32.xlu1 %v9259_v15, %s8463_s25 }
0x1d7f   :  { %v4308_v59 = vpop.xlane.xlu0 %4307 }
0x1d80   :  { %v4312_v60 = vsub.f32 %v4225_v51, %v4308_v59 }
0x1d82   :  { %v4314_v63 = vmul.f32 1.442695, %v4312_v60 }
0x1d83   :  { %v4330_v0 = vpop.permute.xlu0 %4329  ;;  %v4311_v1 = vpop.xlane.xlu1 %4310 }
0x1d84   :  { %8243 = vpow2.f32 %v4314_v63  ;;  %v4313_v2 = vsub.f32 %v4303_v38, %v4311_v1  ;;  %7783 = vmatpush3.msra.mxu1 %v4330_v0 }
0x1d85   :  { %7792 = vmatprep.subr.mxu1 %v8460_v20 }
0x1d86   :  { %v4316_v3 = vmul.f32 1.442695, %v4313_v2 }
0x1d87   :  { %v4407_v41 = vpop.permute.xlu1 %4406 }
0x1d88   :  { %8245 = vpow2.f32 %v4316_v3  ;;  %7788 = vmatpush3.msra.mxu0 %v4407_v41 }
0x1d89   :  { %7797 = vmatprep.subr.mxu0 %v8460_v20 }
0x1d8b   :  { %v4495_v18 = vpop.permute.xlu1 %4494 }
0x1d8e   :  { %v8244_v4 = vpop.eup %8243 }
0x1d8f   :  { %v4318_v6 = vsel %vm639_vm10, %v8244_v4, 0.0  ;;  %v4573_v19 = vpop.permute.xlu1 %4572 }
0x1d90   :  { %4319 = vadd.xlane.f32.xlu0 %v4318_v6 }
0x1d92   :  { %v8246_v8 = vpop.eup %8245 }
0x1d93   :  { %v4321_v9 = vsel %vm639_vm10, %v8246_v8, 0.0  ;;  %v4571_v22 = vpop.permute.xlu1 %4570 }
0x1d94   :  { %4322 = vadd.xlane.f32.xlu0 %v4321_v9 }
0x1daa   :  { %4492 = vrot.lane.b32.xlu0 %v9246_v12, %s8463_s25 }
0x1e1d   :  { %v4320_v10 = vpop.xlane.xlu0 %4319 }
0x1e1e   :  { %8247 = vrcp.f32 %v4320_v10 }
0x1e21   :  { %v4323_v17 = vpop.xlane.xlu0 %4322 }
0x1e22   :  { %8249 = vrcp.f32 %v4323_v17 }
0x1e25   :  { %v4493_v21 = vpop.permute.xlu0 %4492 }
0x1e28   :  { %v8248_v34 = vpop.eup %8247 }
0x1e29   :  { %v4325_v54 = vmul.f32 %v8248_v34, %v8244_v4 }
0x1e2b   :  { %7785 = vmatmul.mubr.msk.f32.vlgmr.msra.gmra.mrb[40].mxu1 %vm639_vm10, %v4325_v54 }
0x1e2c   :  { %v8250_v56 = vpop.eup %8249  ;;  %7793 = vmatpush3.xpose.msk.msra.mxu1 %vm486_vm7, %v4495_v18  ;;  %7794 = vmatprep.mubr.msk.f32.mxu1 %vm8461_vm6, %v8460_v20 }
0x1e2d   :  { %v4327_v27 = vmul.f32 %v8250_v56, %v8246_v8  ;;  %7802 = vmatprep.subr.mxu1 %v8460_v20 }
0x1e2f   :  { %7790 = vmatmul.mubr.msk.f32.vlgmr.msra.gmra.mrb[56].mxu0 %vm639_vm10, %v4327_v27  ;;  %7795 = vmatmul.mubr.msk.f32.vlgmr.msra.gmra.mrb[42].mxu1 %vm486_vm7, %v4493_v21 }
0x1e30   :  { %7798 = vmatpush3.xpose.msk.msra.mxu0 %vm486_vm7, %v4573_v19  ;;  %7799 = vmatprep.mubr.msk.f32.mxu0 %vm8461_vm6, %v8460_v20 }
0x1e31   :  { %7807 = vmatprep.subr.mxu0 %v8460_v20  ;;  %7804 = vmatprep.mubr.msk.f32.mxu1 %vm8461_vm6, %v8460_v20 }
0x1e33   :  { %7800 = vmatmul.mubr.msk.f32.vlgmr.msra.gmra.mrb[58].mxu0 %vm486_vm7, %v4571_v22 }
0x1e34   :  { %7809 = vmatprep.mubr.msk.f32.mxu0 %vm8461_vm6, %v8460_v20 }
0x1efe   :  { %v9340_v7 = vpop.f32.mrb[40].mxu1 }
0x1eff   :  { %v7786_v52 = vpop.f32.mrb[41].mxu1 }
0x1f02   :  { %v9342_v23 = vpop.f32.mrb[56].mxu0  ;;  %v4566_v24 = vpop.f32.mrb[42].mxu1 }
0x1f03   :  { %v4567_v28 = vadd.f32 %v4566_v24, %v8755_v45  ;;  %v7791_v29 = vpop.f32.mrb[57].mxu0  ;;  %v7796_v30 = vpop.f32.mrb[43].mxu1 }
0x1f05   :  { %v4648_v31 = vsel %vm639_vm10, %v4567_v28, -inf }
0x1f06   :  { %4649 = vmax.xlane.f32.xlu0 %v4648_v31  ;;  %v4644_v32 = vpop.f32.mrb[58].mxu0 }
0x1f07   :  { %v4645_v33 = vadd.f32 %v4644_v32, %v8759_v49  ;;  %v7801_v35 = vpop.f32.mrb[59].mxu0 }
0x1f09   :  { %v4651_v37 = vsel %vm639_vm10, %v4645_v33, -inf }
0x1f0a   :  { %4652 = vmax.xlane.f32.xlu1 %v4651_v37 }
0x1f1b   :  { %4746 = vrot.lane.b32.xlu1 %v9253_v14, %s8463_s25 }
0x1f1c   :  { %4670 = vrot.lane.b32.xlu0 %v9261_v16, %s8463_s25  ;;  %s9806_s25 = smov 16  }
0x1f1f   :  { %4834 = vrot.lane.b32.xlu1 %v9242_v11, %s8464_s29 }
0x1f23   :  { %4912 = vrot.lane.b32.xlu1 %v9249_v13, %s8464_s29 }
0x1f27   :  { %4910 = vrot.lane.b32.xlu1 %v9259_v15, %s8464_s29 }
0x1f93   :  { %v4650_v39 = vpop.xlane.xlu0 %4649 }
0x1f94   :  { %v4654_v36 = vsub.f32 %v4567_v28, %v4650_v39 }
0x1f96   :  { %v4656_v43 = vmul.f32 1.442695, %v4654_v36 }
0x1f97   :  { %v4671_v25 = vpop.permute.xlu0 %4670  ;;  %v4653_v44 = vpop.xlane.xlu1 %4652 }
0x1f98   :  { %8251 = vpow2.f32 %v4656_v43  ;;  %v4655_v5 = vsub.f32 %v4645_v33, %v4653_v44  ;;  %7803 = vmatpush3.msra.mxu1 %v4671_v25 }
0x1f99   :  { %7812 = vmatprep.subr.mxu1 %v8460_v20 }
0x1f9a   :  { %v4658_v50 = vmul.f32 1.442695, %v4655_v5 }
0x1f9b   :  { %v4747_v46 = vpop.permute.xlu1 %4746 }
0x1f9c   :  { %8253 = vpow2.f32 %v4658_v50  ;;  %7808 = vmatpush3.msra.mxu0 %v4747_v46 }
0x1f9d   :  { %7817 = vmatprep.subr.mxu0 %v8460_v20 }
0x1f9f   :  { %v4835_v57 = vpop.permute.xlu1 %4834 }
0x1fa2   :  { %v8252_v26 = vpop.eup %8251 }
0x1fa3   :  { %v4660_v47 = vsel %vm639_vm10, %v8252_v26, 0.0  ;;  %v4913_v42 = vpop.permute.xlu1 %4912 }
0x1fa4   :  { %4661 = vadd.xlane.f32.xlu0 %v4660_v47 }
0x1fa6   :  { %v8254_v48 = vpop.eup %8253 }
0x1fa7   :  { %v4663_v51 = vsel %vm639_vm10, %v8254_v48, 0.0  ;;  %v4911_v63 = vpop.permute.xlu1 %4910 }
0x1fa8   :  { %4664 = vadd.xlane.f32.xlu0 %v4663_v51 }
0x1fbe   :  { %4832 = vrot.lane.b32.xlu0 %v9246_v12, %s8464_s29 }
0x2031   :  { %v4662_v53 = vpop.xlane.xlu0 %4661 }
0x2032   :  { %8255 = vrcp.f32 %v4662_v53 }
0x2035   :  { %v4665_v55 = vpop.xlane.xlu0 %4664 }
0x2036   :  { %8257 = vrcp.f32 %v4665_v55 }
0x2039   :  { %v4833_v60 = vpop.permute.xlu0 %4832 }
0x203c   :  { %v8256_v58 = vpop.eup %8255 }
0x203d   :  { %v4667_v38 = vmul.f32 %v8256_v58, %v8252_v26 }
0x203f   :  { %7805 = vmatmul.mubr.msk.f32.vlgmr.msra.gmra.mrb[44].mxu1 %vm639_vm10, %v4667_v38 }
0x2040   :  { %v8258_v40 = vpop.eup %8257  ;;  %7813 = vmatpush3.xpose.msk.msra.mxu1 %vm486_vm7, %v4835_v57  ;;  %7814 = vmatprep.mubr.msk.f32.mxu1 %vm8461_vm6, %v8460_v20 }
0x2041   :  { %v4669_v59 = vmul.f32 %v8258_v40, %v8254_v48  ;;  %7822 = vmatprep.subr.mxu1 %v8460_v20 }
0x2043   :  { %7810 = vmatmul.mubr.msk.f32.vlgmr.msra.gmra.mrb[60].mxu0 %vm639_vm10, %v4669_v59  ;;  %7815 = vmatmul.mubr.msk.f32.vlgmr.msra.gmra.mrb[46].mxu1 %vm486_vm7, %v4833_v60 }
0x2044   :  { %7818 = vmatpush3.xpose.msk.msra.mxu0 %vm486_vm7, %v4913_v42  ;;  %7819 = vmatprep.mubr.msk.f32.mxu0 %vm8461_vm6, %v8460_v20 }
0x2045   :  { %7827 = vmatprep.subr.mxu0 %v8460_v20  ;;  %7824 = vmatprep.mubr.msk.f32.mxu1 %vm8461_vm6, %v8460_v20 }
0x2047   :  { %7820 = vmatmul.mubr.msk.f32.vlgmr.msra.gmra.mrb[62].mxu0 %vm486_vm7, %v4911_v63 }
0x2048   :  { %7829 = vmatprep.mubr.msk.f32.mxu0 %vm8461_vm6, %v8460_v20 }
0x2112   :  { %v9380_v0 = vpop.f32.mrb[44].mxu1 }
0x2113   :  { %v7806_v1 = vpop.f32.mrb[45].mxu1 }
0x2116   :  { %v9382_v2 = vpop.f32.mrb[60].mxu0  ;;  %v4906_v3 = vpop.f32.mrb[46].mxu1 }
0x2117   :  { %v4907_v41 = vadd.f32 %v4906_v3, %v8755_v45  ;;  %v7811_v4 = vpop.f32.mrb[61].mxu0  ;;  %v7816_v6 = vpop.f32.mrb[47].mxu1 }
0x2119   :  { %v4988_v8 = vsel %vm639_vm10, %v4907_v41, -inf }
0x211a   :  { %4989 = vmax.xlane.f32.xlu0 %v4988_v8  ;;  %v4984_v9 = vpop.f32.mrb[62].mxu0 }
0x211b   :  { %v4985_v10 = vadd.f32 %v4984_v9, %v8759_v49  ;;  %v7821_v17 = vpop.f32.mrb[63].mxu0 }
0x211d   :  { %v4991_v18 = vsel %vm639_vm10, %v4985_v10, -inf }
0x211e   :  { %4992 = vmax.xlane.f32.xlu1 %v4991_v18 }
0x212f   :  { %5086 = vrot.lane.b32.xlu1 %v9253_v14, %s8464_s29 }
0x2130   :  { %5010 = vrot.lane.b32.xlu0 %v9261_v16, %s8464_s29  ;;  %s9807_s29 = smov 20  }
0x2133   :  { %5174 = vrot.lane.b32.xlu1 %v9242_v11, %s8465_s2 }
0x2137   :  { %5252 = vrot.lane.b32.xlu1 %v9249_v13, %s8465_s2 }
0x213b   :  { %5250 = vrot.lane.b32.xlu1 %v9259_v15, %s8465_s2 }
0x21a7   :  { %v4990_v34 = vpop.xlane.xlu0 %4989 }
0x21a8   :  { %v4994_v54 = vsub.f32 %v4907_v41, %v4990_v34 }
0x21aa   :  { %v4996_v56 = vmul.f32 1.442695, %v4994_v54 }
0x21ab   :  { %v5011_v19 = vpop.permute.xlu0 %5010  ;;  %v4993_v27 = vpop.xlane.xlu1 %4992 }
0x21ac   :  { %8259 = vpow2.f32 %v4996_v56  ;;  %v4995_v21 = vsub.f32 %v4985_v10, %v4993_v27  ;;  %7823 = vmatpush3.msra.mxu1 %v5011_v19 }
0x21ad   :  { %7832 = vmatprep.subr.mxu1 %v8460_v20 }
0x21ae   :  { %v4998_v22 = vmul.f32 1.442695, %v4995_v21 }
0x21af   :  { %v5087_v52 = vpop.permute.xlu1 %5086 }
0x21b0   :  { %8261 = vpow2.f32 %v4998_v22  ;;  %7828 = vmatpush3.msra.mxu0 %v5087_v52 }
0x21b1   :  { %7837 = vmatprep.subr.mxu0 %v8460_v20 }
0x21b3   :  { %v5175_v33 = vpop.permute.xlu1 %5174 }
0x21b6   :  { %v8260_v24 = vpop.eup %8259 }
0x21b7   :  { %v5000_v28 = vsel %vm639_vm10, %v8260_v24, 0.0  ;;  %v5253_v36 = vpop.permute.xlu1 %5252 }
0x21b8   :  { %5001 = vadd.xlane.f32.xlu0 %v5000_v28 }
0x21ba   :  { %v8262_v29 = vpop.eup %8261 }
0x21bb   :  { %v5003_v30 = vsel %vm639_vm10, %v8262_v29, 0.0  ;;  %v5251_v44 = vpop.permute.xlu1 %5250 }
0x21bc   :  { %5004 = vadd.xlane.f32.xlu0 %v5003_v30 }
0x21d2   :  { %5172 = vrot.lane.b32.xlu0 %v9246_v12, %s8465_s2 }
0x2245   :  { %v5002_v31 = vpop.xlane.xlu0 %5001 }
0x2246   :  { %8263 = vrcp.f32 %v5002_v31 }
0x2249   :  { %v5005_v32 = vpop.xlane.xlu0 %5004 }
0x224a   :  { %8265 = vrcp.f32 %v5005_v32 }
0x224d   :  { %v5173_v25 = vpop.permute.xlu0 %5172 }
0x2250   :  { %v8264_v35 = vpop.eup %8263 }
0x2251   :  { %v5007_v37 = vmul.f32 %v8264_v35, %v8260_v24 }
0x2253   :  { %7825 = vmatmul.mubr.msk.f32.vlgmr.msra.gmra.mrb[48].mxu1 %vm639_vm10, %v5007_v37 }
0x2254   :  { %v8266_v39 = vpop.eup %8265  ;;  %7833 = vmatpush3.xpose.msk.msra.mxu1 %vm486_vm7, %v5175_v33  ;;  %7834 = vmatprep.mubr.msk.f32.mxu1 %vm8461_vm6, %v8460_v20 }
0x2255   :  { %v5009_v43 = vmul.f32 %v8266_v39, %v8262_v29  ;;  %7842 = vmatprep.subr.mxu1 %v8460_v20 }
0x2257   :  { %7830 = vmatmul.mubr.msk.f32.vlgmr.msra.gmra.mrb[64].mxu0 %vm639_vm10, %v5009_v43  ;;  %7835 = vmatmul.mubr.msk.f32.vlgmr.msra.gmra.mrb[50].mxu1 %vm486_vm7, %v5173_v25 }
0x2258   :  { %7838 = vmatpush3.xpose.msk.msra.mxu0 %vm486_vm7, %v5253_v36  ;;  %7839 = vmatprep.mubr.msk.f32.mxu0 %vm8461_vm6, %v8460_v20 }
0x2259   :  { %7847 = vmatprep.subr.mxu0 %v8460_v20  ;;  %7844 = vmatprep.mubr.msk.f32.mxu1 %vm8461_vm6, %v8460_v20 }
0x225b   :  { %7840 = vmatmul.mubr.msk.f32.vlgmr.msra.gmra.mrb[66].mxu0 %vm486_vm7, %v5251_v44 }
0x225c   :  { %7849 = vmatprep.mubr.msk.f32.mxu0 %vm8461_vm6, %v8460_v20 }
0x2326   :  { %v9420_v5 = vpop.f32.mrb[48].mxu1 }
0x2327   :  { %v7826_v50 = vpop.f32.mrb[49].mxu1 }
0x232a   :  { %v9422_v46 = vpop.f32.mrb[64].mxu0  ;;  %v5246_v26 = vpop.f32.mrb[50].mxu1 }
0x232b   :  { %v5247_v47 = vadd.f32 %v5246_v26, %v8755_v45  ;;  %v7831_v48 = vpop.f32.mrb[65].mxu0  ;;  %v7836_v51 = vpop.f32.mrb[51].mxu1 }
0x232d   :  { %v5328_v53 = vsel %vm639_vm10, %v5247_v47, -inf }
0x232e   :  { %5329 = vmax.xlane.f32.xlu0 %v5328_v53  ;;  %v5324_v55 = vpop.f32.mrb[66].mxu0 }
0x232f   :  { %v5325_v57 = vadd.f32 %v5324_v55, %v8759_v49  ;;  %v7841_v58 = vpop.f32.mrb[67].mxu0 }
0x2331   :  { %v5331_v38 = vsel %vm639_vm10, %v5325_v57, -inf }
0x2332   :  { %5332 = vmax.xlane.f32.xlu1 %v5331_v38 }
0x2343   :  { %5426 = vrot.lane.b32.xlu1 %v9253_v14, %s8465_s2 }
0x2344   :  { %5350 = vrot.lane.b32.xlu0 %v9261_v16, %s8465_s2  ;;  %s9808_s2 = smov 24  }
0x2347   :  { %5514 = vrot.lane.b32.xlu1 %v9242_v11, %s8466_s19 }
0x234b   :  { %5592 = vrot.lane.b32.xlu1 %v9249_v13, %s8466_s19 }
0x234f   :  { %5590 = vrot.lane.b32.xlu1 %v9259_v15, %s8466_s19 }
0x23bb   :  { %v5330_v40 = vpop.xlane.xlu0 %5329 }
0x23bc   :  { %v5334_v42 = vsub.f32 %v5247_v47, %v5330_v40 }
0x23be   :  { %v5336_v59 = vmul.f32 1.442695, %v5334_v42 }
0x23bf   :  { %v5351_v60 = vpop.permute.xlu0 %5350  ;;  %v5333_v63 = vpop.xlane.xlu1 %5332 }
0x23c0   :  { %8267 = vpow2.f32 %v5336_v59  ;;  %v5335_v1 = vsub.f32 %v5325_v57, %v5333_v63  ;;  %7843 = vmatpush3.msra.mxu1 %v5351_v60 }
0x23c1   :  { %7852 = vmatprep.subr.mxu1 %v8460_v20 }
0x23c2   :  { %v5338_v3 = vmul.f32 1.442695, %v5335_v1 }
0x23c3   :  { %v5427_v41 = vpop.permute.xlu1 %5426 }
0x23c4   :  { %8269 = vpow2.f32 %v5338_v3  ;;  %7848 = vmatpush3.msra.mxu0 %v5427_v41 }
0x23c5   :  { %7857 = vmatprep.subr.mxu0 %v8460_v20 }
0x23c7   :  { %v5515_v18 = vpop.permute.xlu1 %5514 }
0x23ca   :  { %v8268_v4 = vpop.eup %8267 }
0x23cb   :  { %v5340_v6 = vsel %vm639_vm10, %v8268_v4, 0.0  ;;  %v5593_v19 = vpop.permute.xlu1 %5592 }
0x23cc   :  { %5341 = vadd.xlane.f32.xlu0 %v5340_v6 }
0x23ce   :  { %v8270_v8 = vpop.eup %8269 }
0x23cf   :  { %v5343_v9 = vsel %vm639_vm10, %v8270_v8, 0.0  ;;  %v5591_v22 = vpop.permute.xlu1 %5590 }
0x23d0   :  { %5344 = vadd.xlane.f32.xlu0 %v5343_v9 }
0x23e6   :  { %5512 = vrot.lane.b32.xlu0 %v9246_v12, %s8466_s19 }
0x2459   :  { %v5342_v10 = vpop.xlane.xlu0 %5341 }
0x245a   :  { %8271 = vrcp.f32 %v5342_v10 }
0x245d   :  { %v5345_v17 = vpop.xlane.xlu0 %5344 }
0x245e   :  { %8273 = vrcp.f32 %v5345_v17 }
0x2461   :  { %v5513_v21 = vpop.permute.xlu0 %5512 }
0x2464   :  { %v8272_v34 = vpop.eup %8271 }
0x2465   :  { %v5347_v54 = vmul.f32 %v8272_v34, %v8268_v4 }
0x2467   :  { %7845 = vmatmul.mubr.msk.f32.vlgmr.msra.gmra.mrb[52].mxu1 %vm639_vm10, %v5347_v54 }
0x2468   :  { %v8274_v56 = vpop.eup %8273  ;;  %7853 = vmatpush3.xpose.msk.msra.mxu1 %vm486_vm7, %v5515_v18  ;;  %7854 = vmatprep.mubr.msk.f32.mxu1 %vm8461_vm6, %v8460_v20 }
0x2469   :  { %v5349_v27 = vmul.f32 %v8274_v56, %v8270_v8  ;;  %7862 = vmatprep.subr.mxu1 %v8460_v20 }
0x246b   :  { %7850 = vmatmul.mubr.msk.f32.vlgmr.msra.gmra.mrb[68].mxu0 %vm639_vm10, %v5349_v27  ;;  %7855 = vmatmul.mubr.msk.f32.vlgmr.msra.gmra.mrb[54].mxu1 %vm486_vm7, %v5513_v21 }
0x246c   :  { %7858 = vmatpush3.xpose.msk.msra.mxu0 %vm486_vm7, %v5593_v19  ;;  %7859 = vmatprep.mubr.msk.f32.mxu0 %vm8461_vm6, %v8460_v20 }
0x246d   :  { %7867 = vmatprep.subr.mxu0 %v8460_v20  ;;  %7864 = vmatprep.mubr.msk.f32.mxu1 %vm8461_vm6, %v8460_v20 }
0x246f   :  { %7860 = vmatmul.mubr.msk.f32.vlgmr.msra.gmra.mrb[70].mxu0 %vm486_vm7, %v5591_v22 }
0x2470   :  { %7869 = vmatprep.mubr.msk.f32.mxu0 %vm8461_vm6, %v8460_v20 }
0x253a   :  { %v9460_v52 = vpop.f32.mrb[52].mxu1 }
0x253b   :  { %v7846_v24 = vpop.f32.mrb[53].mxu1 }
0x253e   :  { %v9462_v28 = vpop.f32.mrb[68].mxu0  ;;  %v5586_v29 = vpop.f32.mrb[54].mxu1 }
0x253f   :  { %v5587_v30 = vadd.f32 %v5586_v29, %v8755_v45  ;;  %v7851_v31 = vpop.f32.mrb[69].mxu0  ;;  %v7856_v32 = vpop.f32.mrb[55].mxu1 }
0x2541   :  { %v5668_v33 = vsel %vm639_vm10, %v5587_v30, -inf }
0x2542   :  { %5669 = vmax.xlane.f32.xlu0 %v5668_v33  ;;  %v5664_v35 = vpop.f32.mrb[70].mxu0 }
0x2543   :  { %v5665_v37 = vadd.f32 %v5664_v35, %v8759_v49  ;;  %v7861_v39 = vpop.f32.mrb[71].mxu0 }
0x2545   :  { %v5671_v36 = vsel %vm639_vm10, %v5665_v37, -inf }
0x2546   :  { %5672 = vmax.xlane.f32.xlu1 %v5671_v36 }
0x2557   :  { %5766 = vrot.lane.b32.xlu1 %v9253_v14, %s8466_s19 }
0x2558   :  { %5690 = vrot.lane.b32.xlu0 %v9261_v16, %s8466_s19 }
0x255b   :  { %5854 = vrot.lane.b32.xlu1 %v9242_v11, %s8467_s21 }
0x255f   :  { %5932 = vrot.lane.b32.xlu1 %v9249_v13, %s8467_s21 }
0x2563   :  { %5930 = vrot.lane.b32.xlu1 %v9259_v15, %s8467_s21 }
0x25cf   :  { %v5670_v43 = vpop.xlane.xlu0 %5669 }
0x25d0   :  { %v5674_v25 = vsub.f32 %v5587_v30, %v5670_v43 }
0x25d2   :  { %v5676_v44 = vmul.f32 1.442695, %v5674_v25 }
0x25d3   :  { %v5691_v50 = vpop.permute.xlu0 %5690  ;;  %v5673_v26 = vpop.xlane.xlu1 %5672 }
0x25d4   :  { %8275 = vpow2.f32 %v5676_v44  ;;  %v5675_v47 = vsub.f32 %v5665_v37, %v5673_v26  ;;  %7863 = vmatpush3.msra.mxu1 %v5691_v50 }
0x25d5   :  { %7872 = vmatprep.subr.mxu1 %v8460_v20 }
0x25d6   :  { %v5678_v48 = vmul.f32 1.442695, %v5675_v47 }
0x25d7   :  { %v5767_v51 = vpop.permute.xlu1 %5766 }
0x25d8   :  { %8277 = vpow2.f32 %v5678_v48  ;;  %7868 = vmatpush3.msra.mxu0 %v5767_v51 }
0x25d9   :  { %7877 = vmatprep.subr.mxu0 %v8460_v20 }
0x25db   :  { %v5855_v42 = vpop.permute.xlu1 %5854 }
0x25de   :  { %v8276_v53 = vpop.eup %8275 }
0x25df   :  { %v5680_v55 = vsel %vm639_vm10, %v8276_v53, 0.0  ;;  %v5933_v1 = vpop.permute.xlu1 %5932 }
0x25e0   :  { %5681 = vadd.xlane.f32.xlu0 %v5680_v55 }
0x25e2   :  { %v8278_v57 = vpop.eup %8277 }
0x25e3   :  { %v5683_v58 = vsel %vm639_vm10, %v8278_v57, 0.0  ;;  %v5931_v4 = vpop.permute.xlu1 %5930 }
0x25e4   :  { %5684 = vadd.xlane.f32.xlu0 %v5683_v58 }
0x25fa   :  { %5852 = vrot.lane.b32.xlu0 %v9246_v12, %s8467_s21 }
0x266d   :  { %v5682_v38 = vpop.xlane.xlu0 %5681 }
0x266e   :  { %8279 = vrcp.f32 %v5682_v38 }
0x2671   :  { %v5685_v40 = vpop.xlane.xlu0 %5684 }
0x2672   :  { %8281 = vrcp.f32 %v5685_v40 }
0x2675   :  { %v5853_v41 = vpop.permute.xlu0 %5852 }
0x2678   :  { %v8280_v59 = vpop.eup %8279 }
0x2679   :  { %v5687_v60 = vmul.f32 %v8280_v59, %v8276_v53 }
0x267b   :  { %7865 = vmatmul.mubr.msk.f32.vlgmr.msra.gmra.mrb[56].mxu1 %vm639_vm10, %v5687_v60 }
0x267c   :  { %v8282_v63 = vpop.eup %8281  ;;  %7873 = vmatpush3.xpose.msk.msra.mxu1 %vm486_vm7, %v5855_v42  ;;  %7874 = vmatprep.mubr.msk.f32.mxu1 %vm8461_vm6, %v8460_v20 }
0x267d   :  { %v5689_v3 = vmul.f32 %v8282_v63, %v8278_v57  ;;  %7882 = vmatprep.subr.mxu1 %v8460_v20 }
0x267f   :  { %7870 = vmatmul.mubr.msk.f32.vlgmr.msra.gmra.mrb[72].mxu0 %vm639_vm10, %v5689_v3  ;;  %7875 = vmatmul.mubr.msk.f32.vlgmr.msra.gmra.mrb[58].mxu1 %vm486_vm7, %v5853_v41 }
0x2680   :  { %7878 = vmatpush3.xpose.msk.msra.mxu0 %vm486_vm7, %v5933_v1  ;;  %7879 = vmatprep.mubr.msk.f32.mxu0 %vm8461_vm6, %v8460_v20 }
0x2681   :  { %7887 = vmatprep.subr.mxu0 %v8460_v20  ;;  %7884 = vmatprep.mubr.msk.f32.mxu1 %vm8461_vm6, %v8460_v20 }
0x2683   :  { %7880 = vmatmul.mubr.msk.f32.vlgmr.msra.gmra.mrb[74].mxu0 %vm486_vm7, %v5931_v4 }
0x2684   :  { %7889 = vmatprep.mubr.msk.f32.mxu0 %vm8461_vm6, %v8460_v20 }
0x274e   :  { %v9500_v6 = vpop.f32.mrb[56].mxu1 }
0x274f   :  { %v7866_v8 = vpop.f32.mrb[57].mxu1 }
0x2752   :  { %v9502_v9 = vpop.f32.mrb[72].mxu0  ;;  %v5926_v10 = vpop.f32.mrb[58].mxu1 }
0x2753   :  { %v5927_v17 = vadd.f32 %v5926_v10, %v8755_v45  ;;  %v7871_v18 = vpop.f32.mrb[73].mxu0  ;;  %v7876_v34 = vpop.f32.mrb[59].mxu1 }
0x2755   :  { %v6008_v54 = vsel %vm639_vm10, %v5927_v17, -inf }
0x2756   :  { %6009 = vmax.xlane.f32.xlu0 %v6008_v54  ;;  %v6004_v56 = vpop.f32.mrb[74].mxu0 }
0x2757   :  { %v6005_v19 = vadd.f32 %v6004_v56, %v8759_v49  ;;  %v7881_v27 = vpop.f32.mrb[75].mxu0 }
0x2759   :  { %v6011_v21 = vsel %vm639_vm10, %v6005_v19, -inf }
0x275a   :  { %6012 = vmax.xlane.f32.xlu1 %v6011_v21 }
0x276b   :  { %6106 = vrot.lane.b32.xlu1 %v9253_v14, %s8467_s21 }
0x276c   :  { %6030 = vrot.lane.b32.xlu0 %v9261_v16, %s8467_s21 }
0x276f   :  { %6194 = vrot.lane.b32.xlu1 %v9242_v11, %s8468_s3 }
0x2773   :  { %6272 = vrot.lane.b32.xlu1 %v9249_v13, %s8468_s3 }
0x2777   :  { %6270 = vrot.lane.b32.xlu1 %v9259_v15, %s8468_s3 }
0x27e3   :  { %v6010_v22 = vpop.xlane.xlu0 %6009 }
0x27e4   :  { %v6014_v24 = vsub.f32 %v5927_v17, %v6010_v22 }
0x27e6   :  { %v6016_v29 = vmul.f32 1.442695, %v6014_v24 }
0x27e7   :  { %v6031_v30 = vpop.permute.xlu0 %6030  ;;  %v6013_v31 = vpop.xlane.xlu1 %6012 }
0x27e8   :  { %8283 = vpow2.f32 %v6016_v29  ;;  %v6015_v32 = vsub.f32 %v6005_v19, %v6013_v31  ;;  %7883 = vmatpush3.msra.mxu1 %v6031_v30  ;;  %v7184_v29 = vld [vmem:[%s9754_s8 + $0x20] sm:$0xff]  ;;  %v7185_v30 = vld [vmem:[%s9754_s8 + $0x28] sm:$0xff] }
0x27e9   :  { %7892 = vmatprep.subr.mxu1 %v8460_v20  ;;  %v8082_v31 = vpack.c.bf16 %v7185_v30, %v7184_v29 }
0x27ea   :  { %v6018_v33 = vmul.f32 1.442695, %v6015_v32  ;;  %v7186_v32 = vld [vmem:[%s9754_s8 + $0x30] sm:$0xff] }
0x27eb   :  { %v6107_v35 = vpop.permute.xlu1 %6106 }
0x27ec   :  { %8285 = vpow2.f32 %v6018_v33  ;;  %7888 = vmatpush3.msra.mxu0 %v6107_v35  ;;  %v7187_v33 = vld [vmem:[%s9754_s8 + $0x38] sm:$0xff] }
0x27ed   :  { %7897 = vmatprep.subr.mxu0 %v8460_v20  ;;  %v8086_v35 = vpack.c.bf16 %v7187_v33, %v7186_v32  ;;  %v7193_v32 = vld [vmem:[#allocation9 + $0x1] ss:$0 sm:$0xff] }
0x27ef   :  { %v6195_v43 = vpop.permute.xlu1 %6194 }
0x27f2   :  { %v8284_v11 = vpop.eup %8283 }
0x27f3   :  { %v6020_v13 = vsel %vm639_vm10, %v8284_v11, 0.0  ;;  %v6273_v26 = vpop.permute.xlu1 %6272 }
0x27f4   :  { %6021 = vadd.xlane.f32.xlu0 %v6020_v13 }
0x27f6   :  { %v8286_v15 = vpop.eup %8285 }
0x27f7   :  { %v6023_v37 = vsel %vm639_vm10, %v8286_v15, 0.0  ;;  %v6271_v48 = vpop.permute.xlu1 %6270 }
0x27f8   :  { %6024 = vadd.xlane.f32.xlu0 %v6023_v37 }
0x280e   :  { %6192 = vrot.lane.b32.xlu0 %v9246_v12, %s8468_s3 }
0x2881   :  { %v6022_v39 = vpop.xlane.xlu0 %6021 }
0x2882   :  { %8287 = vrcp.f32 %v6022_v39 }
0x2885   :  { %v6025_v36 = vpop.xlane.xlu0 %6024 }
0x2886   :  { %8289 = vrcp.f32 %v6025_v36 }
0x2889   :  { %v6193_v12 = vpop.permute.xlu0 %6192 }
0x288c   :  { %v8288_v25 = vpop.eup %8287 }
0x288d   :  { %v6027_v44 = vmul.f32 %v8288_v25, %v8284_v11 }
0x288f   :  { %7885 = vmatmul.mubr.msk.f32.vlgmr.msra.gmra.mrb[60].mxu1 %vm639_vm10, %v6027_v44  ;;  %v7189_v44 = vld [vmem:[%s9755_s9 + $0x1] ss:$0 sm:$0xff] }
0x2890   :  { %v8290_v50 = vpop.eup %8289  ;;  %7893 = vmatpush3.xpose.msk.msra.mxu1 %vm486_vm7, %v6195_v43  ;;  %7894 = vmatprep.mubr.msk.f32.mxu1 %vm8461_vm6, %v8460_v20 }
0x2891   :  { %v6029_v47 = vmul.f32 %v8290_v50, %v8286_v15  ;;  %7902 = vmatprep.subr.mxu1 %v8460_v20 }
0x2893   :  { %7890 = vmatmul.mubr.msk.f32.vlgmr.msra.gmra.mrb[76].mxu0 %vm639_vm10, %v6029_v47  ;;  %7895 = vmatmul.mubr.msk.f32.vlgmr.msra.gmra.mrb[62].mxu1 %vm486_vm7, %v6193_v12 }
0x2894   :  { %7898 = vmatpush3.xpose.msk.msra.mxu0 %vm486_vm7, %v6273_v26  ;;  %7899 = vmatprep.mubr.msk.f32.mxu0 %vm8461_vm6, %v8460_v20 }
0x2895   :  { %7907 = vmatprep.subr.mxu0 %v8460_v20  ;;  %7904 = vmatprep.mubr.msk.f32.mxu1 %vm8461_vm6, %v8460_v20 }
0x2897   :  { %7900 = vmatmul.mubr.msk.f32.vlgmr.msra.gmra.mrb[78].mxu0 %vm486_vm7, %v6271_v48 }
0x2898   :  { %7909 = vmatprep.mubr.msk.f32.mxu0 %vm8461_vm6, %v8460_v20 }
0x2962   :  { %v6102_v51 = vpop.f32.mrb[60].mxu1 }
0x2963   :  { %v7886_v53 = vpop.f32.mrb[61].mxu1 }
0x2966   :  { %v6178_v55 = vpop.f32.mrb[76].mxu0  ;;  %v6266_v57 = vpop.f32.mrb[62].mxu1 }
0x2967   :  { %v6267_v58 = vadd.f32 %v6266_v57, %v8755_v45  ;;  %v7891_v38 = vpop.f32.mrb[77].mxu0  ;;  %v7896_v40 = vpop.f32.mrb[63].mxu1 }
0x2969   :  { %v6348_v42 = vsel %vm639_vm10, %v6267_v58, -inf }
0x296a   :  { %6349 = vmax.xlane.f32.xlu0 %v6348_v42  ;;  %v6344_v59 = vpop.f32.mrb[78].mxu0 }
0x296b   :  { %v6345_v60 = vadd.f32 %v6344_v59, %v8759_v49  ;;  %v7901_v63 = vpop.f32.mrb[79].mxu0 }
0x296d   :  { %v6351_v1 = vsel %vm639_vm10, %v6345_v60, -inf }
0x296e   :  { %6352 = vmax.xlane.f32.xlu1 %v6351_v1  ;;  %v7195_v1 = vld [vmem:[%s9758_s12 + $0x20] sm:$0xff] }
0x297f   :  { %6446 = vrot.lane.b32.xlu1 %v9253_v14, %s8468_s3 }
0x2983   :  { %4484 = vrot.lane.b32.xlu1 %v9340_v7, %s8469_s4 }
0x2987   :  { %4486 = vrot.lane.b32.xlu1 %v9342_v23, %s8469_s4 }
0x298b   :  { %4826 = vrot.lane.b32.xlu1 %v9382_v2, %s9804_s7 }
0x298f   :  { %5166 = vrot.lane.b32.xlu1 %v9422_v46, %s9805_s0 }
0x2993   :  { %5506 = vrot.lane.b32.xlu1 %v9462_v28, %s9806_s25 }
0x2997   :  { %5846 = vrot.lane.b32.xlu1 %v9502_v9, %s9807_s29 }
0x299b   :  { %6186 = vrot.lane.b32.xlu1 %v6178_v55, %s9808_s2 }
0x29f7   :  { %v6350_v20 = vpop.xlane.xlu0 %6349 }
0x29f8   :  { %v6354_v45 = vsub.f32 %v6267_v58, %v6350_v20  ;;  %v7196_v20 = vld [vmem:[%s9758_s12 + $0x28] sm:$0xff] }
0x29fa   :  { %v6356_v49 = vmul.f32 1.442695, %v6354_v45  ;;  %v8090_v45 = vpack.c.bf16 %v7196_v20, %v7195_v1 }
0x29fb   :  { %v6353_v14 = vpop.xlane.xlu1 %6352 }
0x29fc   :  { %8291 = vpow2.f32 %v6356_v49  ;;  %v6355_v7 = vsub.f32 %v6345_v60, %v6353_v14  ;;  %v7197_v49 = vld [vmem:[%s9758_s12 + $0x30] sm:$0xff]  ;;  %v7198_v14 = vld [vmem:[%s9758_s12 + $0x38] sm:$0xff] }
0x29fe   :  { %v6358_v23 = vmul.f32 1.442695, %v6355_v7  ;;  %v8094_v7 = vpack.c.bf16 %v7198_v14, %v7197_v49 }
0x29ff   :  { %v6447_v3 = vpop.permute.xlu1 %6446 }
0x2a00   :  { %8293 = vpow2.f32 %v6358_v23  ;;  %7908 = vmatpush3.msra.mxu0 %v6447_v3  ;;  %v7203_v23 = vld [vmem:[%s9760_s14 + $0x80] sm:$0xff]  ;;  %v7204_v3 = vld [vmem:[%s9760_s14 + $0x88] sm:$0xff] }
0x2a01   :  { %8091 = vmatprep.subr.bf16.mxu0 %v8090_v45 }
0x2a03   :  { %v4485_v2 = vpop.permute.xlu1 %4484 }
0x2a04   :  { %4490 = vst.msk [vmem:[#allocation2] sm:$0xff] %vm1150_vm11, %v4485_v2  ;;  %v7205_v2 = vld [vmem:[%s9760_s14 + $0x90] sm:$0xff] }
0x2a06   :  { %v8292_v46 = vpop.eup %8291 }
0x2a07   :  { %v4487_v28 = vpop.permute.xlu1 %4486  ;;  %v6360_v41 = vsel %vm639_vm10, %v8292_v46, 0.0 }
0x2a08   :  { %4491 = vst.msk [vmem:[#allocation2 + $0x8] sm:$0xff] %vm1150_vm11, %v4487_v28  ;;  %6361 = vadd.xlane.f32.xlu0 %v6360_v41  ;;  %v7206_v28 = vld [vmem:[%s9760_s14 + $0x98] sm:$0xff] }
0x2a09   :  { %v8102_v41 = vpack.c.bf16 %v7206_v28, %v7205_v2  ;;  %v6920_v2 = vld [vmem:[%s9764_s18] sm:$0xff] }
0x2a0a   :  { %v8294_v4 = vpop.eup %8293 }
0x2a0b   :  { %v4827_v8 = vpop.permute.xlu1 %4826  ;;  %v6363_v9 = vsel %vm639_vm10, %v8294_v4, 0.0 }
0x2a0c   :  { %4831 = vst.msk [vmem:[#allocation2 + $0x8] sm:$0xff] %vm1491_vm12, %v4827_v8  ;;  %6364 = vadd.xlane.f32.xlu0 %v6363_v9  ;;  %v7208_v8 = vld [vmem:[%s9760_s14 + $0xa8] sm:$0xff] }
0x2a0f   :  { %v5167_v10 = vpop.permute.xlu1 %5166 }
0x2a10   :  { %5171 = vst.msk [vmem:[#allocation2 + $0x8] sm:$0xff] %vm1832_vm13, %v5167_v10  ;;  %v7209_v10 = vld [vmem:[%s9760_s14 + $0xb0] sm:$0xff] }
0x2a13   :  { %v5507_v17 = vpop.permute.xlu1 %5506 }
0x2a14   :  { %5511 = vst.msk [vmem:[#allocation2 + $0x8] sm:$0xff] %vm2173_vm14, %v5507_v17  ;;  %v7210_v17 = vld [vmem:[%s9760_s14 + $0xb8] sm:$0xff] }
0x2a17   :  { %v5847_v18 = vpop.permute.xlu1 %5846 }
0x2a18   :  { %5851 = vst.msk [vmem:[#allocation2 + $0x8] sm:$0xff] %vm2514_vm15, %v5847_v18  ;;  %v8110_v18 = vpack.c.bf16 %v7210_v17, %v7209_v10 }
0x2a1b   :  { %v6187_v34 = vpop.permute.xlu1 %6186 }
0x2a1c   :  { %6191 = vst.msk [vmem:[#allocation2 + $0x8] sm:$0xff] %vm2855_vm0, %v6187_v34  ;;  %v7211_v34 = vld [vmem:[%s9760_s14 + $0xc0] sm:$0xff] }
0x2a22   :  { %6370 = vrot.lane.b32.xlu0 %v9261_v16, %s8468_s3 }
0x2a26   :  { %4824 = vrot.lane.b32.xlu0 %v9380_v0, %s9804_s7 }
0x2a2a   :  { %5164 = vrot.lane.b32.xlu0 %v9420_v5, %s9805_s0  ;;  %s8474_s0 = smov [#allocation12]  }
0x2a2e   :  { %5504 = vrot.lane.b32.xlu0 %v9460_v52, %s9806_s25  ;;  %s7031_s25 = sshll.u32 %s8474_s0, 4  ;;  %s7032_s25 = int_to_ptr.vmem [resolvable:$true] %s7031_s25 }
0x2a2f   :  { %p8402_p5 = scmp.lt.s32.totalorder %s7032_s25, %s7032_s25 }
0x2a32   :  { %5844 = vrot.lane.b32.xlu0 %v9500_v6, %s9807_s29  ;;  %s8397_s29 = scalar_lea.vmem %s7032_s25, 256 }
0x2a33   :  { %p8398_p4 = scmp.ne.s32.totalorder %s7032_s25, %s8397_s29  ;;  %p8403_p6 = scmp.lt.s32.totalorder %s8397_s29, %s8397_s29 }
0x2a35   :  { %p8404_p7 = por %p8403_p6, %p8402_p5 }
0x2a36   :  { %6184 = vrot.lane.b32.xlu0 %v6102_v51, %s9808_s2 }
0x2a37   :  { %p8405_p8 = pnand %p8404_p7, %p8398_p4 }
0x2a95   :  { %v6362_v54 = vpop.xlane.xlu0 %6361 }
0x2a96   :  { %8295 = vrcp.f32 %v6362_v54  ;;  %v7212_v54 = vld [vmem:[%s9760_s14 + $0xc8] sm:$0xff] }
0x2a99   :  { %v6365_v56 = vpop.xlane.xlu0 %6364 }
0x2a9a   :  { %8297 = vrcp.f32 %v6365_v56  ;;  %v8114_v56 = vpack.c.bf16 %v7212_v54, %v7211_v34 }
0x2a9d   :  { %v6371_v19 = vpop.permute.xlu0 %6370 }
0x2a9e   :  { %7903 = vmatpush3.msra.mxu1 %v6371_v19  ;;  %v7213_v19 = vld [vmem:[%s9760_s14 + $0xd0] sm:$0xff] }
0x2a9f   :  { %8083 = vmatprep.subr.bf16.mxu1 %v8082_v31 }
0x2aa0   :  { %v8296_v16 = vpop.eup %8295 }
0x2aa1   :  { %v6367_v27 = vmul.f32 %v8296_v16, %v8292_v46  ;;  %v4825_v0 = vpop.permute.xlu0 %4824  ;;  %v8098_v46 = vpack.c.bf16 %v7204_v3, %v7203_v23  ;;  %v7214_v16 = vld [vmem:[%s9760_s14 + $0xd8] sm:$0xff] }
0x2aa2   :  { %4830 = vst.msk [vmem:[#allocation2] sm:$0xff] %vm1491_vm12, %v4825_v0  ;;  %v7215_v0 = vld [vmem:[%s9760_s14 + $0xe0] sm:$0xff] }
0x2aa3   :  { %7905 = vmatmul.mubr.msk.f32.vlgmr.msra.gmra.mrb[64].mxu1 %vm639_vm10, %v6367_v27  ;;  %v8118_v27 = vpack.c.bf16 %v7214_v16, %v7213_v19  ;;  %v7223_v19 = vld [vmem:[%s9762_s16 + $0x1] ss:$0 sm:$0xff] }
0x2aa4   :  { %v8298_v5 = vpop.eup %8297  ;;  %8085 = vmatpush3.bf16.msra.mxu1 %v8082_v31 }
0x2aa5   :  { %v6369_v52 = vmul.f32 %v8298_v5, %v8294_v4  ;;  %v5165_v21 = vpop.permute.xlu0 %5164  ;;  %8087 = vmatprep.subr.bf16.mxu1 %v8086_v35  ;;  %v7207_v4 = vld [vmem:[%s9760_s14 + $0xa0] sm:$0xff]  ;;  %v7216_v5 = vld [vmem:[%s9760_s14 + $0xe8] sm:$0xff] }
0x2aa6   :  { %5170 = vst.msk [vmem:[#allocation2] sm:$0xff] %vm1832_vm13, %v5165_v21  ;;  %v8106_v9 = vpack.c.bf16 %v7208_v8, %v7207_v4  ;;  %v6923_v4 = vld [vmem:[%s9764_s18 + $0x18] sm:$0xff] }
0x2aa7   :  { %7910 = vmatmul.mubr.msk.f32.vlgmr.msra.gmra.mrb[80].mxu0 %vm639_vm10, %v6369_v52  ;;  %v8122_v52 = vpack.c.bf16 %v7216_v5, %v7215_v0  ;;  %v7224_v5 = vld [vmem:[%s9763_s17 + $0x1] ss:$0 sm:$0xff] }
0x2aa8   :  { %8089 = vmatpush3.bf16.msra.mxu1 %v8086_v35  ;;  %8093 = vmatpush3.bf16.msra.mxu0 %v8090_v45  ;;  %v7194_v35 = vld [vmem:[%s9757_s11 + $0x1] ss:$0 sm:$0xff] }
0x2aa9   :  { %v5505_v6 = vpop.permute.xlu0 %5504  ;;  %8095 = vmatprep.subr.bf16.mxu0 %v8094_v7  ;;  %8099 = vmatprep.subr.bf16.mxu1 %v8098_v46 }
0x2aaa   :  { %5510 = vst.msk [vmem:[#allocation2] sm:$0xff] %vm2173_vm14, %v5505_v6 }
0x2aac   :  { %8097 = vmatpush3.bf16.msra.mxu0 %v8094_v7 }
0x2aad   :  { %v5845_v22 = vpop.permute.xlu0 %5844 }
0x2aae   :  { %5850 = vst.msk [vmem:[#allocation2] sm:$0xff] %vm2514_vm15, %v5845_v22 }
0x2ab1   :  { %v6185_v24 = vpop.permute.xlu0 %6184 }
0x2ab2   :  { %6190 = vst.msk [vmem:[#allocation2] sm:$0xff] %vm2855_vm0, %v6185_v24 }
0x2b76   :  { %v6442_v11 = vpop.f32.mrb[64].mxu1 }
0x2b77   :  { %6524 = vrot.lane.b32.xlu0 %v6442_v11, %s9809_s20  ;;  %v7906_v13 = vpop.f32.mrb[65].mxu1 }
0x2b7a   :  { %v6518_v15 = vpop.f32.mrb[80].mxu0 }
0x2b7b   :  { %6526 = vrot.lane.b32.xlu1 %v6518_v15, %s9809_s20  ;;  %v7911_v37 = vpop.f32.mrb[81].mxu0 }
0x2be9   :  { %v6525_v39 = vpop.permute.xlu0 %6524 }
0x2bea   :  { %6530 = vst.msk [vmem:[#allocation2] sm:$0xff] %vm3196_vm1, %v6525_v39 }
0x2bed   :  { %v6527_v36 = vpop.permute.xlu1 %6526 }
0x2bee   :  { %6531 = vst.msk [vmem:[#allocation2 + $0x8] sm:$0xff] %vm3196_vm1, %v6527_v36 }
0x2bf1   :  { %v6532_v43 = vld [vmem:[#allocation2] sm:$0xff] }
0x2bf2   :  { %7920 = vmatprep.mubr.msk.f32.mxu1 %vm221_vm4, %v6532_v43  ;;  %v7217_v43 = vld [vmem:[%s9760_s14 + $0xf0] sm:$0xff] }
0x2bf5   :  { %v6533_v25 = vld [vmem:[#allocation2 + $0x8] sm:$0xff] }
0x2bf6   :  { %7921 = vmatmul.mubr.msk.f32.vlgmr.msra.gmra.mrb[66].mxu1 %vm221_vm4, %v6533_v25  ;;  %v7218_v25 = vld [vmem:[%s9760_s14 + $0xf8] sm:$0xff] }
0x2bf7   :  { %8101 = vmatpush3.bf16.msra.mxu1 %v8098_v46  ;;  %v6921_v46 = vld [vmem:[%s9764_s18 + $0x8] sm:$0xff] }
0x2bf8   :  { %8103 = vmatprep.subr.bf16.mxu1 %v8102_v41  ;;  %v8130_v28 = vpack.c.bf16 %v6921_v46, %v6920_v2 }
0x2bfa   :  { %8131 = vmatprep.subr.bf16.mxu0 %v8130_v28 }
0x2bfb   :  { %8105 = vmatpush3.bf16.msra.mxu1 %v8102_v41  ;;  %v6922_v41 = vld [vmem:[%s9764_s18 + $0x10] sm:$0xff] }
0x2bfc   :  { %8107 = vmatprep.subr.bf16.mxu1 %v8106_v9  ;;  %v8134_v8 = vpack.c.bf16 %v6923_v4, %v6922_v41 }
0x2bff   :  { %8109 = vmatpush3.bf16.msra.mxu1 %v8106_v9 }
0x2c00   :  { %8111 = vmatprep.subr.bf16.mxu1 %v8110_v18 }
0x2c03   :  { %8113 = vmatpush3.bf16.msra.mxu1 %v8110_v18 }
0x2c04   :  { %8115 = vmatprep.subr.bf16.mxu1 %v8114_v56 }
0x2c07   :  { %8117 = vmatpush3.bf16.msra.mxu1 %v8114_v56 }
0x2c08   :  { %8119 = vmatprep.subr.bf16.mxu1 %v8118_v27 }
0x2c0b   :  { %8121 = vmatpush3.bf16.msra.mxu1 %v8118_v27 }
0x2c0c   :  { %8123 = vmatprep.subr.bf16.mxu1 %v8122_v52 }
0x2c0f   :  { %8125 = vmatpush3.bf16.msra.mxu1 %v8122_v52 }
0x2cc9   :  { %v7922_v50 = vpop.f32.mrb[66].mxu1 }
0x2cca   :  { %v6625_v26 = vadd.f32 %v7922_v50, %v7189_v44  ;;  %v6619_v47 = vpop.f32.mrb[67].mxu1  ;;  %v7200_v50 = vld [vmem:[%s9759_s13 + $0x1] ss:$0 sm:$0xff] }
0x2ccb   :  { %v6620_v12 = vadd.f32 %v7189_v44, %v6619_v47  ;;  %v8126_v44 = vpack.c.bf16 %v7218_v25, %v7217_v43 }
0x2ccc   :  { %v6629_v48 = vadd.f32 %v6625_v26, %v9213_v62 }
0x2ccd   :  { %v6628_v51 = vadd.f32 %v6620_v12, %v9211_v61  ;;  %8127 = vmatprep.subr.bf16.mxu1 %v8126_v44 }
0x2cce   :  { %v6637_v53 = vsel %vm221_vm4, %v6629_v48, 0.0  ;;  %8129 = vmatpush3.bf16.msra.mxu1 %v8126_v44 }
0x2ccf   :  { %6638 = vadd.xlane.f32.xlu1 %v6637_v53  ;;  %v6634_v55 = vsel %vm221_vm4, %v6628_v51, 0.0 }
0x2cd0   :  { %6635 = vadd.xlane.f32.xlu0 %v6634_v55  ;;  %v7220_v55 = vld [vmem:[%s9761_s15 + $0x1] ss:$0 sm:$0xff] }
0x2d5c   :  { %v6639_v57 = vpop.xlane.xlu1 %6638 }
0x2d5d   :  { %v6641_v58 = vmul.f32 0.03125, %v6639_v57  ;;  %v6636_v38 = vpop.xlane.xlu0 %6635 }
0x2d5e   :  { %v6640_v40 = vmul.f32 0.03125, %v6636_v38 }
0x2d5f   :  { %v9611_v42 = vsub.f32 %v6629_v48, %v6641_v58 }
0x2d60   :  { %v6642_v59 = vsub.f32 %v6628_v51, %v6640_v40 }
0x2d61   :  { %v6645_v62 = vmul.f32 %v9611_v42, %v9611_v42 }
0x2d62   :  { %v6644_v60 = vmul.f32 %v6642_v59, %v6642_v59 }
0x2d63   :  { %v6649_v61 = vsel %vm221_vm4, %v6645_v62, 0.0 }
0x2d64   :  { %v6646_v63 = vsel %vm221_vm4, %v6644_v60, 0.0 }
0x2d65   :  { %6647 = vadd.xlane.f32.xlu0 %v6646_v63 }
0x2d69   :  { %6650 = vadd.xlane.f32.xlu0 %v6649_v61 }
0x2df2   :  { %v6648_v21 = vpop.xlane.xlu0 %6647 }
0x2df3   :  { %v6652_v6 = vmul.f32 0.03125, %v6648_v21 }
0x2df5   :  { %v6654_v22 = vadd.f32 1e-05, %v6652_v6 }
0x2df6   :  { %v6651_v24 = vpop.xlane.xlu0 %6650 }
0x2df7   :  { %8299 = vrsqrt.f32 %v6654_v22  ;;  %v6653_v29 = vmul.f32 0.03125, %v6651_v24 }
0x2df9   :  { %v6655_v30 = vadd.f32 1e-05, %v6653_v29 }
0x2dfb   :  { %8301 = vrsqrt.f32 %v6655_v30 }
0x2e01   :  { %v8300_v31 = vpop.eup %8299 }
0x2e02   :  { %v6658_v33 = vmul.f32 %v8300_v31, %v6642_v59 }
0x2e04   :  { %v6666_v11 = vmul.f32 %v7193_v32, %v6658_v33 }
0x2e05   :  { %v8302_v13 = vpop.eup %8301 }
0x2e06   :  { %v6659_v15 = vmul.f32 %v8302_v13, %v9611_v42  ;;  %v6674_v37 = vadd.f32 %v7194_v35, %v6666_v11 }
0x2e08   :  { %v6667_v39 = vmul.f32 %v7193_v32, %v6659_v15  ;;  %7931 = vmatprep.mubr.msk.f32.mxu0 %vm221_vm4, %v6674_v37 }
0x2e0a   :  { %v6675_v36 = vadd.f32 %v7194_v35, %v6667_v39 }
0x2e0c   :  { %7932 = vmatmul.mubr.msk.f32.vlgmr.msra.gmra.mrb[82].mxu0 %vm221_vm4, %v6675_v36 }
0x2e0d   :  { %8133 = vmatpush3.bf16.msra.mxu0 %v8130_v28 }
0x2e0e   :  { %8135 = vmatprep.subr.bf16.mxu0 %v8134_v8 }
0x2e11   :  { %8137 = vmatpush3.bf16.msra.mxu0 %v8134_v8 }
0x2edf   :  { %v7933_v26 = vpop.f32.mrb[82].mxu0 }
0x2ee0   :  { %v6767_v47 = vadd.f32 %v7933_v26, %v7200_v50  ;;  %v6761_v12 = vpop.f32.mrb[83].mxu0 }
0x2ee1   :  { %v6762_v48 = vadd.f32 %v7200_v50, %v6761_v12 }
0x2ee2   :  { %v6771_v53 = vmax.f32 %v6767_v47, 0.0 }
0x2ee3   :  { %v6770_v51 = vmax.f32 %v6762_v48, 0.0 }
0x2ee5   :  { %7966 = vmatprep.mubr.f32.mxu1 %v6770_v51 }
0x2ee6   :  { %7967 = vmatmul.mubr.f32.vlgmr.msra.gmra.mrb[68].mxu1 %v6771_v53 }
0x2fb9   :  { %v7968_v57 = vpop.f32.mrb[68].mxu1 }
0x2fba   :  { %v6869_v58 = vadd.f32 %v7968_v57, %v7220_v55  ;;  %v6863_v38 = vpop.f32.mrb[69].mxu1 }
0x2fbb   :  { %v6864_v40 = vadd.f32 %v7220_v55, %v6863_v38 }
0x2fbc   :  { %v6873_v42 = vadd.f32 %v6869_v58, %v6675_v36 }
0x2fbd   :  { %v6872_v59 = vadd.f32 %v6864_v40, %v6674_v37 }
0x2fbe   :  { %v6881_v60 = vsel %vm221_vm4, %v6873_v42, 0.0 }
0x2fbf   :  { %6882 = vadd.xlane.f32.xlu1 %v6881_v60  ;;  %v6878_v63 = vsel %vm221_vm4, %v6872_v59, 0.0 }
0x2fc0   :  { %6879 = vadd.xlane.f32.xlu0 %v6878_v63 }
0x304c   :  { %v6883_v62 = vpop.xlane.xlu1 %6882 }
0x304d   :  { %v6885_v61 = vmul.f32 0.03125, %v6883_v62  ;;  %v6880_v1 = vpop.xlane.xlu0 %6879 }
0x304e   :  { %v6884_v20 = vmul.f32 0.03125, %v6880_v1 }
0x304f   :  { %v6887_v45 = vsub.f32 %v6873_v42, %v6885_v61 }
0x3050   :  { %v6886_v49 = vsub.f32 %v6872_v59, %v6884_v20 }
0x3051   :  { %v6889_v14 = vmul.f32 %v6887_v45, %v6887_v45 }
0x3052   :  { %v6888_v7 = vmul.f32 %v6886_v49, %v6886_v49 }
0x3053   :  { %v6893_v23 = vsel %vm221_vm4, %v6889_v14, 0.0 }
0x3054   :  { %6894 = vadd.xlane.f32.xlu1 %v6893_v23  ;;  %v6890_v3 = vsel %vm221_vm4, %v6888_v7, 0.0 }
0x3055   :  { %6891 = vadd.xlane.f32.xlu0 %v6890_v3 }
0x30e1   :  { %v6895_v9 = vpop.xlane.xlu1 %6894 }
0x30e2   :  { %v6897_v10 = vmul.f32 0.03125, %v6895_v9  ;;  %v6892_v17 = vpop.xlane.xlu0 %6891 }
0x30e3   :  { %v6896_v18 = vmul.f32 0.03125, %v6892_v17 }
0x30e4   :  { %v6899_v34 = vadd.f32 1e-05, %v6897_v10 }
0x30e5   :  { %v6898_v54 = vadd.f32 1e-05, %v6896_v18 }
0x30e6   :  { %8303 = vrsqrt.f32 %v6899_v34 }
0x30e7   :  { %8305 = vrsqrt.f32 %v6898_v54 }
0x30f0   :  { %v8304_v56 = vpop.eup %8303 }
0x30f1   :  { %v8306_v16 = vpop.eup %8305  ;;  %v6903_v27 = vmul.f32 %v8304_v56, %v6887_v45 }
0x30f2   :  { %v6902_v0 = vmul.f32 %v8306_v16, %v6886_v49 }
0x30f3   :  { %v6911_v52 = vmul.f32 %v7223_v19, %v6903_v27 }
0x30f4   :  { %v6910_v21 = vmul.f32 %v7223_v19, %v6902_v0 }
0x30f5   :  { %v6919_v22 = vadd.f32 %v7224_v5, %v6911_v52 }
0x30f6   :  { %v6918_v6 = vadd.f32 %v7224_v5, %v6910_v21 }
0x30f8   :  { %7977 = vmatprep.mubr.msk.f32.mxu0 %vm221_vm4, %v6918_v6 }
0x30f9   :  { %7978 = vmatmul.mubr.msk.f32.vlgmr.msra.gmra.mrb[84].mxu0 %vm221_vm4, %v6919_v22 }
0x30fa   :  { %8408 = shalt.err (!%p8405_p8)
}
0x30fb   :  { %s9810_s2 = sld [smem:[#allocation27_spill]] }
0x3101   :  { %s8409_s19 = scalar_lea.hbm %s9810_s2, 256 }
0x3102   :  { %p8410_p9 = scmp.ne.s32.totalorder %s9810_s2, %s8409_s19  ;;  %p8413_p10 = scmp.lt.u32.totalorder %s8409_s19, %s9810_s2 }
0x3104   :  { %p8415_p11 = pnand %p8413_p10, %p8410_p9 }
0x3106   :  { %8418 = shalt.err (!%p8415_p11)
}
0x3107   :  { %s9811_s12 = smov 128   ;;  %s9812_s20 = sld [smem:[#allocation25_spill]] }
0x3108   :  { %7037 = dma.vmem_to_hbm [thread:$0]  %s7032_s25, 256, %s9810_s2, [#allocation13], %s9811_s12, %s9811_s12, %s9804_s7  }
0x3109   :  { %s8475_s8 = smov [#allocation11]  }
0x310a   :  { %s7019_s13 = sshll.u32 %s8475_s8, 4  ;;  %s7020_s13 = int_to_ptr.vmem [resolvable:$true] %s7019_s13 }
0x310b   :  { %s8419_s14 = scalar_lea.vmem %s7020_s13, 256  ;;  %p8424_p13 = scmp.lt.s32.totalorder %s7020_s13, %s7020_s13 }
0x310c   :  { %p8420_p12 = scmp.ne.s32.totalorder %s7020_s13, %s8419_s14  ;;  %p8425_p0 = scmp.lt.s32.totalorder %s8419_s14, %s8419_s14 }
0x310d   :  { %v7225_v24 = vld [vmem:[%s9812_s20] ss:$0 sm:$0xff] }
0x310e   :  { %p8426_p1 = por %p8425_p0, %p8424_p13 }
0x3110   :  { %p8427_p2 = pnand %p8426_p1, %p8420_p12 }
0x31cc   :  { %v7979_v29 = vpop.f32.mrb[84].mxu0 }
0x31cd   :  { %v7009_v30 = vadd.f32 %v7979_v29, %v7225_v24  ;;  %v7003_v31 = vpop.f32.mrb[85].mxu0 }
0x31ce   :  { %v7004_v32 = vadd.f32 %v7225_v24, %v7003_v31 }
0x31cf   :  { %7013 = vst [vmem:[#allocation11 + $0x8] sm:$0xff] %v7009_v30 }
0x31d0   :  { %7012 = vst [vmem:[#allocation11] sm:$0xff] %v7004_v32 }
0x31d1   :  { %8430 = shalt.err (!%p8427_p2)
}
0x31d2   :  { %s9813_s9 = sld [smem:[#allocation26_spill]] }
0x31d8   :  { %s8431_s26 = scalar_lea.hbm %s9813_s9, 256 }
0x31d9   :  { %p8432_p3 = scmp.ne.s32.totalorder %s9813_s9, %s8431_s26  ;;  %p8435_p4 = scmp.lt.u32.totalorder %s8431_s26, %s9813_s9 }
0x31db   :  { %p8437_p5 = pnand %p8435_p4, %p8432_p3 }
0x31dd   :  { %8440 = shalt.err (!%p8437_p5)
}
0x31de   :  { %7025 = dma.vmem_to_hbm [thread:$0]  %s7020_s13, 256, %s9813_s9, [#allocation5], %s9811_s12, %s9811_s12, %s9804_s7  }
0x31df   :  { %8447 = dma.done.wait [#allocation5], 256  }
0x31e0   :  { %8448 = vsyncadd [#allocation5], 4294967040 }
0x31e1   :  { %8449 = dma.done.wait [#allocation13], 256  }
0x31e2   :  { %8450 = vsyncadd [#allocation13], 4294967040 }
0x31e3   :  { %7044 = vsyncpa [#allocation4], 1 }
0x31e4   :  { %7045 = vsyncpa [#allocation7], 1 }
0x31e5   :  { %7046 = vsyncpa [#allocation10], 1 }
0x31e6   :  { %7047 = vsyncpa [#allocation5], 1 }
0x31e7   :  { %7048 = vsyncpa [#allocation13], 1 }

</bundles_post_ra>
